<compile_context>
chip_gen: v5e
topology: v5e:2x2
jax: 0.10.0
libtpu: 0.0.40
codegen_flags: <defaults>
</compile_context>

<pallas_src>
import math
import functools

import jax
import jax.numpy as jnp
from jax.experimental import pallas as pl
from jax.experimental.pallas import tpu as pltpu


# ----------------------------------------------------------------------------
# Fused Pallas kernel: L x (MHA + LN + FFN + LN) + vocab projection
# ----------------------------------------------------------------------------
def transformer_kernel(x_ref, wqkv_ref, bqkv_ref, wo_ref, bo_ref,
                       g1_ref, bt1_ref, w1_ref, b1_ref, w2_ref, b2_ref,
                       g2_ref, bt2_ref, wout_ref, bout_ref,
                       logits_ref, *attn_refs, num_heads):
    """One grid step = one batch element (batch axis squeezed by BlockSpecs)."""
    T, D = x_ref.shape
    H = num_heads
    hd = D // H
    L = wqkv_ref.shape[0]
    eps = 1e-5

    x = x_ref[...]                                              # (T, D) f32

    for l in range(L):                                          # static, L=2
        # --- fused QKV projection (MXU). 1/sqrt(hd) is pre-folded into the
        #     Q columns of wqkv / bqkv, so no explicit scale here.
        qkv = jnp.dot(x, wqkv_ref[l],
                      preferred_element_type=jnp.float32) + bqkv_ref[l]   # (T, 3D)

        # --- gather heads onto a leading batch axis (register-level concat,
        #     no scratch buffer, no masked sub-lane stores).
        q = jnp.stack([qkv[:, h * hd:(h + 1) * hd] for h in range(H)])            # (H,T,hd)
        k = jnp.stack([qkv[:, D + h * hd:D + (h + 1) * hd] for h in range(H)])    # (H,T,hd)
        v = jnp.stack([qkv[:, 2 * D + h * hd:2 * D + (h + 1) * hd]
                       for h in range(H)])                                         # (H,T,hd)

        # --- attention: two batched matmuls over all heads at once.
        scores = jnp.einsum("hqd,hkd->hqk", q, k,
                            preferred_element_type=jnp.float32)                    # (H,T,T)
        scores = scores - jnp.max(scores, axis=-1, keepdims=True)
        e = jnp.exp(scores)
        w = e * pl.reciprocal(jnp.sum(e, axis=-1, keepdims=True), approx=False)
        attn_refs[l][...] = w                     # one bulk store per layer

        ctx = jnp.einsum("hqk,hkd->hqd", w, v,
                         preferred_element_type=jnp.float32)                       # (H,T,hd)
        ctx = jnp.concatenate([ctx[h] for h in range(H)], axis=-1)                 # (T, D)

        # --- output projection + residual + LayerNorm 1
        attn_out = jnp.dot(ctx, wo_ref[l],
                           preferred_element_type=jnp.float32) + bo_ref[l]
        y = x + attn_out
        mu = jnp.mean(y, axis=-1, keepdims=True)
        var = jnp.mean((y - mu) ** 2, axis=-1, keepdims=True)
        y = (y - mu) * jax.lax.rsqrt(var + eps) * g1_ref[l] + bt1_ref[l]

        # --- feed-forward (Linear -> ReLU -> Linear)
        h1 = jnp.dot(y, w1_ref[l], preferred_element_type=jnp.float32) + b1_ref[l]
        h1 = jnp.maximum(h1, 0.0)
        ff = jnp.dot(h1, w2_ref[l], preferred_element_type=jnp.float32) + b2_ref[l]

        # --- residual + LayerNorm 2
        z = y + ff
        mu2 = jnp.mean(z, axis=-1, keepdims=True)
        var2 = jnp.mean((z - mu2) ** 2, axis=-1, keepdims=True)
        x = (z - mu2) * jax.lax.rsqrt(var2 + eps) * g2_ref[l] + bt2_ref[l]

    # --- final vocab projection (lane-dense: V is a multiple of 128)
    logits_ref[...] = jnp.dot(x, wout_ref[...],
                              preferred_element_type=jnp.float32) + bout_ref[...]


# ----------------------------------------------------------------------------
# Wrapper
# ----------------------------------------------------------------------------
def run_transformer(x, sp, w_out, b_out, num_heads):
    """x: (B,T,D) f32; sp: stacked per-layer params (leading L axis)."""
    B, T, D = x.shape
    L = sp["wqkv"].shape[0]
    F = sp["w1"].shape[-1]
    V = w_out.shape[1]
    H = num_heads

    kernel = functools.partial(transformer_kernel, num_heads=H)

    def fullspec(shape):
        # Full-array block, constant index -> DMA'd once, stays VMEM-resident.
        return pl.BlockSpec(shape, lambda b, _shape=shape: (0,) * len(_shape))

    in_specs = [
        pl.BlockSpec((None, T, D), lambda b: (b, 0, 0)),   # x (batch squeezed)
        fullspec((L, D, 3 * D)),                           # wqkv (scale folded)
        fullspec((L, 1, 3 * D)),                           # bqkv
        fullspec((L, D, D)),                               # wo
        fullspec((L, 1, D)),                               # bo
        fullspec((L, 1, D)),                               # g1
        fullspec((L, 1, D)),                               # bt1
        fullspec((L, D, F)),                               # w1
        fullspec((L, 1, F)),                               # b1
        fullspec((L, F, D)),                               # w2
        fullspec((L, 1, D)),                               # b2
        fullspec((L, 1, D)),                               # g2
        fullspec((L, 1, D)),                               # bt2
        fullspec((D, V)),                                  # w_out
        fullspec((1, V)),                                  # b_out
    ]
    out_specs = (pl.BlockSpec((None, T, V), lambda b: (b, 0, 0)),) + tuple(
        pl.BlockSpec((None, H, T, T), lambda b: (b, 0, 0, 0)) for _ in range(L))
    out_shape = (jax.ShapeDtypeStruct((B, T, V), jnp.float32),) + tuple(
        jax.ShapeDtypeStruct((B, H, T, T), jnp.float32) for _ in range(L))

    # Advisory cost estimate (flops / exp count / bytes) for the XLA scheduler.
    tokens = B * T
    flops = int(tokens * (L * (2 * D * (4 * D + 2 * F) + 4 * T * D) + 2 * D * V))
    transcendentals = int(L * (B * H * T * T + 2 * tokens))
    weight_elems = L * (3 * D * D + 3 * D + D * D + 7 * D + 2 * D * F + F) + D * V + V
    bytes_accessed = int(4 * (tokens * D + tokens * V + L * B * H * T * T + weight_elems))
    cost = pl.CostEstimate(flops=flops, transcendentals=transcendentals,
                           bytes_accessed=bytes_accessed)

    outs = pl.pallas_call(
        kernel,
        grid=(B,),
        in_specs=in_specs,
        out_specs=out_specs,
        out_shape=out_shape,
        compiler_params=pltpu.CompilerParams(
            dimension_semantics=("parallel",)),     # batch sharded over TCs on v7x
        cost_estimate=cost,
    )(x, sp["wqkv"], sp["bqkv"], sp["wo"], sp["bo"], sp["g1"], sp["bt1"],
      sp["w1"], sp["b1"], sp["w2"], sp["b2"], sp["g2"], sp["bt2"], w_out, b_out)

    logits = outs[0]
    attentions = list(outs[1:])
    return logits, attentions


# ----------------------------------------------------------------------------
# Model setup (deterministic params, no checkpoint)
# ----------------------------------------------------------------------------
def make_positional_encoding(max_len, d_model):
    position = jnp.arange(max_len, dtype=jnp.float32)[:, None]
    div_term = jnp.exp(jnp.arange(0, d_model, 2, dtype=jnp.float32)
                       * (-math.log(10000.0) / d_model))
    pe = jnp.zeros((max_len, d_model), dtype=jnp.float32)
    pe = pe.at[:, 0::2].set(jnp.sin(position * div_term))
    pe = pe.at[:, 1::2].set(jnp.cos(position * div_term))
    return pe


def init_params(key, vocab_size, d_model, num_heads, num_layers, ff_dim):
    keys = jax.random.split(key, 2 + 6 * num_layers)
    scale = 0.02

    def dense(k, n_in, n_out):
        return scale * jax.random.normal(k, (n_in, n_out), jnp.float32)

    params = {
        "emb": scale * jax.random.normal(keys[0], (vocab_size, d_model), jnp.float32),
        "w_out": dense(keys[1], d_model, vocab_size),
        "b_out": jnp.zeros((1, vocab_size), jnp.float32),
        "layers": [],
    }
    ki = 2
    for _ in range(num_layers):
        lp = {
            "wqkv": dense(keys[ki + 0], d_model, 3 * d_model),
            "bqkv": jnp.zeros((1, 3 * d_model), jnp.float32),
            "wo": dense(keys[ki + 1], d_model, d_model),
            "bo": jnp.zeros((1, d_model), jnp.float32),
            "g1": jnp.ones((1, d_model), jnp.float32),
            "bt1": jnp.zeros((1, d_model), jnp.float32),
            "w1": dense(keys[ki + 2], d_model, ff_dim),
            "b1": jnp.zeros((1, ff_dim), jnp.float32),
            "w2": dense(keys[ki + 3], ff_dim, d_model),
            "b2": jnp.zeros((1, d_model), jnp.float32),
            "g2": jnp.ones((1, d_model), jnp.float32),
            "bt2": jnp.zeros((1, d_model), jnp.float32),
        }
        ki += 6
        params["layers"].append(lp)
    return params


def stack_layer_params(layers, num_heads):
    """Stack per-layer params along a leading L axis and fold 1/sqrt(head_dim)
    into the Q columns of the fused QKV weight/bias (done once, outside the
    kernel)."""
    d_model = layers[0]["wqkv"].shape[0]
    hd = d_model // num_heads
    scale = 1.0 / math.sqrt(hd)
    names = ["wqkv", "bqkv", "wo", "bo", "g1", "bt1",
             "w1", "b1", "w2", "b2", "g2", "bt2"]
    sp = {n: jnp.stack([lp[n] for lp in layers], axis=0) for n in names}
    sp["wqkv"] = sp["wqkv"].at[:, :, :d_model].multiply(scale)
    sp["bqkv"] = sp["bqkv"].at[:, :, :d_model].multiply(scale)
    return sp


def transformer_forward(tokens, params, pe, num_heads):
    # Glue: embedding gather + positional-encoding add (plain JAX).
    x = jnp.take(params["emb"], tokens, axis=0)           # (B, T, D)
    x = x + pe[None, : tokens.shape[1], :]
    sp = stack_layer_params(params["layers"], num_heads)
    logits, attentions = run_transformer(x, sp, params["w_out"], params["b_out"],
                                         num_heads)
    return logits, attentions


# ----------------------------------------------------------------------------
# Pure-JAX reference (mirrors the PyTorch module) for a sanity check
# ----------------------------------------------------------------------------
def reference_forward(tokens, params, pe, num_heads):
    def layernorm(x, g, b, eps=1e-5):
        mu = jnp.mean(x, axis=-1, keepdims=True)
        var = jnp.mean((x - mu) ** 2, axis=-1, keepdims=True)
        return (x - mu) * jax.lax.rsqrt(var + eps) * g + b

    x = jnp.take(params["emb"], tokens, axis=0) + pe[None, : tokens.shape[1], :]
    B, T, D = x.shape
    H = num_heads
    hd = D // H
    attentions = []
    for lp in params["layers"]:
        qkv = x @ lp["wqkv"] + lp["bqkv"]                       # (B,T,3D)
        qkv = qkv.reshape(B, T, 3, H, hd).transpose(2, 0, 3, 1, 4)
        q, k, v = qkv[0], qkv[1], qkv[2]                        # (B,H,T,hd)
        scores = jnp.einsum("bhqd,bhkd->bhqk", q, k) / math.sqrt(hd)
        w = jax.nn.softmax(scores, axis=-1)
        attentions.append(w)
        ctx = jnp.einsum("bhqk,bhkd->bhqd", w, v)
        ctx = ctx.transpose(0, 2, 1, 3).reshape(B, T, D)
        attn_out = ctx @ lp["wo"] + lp["bo"]
        x = layernorm(x + attn_out, lp["g1"], lp["bt1"])
        ff = jnp.maximum(x @ lp["w1"] + lp["b1"], 0.0) @ lp["w2"] + lp["b2"]
        x = layernorm(x + ff, lp["g2"], lp["bt2"])
    logits = x @ params["w_out"] + params["b_out"]
    return logits, attentions


# ----------------------------------------------------------------------------
if __name__ == "__main__":
    # Module defaults (d_model=128, ff_dim=512) keep every projection
    # lane-dense; vocab chosen as 128 for a lane-dense logits store.
    vocab_size = 128
    d_model = 128
    num_heads = 4
    num_layers = 2
    ff_dim = 512
    max_len = 100
    B, T = 2, 8

    key = jax.random.PRNGKey(0)
    k_tok, k_param = jax.random.split(key)
    tokens = jax.random.randint(k_tok, (B, T), 0, vocab_size, dtype=jnp.int32)

    params = init_params(k_param, vocab_size, d_model, num_heads, num_layers, ff_dim)
    pe = make_positional_encoding(max_len, d_model)

    logits, attns = transformer_forward(tokens, params, pe, num_heads)
    logits = jax.block_until_ready(logits)
    attns = [jax.block_until_ready(a) for a in attns]

    ref_logits, ref_attns = reference_forward(tokens, params, pe, num_heads)
    assert logits.shape == (B, T, vocab_size)
    assert all(a.shape == (B, num_heads, T, T) for a in attns)
    assert jnp.allclose(logits, ref_logits, atol=1e-4, rtol=1e-4)
    for a, ra in zip(attns, ref_attns):
        assert jnp.allclose(a, ra, atol=1e-4, rtol=1e-4)

    print("KERNEL_OK")
</pallas_src>

<mosaic_0001>
module attributes {stable_mosaic.version = 11 : i64} {
  func.func @transformer_kernel(%arg0: i32, %arg1: memref<1x8x128xf32, #tpu.memory_space<vmem>>, %arg2: memref<2x128x384xf32, #tpu.memory_space<vmem>>, %arg3: memref<2x1x384xf32, #tpu.memory_space<vmem>>, %arg4: memref<2x128x128xf32, #tpu.memory_space<vmem>>, %arg5: memref<2x1x128xf32, #tpu.memory_space<vmem>>, %arg6: memref<2x1x128xf32, #tpu.memory_space<vmem>>, %arg7: memref<2x1x128xf32, #tpu.memory_space<vmem>>, %arg8: memref<2x128x512xf32, #tpu.memory_space<vmem>>, %arg9: memref<2x1x512xf32, #tpu.memory_space<vmem>>, %arg10: memref<2x512x128xf32, #tpu.memory_space<vmem>>, %arg11: memref<2x1x128xf32, #tpu.memory_space<vmem>>, %arg12: memref<2x1x128xf32, #tpu.memory_space<vmem>>, %arg13: memref<2x1x128xf32, #tpu.memory_space<vmem>>, %arg14: memref<128x128xf32, #tpu.memory_space<vmem>>, %arg15: memref<1x128xf32, #tpu.memory_space<vmem>>, %arg16: memref<1x8x128xf32, #tpu.memory_space<vmem>>, %arg17: memref<1x4x8x8xf32, #tpu.memory_space<vmem>>, %arg18: memref<1x4x8x8xf32, #tpu.memory_space<vmem>>) attributes {dimension_semantics = [#tpu.dimension_semantics<parallel>], iteration_bounds = array<i64: 2>, scalar_prefetch = 0 : i64, scratch_operands = 0 : i64, tpu.core_type = #tpu.core_type<tc>, window_params = [{transform_indices = @transform_0, window_bounds = array<i64: 1, 8, 128>}, {pipeline_mode = #tpu.pipeline_mode<synchronous>, transform_indices = @transform_1, window_bounds = array<i64: 2, 128, 384>}, {pipeline_mode = #tpu.pipeline_mode<synchronous>, transform_indices = @transform_2, window_bounds = array<i64: 2, 1, 384>}, {pipeline_mode = #tpu.pipeline_mode<synchronous>, transform_indices = @transform_3, window_bounds = array<i64: 2, 128, 128>}, {pipeline_mode = #tpu.pipeline_mode<synchronous>, transform_indices = @transform_4, window_bounds = array<i64: 2, 1, 128>}, {pipeline_mode = #tpu.pipeline_mode<synchronous>, transform_indices = @transform_5, window_bounds = array<i64: 2, 1, 128>}, {pipeline_mode = #tpu.pipeline_mode<synchronous>, transform_indices = @transform_6, window_bounds = array<i64: 2, 1, 128>}, {pipeline_mode = #tpu.pipeline_mode<synchronous>, transform_indices = @transform_7, window_bounds = array<i64: 2, 128, 512>}, {pipeline_mode = #tpu.pipeline_mode<synchronous>, transform_indices = @transform_8, window_bounds = array<i64: 2, 1, 512>}, {pipeline_mode = #tpu.pipeline_mode<synchronous>, transform_indices = @transform_9, window_bounds = array<i64: 2, 512, 128>}, {pipeline_mode = #tpu.pipeline_mode<synchronous>, transform_indices = @transform_10, window_bounds = array<i64: 2, 1, 128>}, {pipeline_mode = #tpu.pipeline_mode<synchronous>, transform_indices = @transform_11, window_bounds = array<i64: 2, 1, 128>}, {pipeline_mode = #tpu.pipeline_mode<synchronous>, transform_indices = @transform_12, window_bounds = array<i64: 2, 1, 128>}, {pipeline_mode = #tpu.pipeline_mode<synchronous>, transform_indices = @transform_13, window_bounds = array<i64: 128, 128>}, {pipeline_mode = #tpu.pipeline_mode<synchronous>, transform_indices = @transform_14, window_bounds = array<i64: 1, 128>}, {transform_indices = @transform_15, window_bounds = array<i64: 1, 8, 128>}, {transform_indices = @transform_16, window_bounds = array<i64: 1, 4, 8, 8>}, {transform_indices = @transform_17, window_bounds = array<i64: 1, 4, 8, 8>}]} {
    %c0 = arith.constant 0 : index
    %c0_0 = arith.constant 0 : index
    %c0_1 = arith.constant 0 : index
    %0 = vector.load %arg1[%c0, %c0_0, %c0_1] : memref<1x8x128xf32, #tpu.memory_space<vmem>>, vector<1x8x128xf32>
    %1 = vector.shape_cast %0 : vector<1x8x128xf32> to vector<8x128xf32>
    %c0_2 = arith.constant 0 : index
    %c0_3 = arith.constant 0 : index
    %c0_4 = arith.constant 0 : index
    %2 = vector.load %arg2[%c0_2, %c0_3, %c0_4] : memref<2x128x384xf32, #tpu.memory_space<vmem>>, vector<1x128x384xf32>
    %3 = vector.shape_cast %2 : vector<1x128x384xf32> to vector<128x384xf32>
    %cst = arith.constant dense<0.000000e+00> : vector<8x384xf32>
    %4 = tpu.matmul %1, %3, %cst {dimension_numbers = #tpu.dot_dimension_numbers<[1], [0], [0], [1], [0, 0, 1, 1], [], []>} : vector<8x128xf32>, vector<128x384xf32>, vector<8x384xf32> -> vector<8x384xf32>
    %c0_5 = arith.constant 0 : index
    %c0_6 = arith.constant 0 : index
    %c0_7 = arith.constant 0 : index
    %5 = vector.load %arg3[%c0_5, %c0_6, %c0_7] : memref<2x1x384xf32, #tpu.memory_space<vmem>>, vector<1x1x384xf32>
    %6 = vector.shape_cast %5 : vector<1x1x384xf32> to vector<1x384xf32>
    %7 = vector.broadcast %6 : vector<1x384xf32> to vector<8x384xf32>
    %8 = arith.addf %4, %7 : vector<8x384xf32>
    %9 = vector.extract_strided_slice %8 {offsets = [0, 0], sizes = [8, 32], strides = [1, 1]} : vector<8x384xf32> to vector<8x32xf32>
    %10 = vector.extract_strided_slice %8 {offsets = [0, 32], sizes = [8, 32], strides = [1, 1]} : vector<8x384xf32> to vector<8x32xf32>
    %11 = vector.extract_strided_slice %8 {offsets = [0, 64], sizes = [8, 32], strides = [1, 1]} : vector<8x384xf32> to vector<8x32xf32>
    %12 = vector.extract_strided_slice %8 {offsets = [0, 96], sizes = [8, 32], strides = [1, 1]} : vector<8x384xf32> to vector<8x32xf32>
    %13 = vector.shape_cast %9 : vector<8x32xf32> to vector<1x8x32xf32>
    %14 = vector.shape_cast %10 : vector<8x32xf32> to vector<1x8x32xf32>
    %15 = vector.shape_cast %11 : vector<8x32xf32> to vector<1x8x32xf32>
    %16 = vector.shape_cast %12 : vector<8x32xf32> to vector<1x8x32xf32>
    %17 = tpu.concatenate %13, %14, %15, %16 in 0 : vector<1x8x32xf32>, vector<1x8x32xf32>, vector<1x8x32xf32>, vector<1x8x32xf32> -> vector<4x8x32xf32>
    %18 = vector.extract_strided_slice %8 {offsets = [0, 128], sizes = [8, 32], strides = [1, 1]} : vector<8x384xf32> to vector<8x32xf32>
    %19 = vector.extract_strided_slice %8 {offsets = [0, 160], sizes = [8, 32], strides = [1, 1]} : vector<8x384xf32> to vector<8x32xf32>
    %20 = vector.extract_strided_slice %8 {offsets = [0, 192], sizes = [8, 32], strides = [1, 1]} : vector<8x384xf32> to vector<8x32xf32>
    %21 = vector.extract_strided_slice %8 {offsets = [0, 224], sizes = [8, 32], strides = [1, 1]} : vector<8x384xf32> to vector<8x32xf32>
    %22 = vector.shape_cast %18 : vector<8x32xf32> to vector<1x8x32xf32>
    %23 = vector.shape_cast %19 : vector<8x32xf32> to vector<1x8x32xf32>
    %24 = vector.shape_cast %20 : vector<8x32xf32> to vector<1x8x32xf32>
    %25 = vector.shape_cast %21 : vector<8x32xf32> to vector<1x8x32xf32>
    %26 = tpu.concatenate %22, %23, %24, %25 in 0 : vector<1x8x32xf32>, vector<1x8x32xf32>, vector<1x8x32xf32>, vector<1x8x32xf32> -> vector<4x8x32xf32>
    %27 = vector.extract_strided_slice %8 {offsets = [0, 256], sizes = [8, 32], strides = [1, 1]} : vector<8x384xf32> to vector<8x32xf32>
    %28 = vector.extract_strided_slice %8 {offsets = [0, 288], sizes = [8, 32], strides = [1, 1]} : vector<8x384xf32> to vector<8x32xf32>
    %29 = vector.extract_strided_slice %8 {offsets = [0, 320], sizes = [8, 32], strides = [1, 1]} : vector<8x384xf32> to vector<8x32xf32>
    %30 = vector.extract_strided_slice %8 {offsets = [0, 352], sizes = [8, 32], strides = [1, 1]} : vector<8x384xf32> to vector<8x32xf32>
    %31 = vector.shape_cast %27 : vector<8x32xf32> to vector<1x8x32xf32>
    %32 = vector.shape_cast %28 : vector<8x32xf32> to vector<1x8x32xf32>
    %33 = vector.shape_cast %29 : vector<8x32xf32> to vector<1x8x32xf32>
    %34 = vector.shape_cast %30 : vector<8x32xf32> to vector<1x8x32xf32>
    %35 = tpu.concatenate %31, %32, %33, %34 in 0 : vector<1x8x32xf32>, vector<1x8x32xf32>, vector<1x8x32xf32>, vector<1x8x32xf32> -> vector<4x8x32xf32>
    "tpu.trace_start"() <{level = 10 : i32, message = "hqd,hkd->hqk"}> : () -> ()
    %cst_8 = arith.constant dense<0.000000e+00> : vector<4x8x8xf32>
    %36 = tpu.matmul %17, %26, %cst_8 {dimension_numbers = #tpu.dot_dimension_numbers<[2], [2], [1], [1], [0, 0, 0, 1, 1, 1], [0], [0]>} : vector<4x8x32xf32>, vector<4x8x32xf32>, vector<4x8x8xf32> -> vector<4x8x8xf32>
    "tpu.trace_stop"() : () -> ()
    %cst_9 = arith.constant dense<0xFF800000> : vector<4x8xf32>
    %37 = vector.multi_reduction <maximumf>, %36, %cst_9 [2] : vector<4x8x8xf32> to vector<4x8xf32>
    %38 = vector.shape_cast %37 : vector<4x8xf32> to vector<4x8x1xf32>
    %39 = vector.broadcast %38 : vector<4x8x1xf32> to vector<4x8x8xf32>
    %40 = arith.subf %36, %39 : vector<4x8x8xf32>
    %41 = math.exp %40 : vector<4x8x8xf32>
    %cst_10 = arith.constant dense<0.000000e+00> : vector<4x8xf32>
    %42 = vector.multi_reduction <add>, %41, %cst_10 [2] : vector<4x8x8xf32> to vector<4x8xf32>
    %43 = vector.shape_cast %42 : vector<4x8xf32> to vector<4x8x1xf32>
    %44 = tpu.reciprocal %43 : vector<4x8x1xf32> -> vector<4x8x1xf32>
    %45 = vector.broadcast %44 : vector<4x8x1xf32> to vector<4x8x8xf32>
    %46 = arith.mulf %41, %45 : vector<4x8x8xf32>
    %c0_11 = arith.constant 0 : index
    %c0_12 = arith.constant 0 : index
    %c0_13 = arith.constant 0 : index
    %c0_14 = arith.constant 0 : index
    %47 = vector.load %arg17[%c0_11, %c0_12, %c0_13, %c0_14] : memref<1x4x8x8xf32, #tpu.memory_space<vmem>>, vector<1x4x8x8xf32>
    %48 = vector.shape_cast %47 : vector<1x4x8x8xf32> to vector<4x8x8xf32>
    %49 = vector.shape_cast %46 : vector<4x8x8xf32> to vector<1x4x8x8xf32>
    tpu.vector_store %arg17[%c0_11, %c0_12, %c0_13, %c0_14], %49 {strides = array<i32>} : memref<1x4x8x8xf32, #tpu.memory_space<vmem>>, vector<1x4x8x8xf32>,
    "tpu.trace_start"() <{level = 10 : i32, message = "hqk,hkd->hqd"}> : () -> ()
    %cst_15 = arith.constant dense<0.000000e+00> : vector<4x8x32xf32>
    %50 = tpu.matmul %46, %35, %cst_15 {dimension_numbers = #tpu.dot_dimension_numbers<[2], [1], [1], [2], [0, 0, 0, 1, 1, 2], [0], [0]>} : vector<4x8x8xf32>, vector<4x8x32xf32>, vector<4x8x32xf32> -> vector<4x8x32xf32>
    "tpu.trace_stop"() : () -> ()
    %51 = vector.extract_strided_slice %50 {offsets = [0, 0, 0], sizes = [1, 8, 32], strides = [1, 1, 1]} : vector<4x8x32xf32> to vector<1x8x32xf32>
    %52 = vector.shape_cast %51 : vector<1x8x32xf32> to vector<8x32xf32>
    %53 = vector.extract_strided_slice %50 {offsets = [1, 0, 0], sizes = [1, 8, 32], strides = [1, 1, 1]} : vector<4x8x32xf32> to vector<1x8x32xf32>
    %54 = vector.shape_cast %53 : vector<1x8x32xf32> to vector<8x32xf32>
    %55 = vector.extract_strided_slice %50 {offsets = [2, 0, 0], sizes = [1, 8, 32], strides = [1, 1, 1]} : vector<4x8x32xf32> to vector<1x8x32xf32>
    %56 = vector.shape_cast %55 : vector<1x8x32xf32> to vector<8x32xf32>
    %57 = vector.extract_strided_slice %50 {offsets = [3, 0, 0], sizes = [1, 8, 32], strides = [1, 1, 1]} : vector<4x8x32xf32> to vector<1x8x32xf32>
    %58 = vector.shape_cast %57 : vector<1x8x32xf32> to vector<8x32xf32>
    %59 = tpu.concatenate %52, %54, %56, %58 in 1 : vector<8x32xf32>, vector<8x32xf32>, vector<8x32xf32>, vector<8x32xf32> -> vector<8x128xf32>
    %c0_16 = arith.constant 0 : index
    %c0_17 = arith.constant 0 : index
    %c0_18 = arith.constant 0 : index
    %60 = vector.load %arg4[%c0_16, %c0_17, %c0_18] : memref<2x128x128xf32, #tpu.memory_space<vmem>>, vector<1x128x128xf32>
    %61 = vector.shape_cast %60 : vector<1x128x128xf32> to vector<128x128xf32>
    %cst_19 = arith.constant dense<0.000000e+00> : vector<8x128xf32>
    %62 = tpu.matmul %59, %61, %cst_19 {dimension_numbers = #tpu.dot_dimension_numbers<[1], [0], [0], [1], [0, 0, 1, 1], [], []>} : vector<8x128xf32>, vector<128x128xf32>, vector<8x128xf32> -> vector<8x128xf32>
    %c0_20 = arith.constant 0 : index
    %c0_21 = arith.constant 0 : index
    %c0_22 = arith.constant 0 : index
    %63 = vector.load %arg5[%c0_20, %c0_21, %c0_22] : memref<2x1x128xf32, #tpu.memory_space<vmem>>, vector<1x1x128xf32>
    %64 = vector.shape_cast %63 : vector<1x1x128xf32> to vector<1x128xf32>
    %65 = vector.broadcast %64 : vector<1x128xf32> to vector<8x128xf32>
    %66 = arith.addf %62, %65 : vector<8x128xf32>
    %67 = arith.addf %1, %66 : vector<8x128xf32>
    %cst_23 = arith.constant dense<0.000000e+00> : vector<8xf32>
    %68 = vector.multi_reduction <add>, %67, %cst_23 [1] : vector<8x128xf32> to vector<8xf32>
    %69 = vector.shape_cast %68 : vector<8xf32> to vector<8x1xf32>
    %cst_24 = arith.constant 1.280000e+02 : f32
    %70 = vector.broadcast %cst_24 : f32 to vector<8x1xf32>
    %71 = arith.divf %69, %70 : vector<8x1xf32>
    %72 = vector.broadcast %71 : vector<8x1xf32> to vector<8x128xf32>
    %73 = arith.subf %67, %72 : vector<8x128xf32>
    %74 = arith.mulf %73, %73 : vector<8x128xf32>
    %cst_25 = arith.constant dense<0.000000e+00> : vector<8xf32>
    %75 = vector.multi_reduction <add>, %74, %cst_25 [1] : vector<8x128xf32> to vector<8xf32>
    %76 = vector.shape_cast %75 : vector<8xf32> to vector<8x1xf32>
    %cst_26 = arith.constant 1.280000e+02 : f32
    %77 = vector.broadcast %cst_26 : f32 to vector<8x1xf32>
    %78 = arith.divf %76, %77 : vector<8x1xf32>
    %79 = vector.broadcast %71 : vector<8x1xf32> to vector<8x128xf32>
    %80 = arith.subf %67, %79 : vector<8x128xf32>
    %cst_27 = arith.constant 9.99999974E-6 : f32
    %81 = vector.broadcast %cst_27 : f32 to vector<8x1xf32>
    %82 = arith.addf %78, %81 : vector<8x1xf32>
    %83 = math.rsqrt %82 : vector<8x1xf32>
    %84 = vector.broadcast %83 : vector<8x1xf32> to vector<8x128xf32>
    %85 = arith.mulf %80, %84 : vector<8x128xf32>
    %c0_28 = arith.constant 0 : index
    %c0_29 = arith.constant 0 : index
    %c0_30 = arith.constant 0 : index
    %86 = vector.load %arg6[%c0_28, %c0_29, %c0_30] : memref<2x1x128xf32, #tpu.memory_space<vmem>>, vector<1x1x128xf32>
    %87 = vector.shape_cast %86 : vector<1x1x128xf32> to vector<1x128xf32>
    %88 = vector.broadcast %87 : vector<1x128xf32> to vector<8x128xf32>
    %89 = arith.mulf %85, %88 : vector<8x128xf32>
    %c0_31 = arith.constant 0 : index
    %c0_32 = arith.constant 0 : index
    %c0_33 = arith.constant 0 : index
    %90 = vector.load %arg7[%c0_31, %c0_32, %c0_33] : memref<2x1x128xf32, #tpu.memory_space<vmem>>, vector<1x1x128xf32>
    %91 = vector.shape_cast %90 : vector<1x1x128xf32> to vector<1x128xf32>
    %92 = vector.broadcast %91 : vector<1x128xf32> to vector<8x128xf32>
    %93 = arith.addf %89, %92 : vector<8x128xf32>
    %c0_34 = arith.constant 0 : index
    %c0_35 = arith.constant 0 : index
    %c0_36 = arith.constant 0 : index
    %94 = vector.load %arg8[%c0_34, %c0_35, %c0_36] : memref<2x128x512xf32, #tpu.memory_space<vmem>>, vector<1x128x512xf32>
    %95 = vector.shape_cast %94 : vector<1x128x512xf32> to vector<128x512xf32>
    %cst_37 = arith.constant dense<0.000000e+00> : vector<8x512xf32>
    %96 = tpu.matmul %93, %95, %cst_37 {dimension_numbers = #tpu.dot_dimension_numbers<[1], [0], [0], [1], [0, 0, 1, 1], [], []>} : vector<8x128xf32>, vector<128x512xf32>, vector<8x512xf32> -> vector<8x512xf32>
    %c0_38 = arith.constant 0 : index
    %c0_39 = arith.constant 0 : index
    %c0_40 = arith.constant 0 : index
    %97 = vector.load %arg9[%c0_38, %c0_39, %c0_40] : memref<2x1x512xf32, #tpu.memory_space<vmem>>, vector<1x1x512xf32>
    %98 = vector.shape_cast %97 : vector<1x1x512xf32> to vector<1x512xf32>
    %99 = vector.broadcast %98 : vector<1x512xf32> to vector<8x512xf32>
    %100 = arith.addf %96, %99 : vector<8x512xf32>
    %cst_41 = arith.constant 0.000000e+00 : f32
    %101 = vector.broadcast %cst_41 : f32 to vector<8x512xf32>
    %102 = arith.maximumf %100, %101 : vector<8x512xf32>
    %c0_42 = arith.constant 0 : index
    %c0_43 = arith.constant 0 : index
    %c0_44 = arith.constant 0 : index
    %103 = vector.load %arg10[%c0_42, %c0_43, %c0_44] : memref<2x512x128xf32, #tpu.memory_space<vmem>>, vector<1x512x128xf32>
    %104 = vector.shape_cast %103 : vector<1x512x128xf32> to vector<512x128xf32>
    %cst_45 = arith.constant dense<0.000000e+00> : vector<8x128xf32>
    %105 = tpu.matmul %102, %104, %cst_45 {dimension_numbers = #tpu.dot_dimension_numbers<[1], [0], [0], [1], [0, 0, 1, 1], [], []>} : vector<8x512xf32>, vector<512x128xf32>, vector<8x128xf32> -> vector<8x128xf32>
    %c0_46 = arith.constant 0 : index
    %c0_47 = arith.constant 0 : index
    %c0_48 = arith.constant 0 : index
    %106 = vector.load %arg11[%c0_46, %c0_47, %c0_48] : memref<2x1x128xf32, #tpu.memory_space<vmem>>, vector<1x1x128xf32>
    %107 = vector.shape_cast %106 : vector<1x1x128xf32> to vector<1x128xf32>
    %108 = vector.broadcast %107 : vector<1x128xf32> to vector<8x128xf32>
    %109 = arith.addf %105, %108 : vector<8x128xf32>
    %110 = arith.addf %93, %109 : vector<8x128xf32>
    %cst_49 = arith.constant dense<0.000000e+00> : vector<8xf32>
    %111 = vector.multi_reduction <add>, %110, %cst_49 [1] : vector<8x128xf32> to vector<8xf32>
    %112 = vector.shape_cast %111 : vector<8xf32> to vector<8x1xf32>
    %cst_50 = arith.constant 1.280000e+02 : f32
    %113 = vector.broadcast %cst_50 : f32 to vector<8x1xf32>
    %114 = arith.divf %112, %113 : vector<8x1xf32>
    %115 = vector.broadcast %114 : vector<8x1xf32> to vector<8x128xf32>
    %116 = arith.subf %110, %115 : vector<8x128xf32>
    %117 = arith.mulf %116, %116 : vector<8x128xf32>
    %cst_51 = arith.constant dense<0.000000e+00> : vector<8xf32>
    %118 = vector.multi_reduction <add>, %117, %cst_51 [1] : vector<8x128xf32> to vector<8xf32>
    %119 = vector.shape_cast %118 : vector<8xf32> to vector<8x1xf32>
    %cst_52 = arith.constant 1.280000e+02 : f32
    %120 = vector.broadcast %cst_52 : f32 to vector<8x1xf32>
    %121 = arith.divf %119, %120 : vector<8x1xf32>
    %122 = vector.broadcast %114 : vector<8x1xf32> to vector<8x128xf32>
    %123 = arith.subf %110, %122 : vector<8x128xf32>
    %cst_53 = arith.constant 9.99999974E-6 : f32
    %124 = vector.broadcast %cst_53 : f32 to vector<8x1xf32>
    %125 = arith.addf %121, %124 : vector<8x1xf32>
    %126 = math.rsqrt %125 : vector<8x1xf32>
    %127 = vector.broadcast %126 : vector<8x1xf32> to vector<8x128xf32>
    %128 = arith.mulf %123, %127 : vector<8x128xf32>
    %c0_54 = arith.constant 0 : index
    %c0_55 = arith.constant 0 : index
    %c0_56 = arith.constant 0 : index
    %129 = vector.load %arg12[%c0_54, %c0_55, %c0_56] : memref<2x1x128xf32, #tpu.memory_space<vmem>>, vector<1x1x128xf32>
    %130 = vector.shape_cast %129 : vector<1x1x128xf32> to vector<1x128xf32>
    %131 = vector.broadcast %130 : vector<1x128xf32> to vector<8x128xf32>
    %132 = arith.mulf %128, %131 : vector<8x128xf32>
    %c0_57 = arith.constant 0 : index
    %c0_58 = arith.constant 0 : index
    %c0_59 = arith.constant 0 : index
    %133 = vector.load %arg13[%c0_57, %c0_58, %c0_59] : memref<2x1x128xf32, #tpu.memory_space<vmem>>, vector<1x1x128xf32>
    %134 = vector.shape_cast %133 : vector<1x1x128xf32> to vector<1x128xf32>
    %135 = vector.broadcast %134 : vector<1x128xf32> to vector<8x128xf32>
    %136 = arith.addf %132, %135 : vector<8x128xf32>
    %c1 = arith.constant 1 : index
    %c0_60 = arith.constant 0 : index
    %c0_61 = arith.constant 0 : index
    %137 = vector.load %arg2[%c1, %c0_60, %c0_61] : memref<2x128x384xf32, #tpu.memory_space<vmem>>, vector<1x128x384xf32>
    %138 = vector.shape_cast %137 : vector<1x128x384xf32> to vector<128x384xf32>
    %cst_62 = arith.constant dense<0.000000e+00> : vector<8x384xf32>
    %139 = tpu.matmul %136, %138, %cst_62 {dimension_numbers = #tpu.dot_dimension_numbers<[1], [0], [0], [1], [0, 0, 1, 1], [], []>} : vector<8x128xf32>, vector<128x384xf32>, vector<8x384xf32> -> vector<8x384xf32>
    %c1_63 = arith.constant 1 : index
    %c0_64 = arith.constant 0 : index
    %c0_65 = arith.constant 0 : index
    %140 = vector.load %arg3[%c1_63, %c0_64, %c0_65] : memref<2x1x384xf32, #tpu.memory_space<vmem>>, vector<1x1x384xf32>
    %141 = vector.shape_cast %140 : vector<1x1x384xf32> to vector<1x384xf32>
    %142 = vector.broadcast %141 : vector<1x384xf32> to vector<8x384xf32>
    %143 = arith.addf %139, %142 : vector<8x384xf32>
    %144 = vector.extract_strided_slice %143 {offsets = [0, 0], sizes = [8, 32], strides = [1, 1]} : vector<8x384xf32> to vector<8x32xf32>
    %145 = vector.extract_strided_slice %143 {offsets = [0, 32], sizes = [8, 32], strides = [1, 1]} : vector<8x384xf32> to vector<8x32xf32>
    %146 = vector.extract_strided_slice %143 {offsets = [0, 64], sizes = [8, 32], strides = [1, 1]} : vector<8x384xf32> to vector<8x32xf32>
    %147 = vector.extract_strided_slice %143 {offsets = [0, 96], sizes = [8, 32], strides = [1, 1]} : vector<8x384xf32> to vector<8x32xf32>
    %148 = vector.shape_cast %144 : vector<8x32xf32> to vector<1x8x32xf32>
    %149 = vector.shape_cast %145 : vector<8x32xf32> to vector<1x8x32xf32>
    %150 = vector.shape_cast %146 : vector<8x32xf32> to vector<1x8x32xf32>
    %151 = vector.shape_cast %147 : vector<8x32xf32> to vector<1x8x32xf32>
    %152 = tpu.concatenate %148, %149, %150, %151 in 0 : vector<1x8x32xf32>, vector<1x8x32xf32>, vector<1x8x32xf32>, vector<1x8x32xf32> -> vector<4x8x32xf32>
    %153 = vector.extract_strided_slice %143 {offsets = [0, 128], sizes = [8, 32], strides = [1, 1]} : vector<8x384xf32> to vector<8x32xf32>
    %154 = vector.extract_strided_slice %143 {offsets = [0, 160], sizes = [8, 32], strides = [1, 1]} : vector<8x384xf32> to vector<8x32xf32>
    %155 = vector.extract_strided_slice %143 {offsets = [0, 192], sizes = [8, 32], strides = [1, 1]} : vector<8x384xf32> to vector<8x32xf32>
    %156 = vector.extract_strided_slice %143 {offsets = [0, 224], sizes = [8, 32], strides = [1, 1]} : vector<8x384xf32> to vector<8x32xf32>
    %157 = vector.shape_cast %153 : vector<8x32xf32> to vector<1x8x32xf32>
    %158 = vector.shape_cast %154 : vector<8x32xf32> to vector<1x8x32xf32>
    %159 = vector.shape_cast %155 : vector<8x32xf32> to vector<1x8x32xf32>
    %160 = vector.shape_cast %156 : vector<8x32xf32> to vector<1x8x32xf32>
    %161 = tpu.concatenate %157, %158, %159, %160 in 0 : vector<1x8x32xf32>, vector<1x8x32xf32>, vector<1x8x32xf32>, vector<1x8x32xf32> -> vector<4x8x32xf32>
    %162 = vector.extract_strided_slice %143 {offsets = [0, 256], sizes = [8, 32], strides = [1, 1]} : vector<8x384xf32> to vector<8x32xf32>
    %163 = vector.extract_strided_slice %143 {offsets = [0, 288], sizes = [8, 32], strides = [1, 1]} : vector<8x384xf32> to vector<8x32xf32>
    %164 = vector.extract_strided_slice %143 {offsets = [0, 320], sizes = [8, 32], strides = [1, 1]} : vector<8x384xf32> to vector<8x32xf32>
    %165 = vector.extract_strided_slice %143 {offsets = [0, 352], sizes = [8, 32], strides = [1, 1]} : vector<8x384xf32> to vector<8x32xf32>
    %166 = vector.shape_cast %162 : vector<8x32xf32> to vector<1x8x32xf32>
    %167 = vector.shape_cast %163 : vector<8x32xf32> to vector<1x8x32xf32>
    %168 = vector.shape_cast %164 : vector<8x32xf32> to vector<1x8x32xf32>
    %169 = vector.shape_cast %165 : vector<8x32xf32> to vector<1x8x32xf32>
    %170 = tpu.concatenate %166, %167, %168, %169 in 0 : vector<1x8x32xf32>, vector<1x8x32xf32>, vector<1x8x32xf32>, vector<1x8x32xf32> -> vector<4x8x32xf32>
    "tpu.trace_start"() <{level = 10 : i32, message = "hqd,hkd->hqk"}> : () -> ()
    %cst_66 = arith.constant dense<0.000000e+00> : vector<4x8x8xf32>
    %171 = tpu.matmul %152, %161, %cst_66 {dimension_numbers = #tpu.dot_dimension_numbers<[2], [2], [1], [1], [0, 0, 0, 1, 1, 1], [0], [0]>} : vector<4x8x32xf32>, vector<4x8x32xf32>, vector<4x8x8xf32> -> vector<4x8x8xf32>
    "tpu.trace_stop"() : () -> ()
    %cst_67 = arith.constant dense<0xFF800000> : vector<4x8xf32>
    %172 = vector.multi_reduction <maximumf>, %171, %cst_67 [2] : vector<4x8x8xf32> to vector<4x8xf32>
    %173 = vector.shape_cast %172 : vector<4x8xf32> to vector<4x8x1xf32>
    %174 = vector.broadcast %173 : vector<4x8x1xf32> to vector<4x8x8xf32>
    %175 = arith.subf %171, %174 : vector<4x8x8xf32>
    %176 = math.exp %175 : vector<4x8x8xf32>
    %cst_68 = arith.constant dense<0.000000e+00> : vector<4x8xf32>
    %177 = vector.multi_reduction <add>, %176, %cst_68 [2] : vector<4x8x8xf32> to vector<4x8xf32>
    %178 = vector.shape_cast %177 : vector<4x8xf32> to vector<4x8x1xf32>
    %179 = tpu.reciprocal %178 : vector<4x8x1xf32> -> vector<4x8x1xf32>
    %180 = vector.broadcast %179 : vector<4x8x1xf32> to vector<4x8x8xf32>
    %181 = arith.mulf %176, %180 : vector<4x8x8xf32>
    %c0_69 = arith.constant 0 : index
    %c0_70 = arith.constant 0 : index
    %c0_71 = arith.constant 0 : index
    %c0_72 = arith.constant 0 : index
    %182 = vector.load %arg18[%c0_69, %c0_70, %c0_71, %c0_72] : memref<1x4x8x8xf32, #tpu.memory_space<vmem>>, vector<1x4x8x8xf32>
    %183 = vector.shape_cast %182 : vector<1x4x8x8xf32> to vector<4x8x8xf32>
    %184 = vector.shape_cast %181 : vector<4x8x8xf32> to vector<1x4x8x8xf32>
    tpu.vector_store %arg18[%c0_69, %c0_70, %c0_71, %c0_72], %184 {strides = array<i32>} : memref<1x4x8x8xf32, #tpu.memory_space<vmem>>, vector<1x4x8x8xf32>,
    "tpu.trace_start"() <{level = 10 : i32, message = "hqk,hkd->hqd"}> : () -> ()
    %cst_73 = arith.constant dense<0.000000e+00> : vector<4x8x32xf32>
    %185 = tpu.matmul %181, %170, %cst_73 {dimension_numbers = #tpu.dot_dimension_numbers<[2], [1], [1], [2], [0, 0, 0, 1, 1, 2], [0], [0]>} : vector<4x8x8xf32>, vector<4x8x32xf32>, vector<4x8x32xf32> -> vector<4x8x32xf32>
    "tpu.trace_stop"() : () -> ()
    %186 = vector.extract_strided_slice %185 {offsets = [0, 0, 0], sizes = [1, 8, 32], strides = [1, 1, 1]} : vector<4x8x32xf32> to vector<1x8x32xf32>
    %187 = vector.shape_cast %186 : vector<1x8x32xf32> to vector<8x32xf32>
    %188 = vector.extract_strided_slice %185 {offsets = [1, 0, 0], sizes = [1, 8, 32], strides = [1, 1, 1]} : vector<4x8x32xf32> to vector<1x8x32xf32>
    %189 = vector.shape_cast %188 : vector<1x8x32xf32> to vector<8x32xf32>
    %190 = vector.extract_strided_slice %185 {offsets = [2, 0, 0], sizes = [1, 8, 32], strides = [1, 1, 1]} : vector<4x8x32xf32> to vector<1x8x32xf32>
    %191 = vector.shape_cast %190 : vector<1x8x32xf32> to vector<8x32xf32>
    %192 = vector.extract_strided_slice %185 {offsets = [3, 0, 0], sizes = [1, 8, 32], strides = [1, 1, 1]} : vector<4x8x32xf32> to vector<1x8x32xf32>
    %193 = vector.shape_cast %192 : vector<1x8x32xf32> to vector<8x32xf32>
    %194 = tpu.concatenate %187, %189, %191, %193 in 1 : vector<8x32xf32>, vector<8x32xf32>, vector<8x32xf32>, vector<8x32xf32> -> vector<8x128xf32>
    %c1_74 = arith.constant 1 : index
    %c0_75 = arith.constant 0 : index
    %c0_76 = arith.constant 0 : index
    %195 = vector.load %arg4[%c1_74, %c0_75, %c0_76] : memref<2x128x128xf32, #tpu.memory_space<vmem>>, vector<1x128x128xf32>
    %196 = vector.shape_cast %195 : vector<1x128x128xf32> to vector<128x128xf32>
    %cst_77 = arith.constant dense<0.000000e+00> : vector<8x128xf32>
    %197 = tpu.matmul %194, %196, %cst_77 {dimension_numbers = #tpu.dot_dimension_numbers<[1], [0], [0], [1], [0, 0, 1, 1], [], []>} : vector<8x128xf32>, vector<128x128xf32>, vector<8x128xf32> -> vector<8x128xf32>
    %c1_78 = arith.constant 1 : index
    %c0_79 = arith.constant 0 : index
    %c0_80 = arith.constant 0 : index
    %198 = vector.load %arg5[%c1_78, %c0_79, %c0_80] : memref<2x1x128xf32, #tpu.memory_space<vmem>>, vector<1x1x128xf32>
    %199 = vector.shape_cast %198 : vector<1x1x128xf32> to vector<1x128xf32>
    %200 = vector.broadcast %199 : vector<1x128xf32> to vector<8x128xf32>
    %201 = arith.addf %197, %200 : vector<8x128xf32>
    %202 = arith.addf %136, %201 : vector<8x128xf32>
    %cst_81 = arith.constant dense<0.000000e+00> : vector<8xf32>
    %203 = vector.multi_reduction <add>, %202, %cst_81 [1] : vector<8x128xf32> to vector<8xf32>
    %204 = vector.shape_cast %203 : vector<8xf32> to vector<8x1xf32>
    %cst_82 = arith.constant 1.280000e+02 : f32
    %205 = vector.broadcast %cst_82 : f32 to vector<8x1xf32>
    %206 = arith.divf %204, %205 : vector<8x1xf32>
    %207 = vector.broadcast %206 : vector<8x1xf32> to vector<8x128xf32>
    %208 = arith.subf %202, %207 : vector<8x128xf32>
    %209 = arith.mulf %208, %208 : vector<8x128xf32>
    %cst_83 = arith.constant dense<0.000000e+00> : vector<8xf32>
    %210 = vector.multi_reduction <add>, %209, %cst_83 [1] : vector<8x128xf32> to vector<8xf32>
    %211 = vector.shape_cast %210 : vector<8xf32> to vector<8x1xf32>
    %cst_84 = arith.constant 1.280000e+02 : f32
    %212 = vector.broadcast %cst_84 : f32 to vector<8x1xf32>
    %213 = arith.divf %211, %212 : vector<8x1xf32>
    %214 = vector.broadcast %206 : vector<8x1xf32> to vector<8x128xf32>
    %215 = arith.subf %202, %214 : vector<8x128xf32>
    %cst_85 = arith.constant 9.99999974E-6 : f32
    %216 = vector.broadcast %cst_85 : f32 to vector<8x1xf32>
    %217 = arith.addf %213, %216 : vector<8x1xf32>
    %218 = math.rsqrt %217 : vector<8x1xf32>
    %219 = vector.broadcast %218 : vector<8x1xf32> to vector<8x128xf32>
    %220 = arith.mulf %215, %219 : vector<8x128xf32>
    %c1_86 = arith.constant 1 : index
    %c0_87 = arith.constant 0 : index
    %c0_88 = arith.constant 0 : index
    %221 = vector.load %arg6[%c1_86, %c0_87, %c0_88] : memref<2x1x128xf32, #tpu.memory_space<vmem>>, vector<1x1x128xf32>
    %222 = vector.shape_cast %221 : vector<1x1x128xf32> to vector<1x128xf32>
    %223 = vector.broadcast %222 : vector<1x128xf32> to vector<8x128xf32>
    %224 = arith.mulf %220, %223 : vector<8x128xf32>
    %c1_89 = arith.constant 1 : index
    %c0_90 = arith.constant 0 : index
    %c0_91 = arith.constant 0 : index
    %225 = vector.load %arg7[%c1_89, %c0_90, %c0_91] : memref<2x1x128xf32, #tpu.memory_space<vmem>>, vector<1x1x128xf32>
    %226 = vector.shape_cast %225 : vector<1x1x128xf32> to vector<1x128xf32>
    %227 = vector.broadcast %226 : vector<1x128xf32> to vector<8x128xf32>
    %228 = arith.addf %224, %227 : vector<8x128xf32>
    %c1_92 = arith.constant 1 : index
    %c0_93 = arith.constant 0 : index
    %c0_94 = arith.constant 0 : index
    %229 = vector.load %arg8[%c1_92, %c0_93, %c0_94] : memref<2x128x512xf32, #tpu.memory_space<vmem>>, vector<1x128x512xf32>
    %230 = vector.shape_cast %229 : vector<1x128x512xf32> to vector<128x512xf32>
    %cst_95 = arith.constant dense<0.000000e+00> : vector<8x512xf32>
    %231 = tpu.matmul %228, %230, %cst_95 {dimension_numbers = #tpu.dot_dimension_numbers<[1], [0], [0], [1], [0, 0, 1, 1], [], []>} : vector<8x128xf32>, vector<128x512xf32>, vector<8x512xf32> -> vector<8x512xf32>
    %c1_96 = arith.constant 1 : index
    %c0_97 = arith.constant 0 : index
    %c0_98 = arith.constant 0 : index
    %232 = vector.load %arg9[%c1_96, %c0_97, %c0_98] : memref<2x1x512xf32, #tpu.memory_space<vmem>>, vector<1x1x512xf32>
    %233 = vector.shape_cast %232 : vector<1x1x512xf32> to vector<1x512xf32>
    %234 = vector.broadcast %233 : vector<1x512xf32> to vector<8x512xf32>
    %235 = arith.addf %231, %234 : vector<8x512xf32>
    %cst_99 = arith.constant 0.000000e+00 : f32
    %236 = vector.broadcast %cst_99 : f32 to vector<8x512xf32>
    %237 = arith.maximumf %235, %236 : vector<8x512xf32>
    %c1_100 = arith.constant 1 : index
    %c0_101 = arith.constant 0 : index
    %c0_102 = arith.constant 0 : index
    %238 = vector.load %arg10[%c1_100, %c0_101, %c0_102] : memref<2x512x128xf32, #tpu.memory_space<vmem>>, vector<1x512x128xf32>
    %239 = vector.shape_cast %238 : vector<1x512x128xf32> to vector<512x128xf32>
    %cst_103 = arith.constant dense<0.000000e+00> : vector<8x128xf32>
    %240 = tpu.matmul %237, %239, %cst_103 {dimension_numbers = #tpu.dot_dimension_numbers<[1], [0], [0], [1], [0, 0, 1, 1], [], []>} : vector<8x512xf32>, vector<512x128xf32>, vector<8x128xf32> -> vector<8x128xf32>
    %c1_104 = arith.constant 1 : index
    %c0_105 = arith.constant 0 : index
    %c0_106 = arith.constant 0 : index
    %241 = vector.load %arg11[%c1_104, %c0_105, %c0_106] : memref<2x1x128xf32, #tpu.memory_space<vmem>>, vector<1x1x128xf32>
    %242 = vector.shape_cast %241 : vector<1x1x128xf32> to vector<1x128xf32>
    %243 = vector.broadcast %242 : vector<1x128xf32> to vector<8x128xf32>
    %244 = arith.addf %240, %243 : vector<8x128xf32>
    %245 = arith.addf %228, %244 : vector<8x128xf32>
    %cst_107 = arith.constant dense<0.000000e+00> : vector<8xf32>
    %246 = vector.multi_reduction <add>, %245, %cst_107 [1] : vector<8x128xf32> to vector<8xf32>
    %247 = vector.shape_cast %246 : vector<8xf32> to vector<8x1xf32>
    %cst_108 = arith.constant 1.280000e+02 : f32
    %248 = vector.broadcast %cst_108 : f32 to vector<8x1xf32>
    %249 = arith.divf %247, %248 : vector<8x1xf32>
    %250 = vector.broadcast %249 : vector<8x1xf32> to vector<8x128xf32>
    %251 = arith.subf %245, %250 : vector<8x128xf32>
    %252 = arith.mulf %251, %251 : vector<8x128xf32>
    %cst_109 = arith.constant dense<0.000000e+00> : vector<8xf32>
    %253 = vector.multi_reduction <add>, %252, %cst_109 [1] : vector<8x128xf32> to vector<8xf32>
    %254 = vector.shape_cast %253 : vector<8xf32> to vector<8x1xf32>
    %cst_110 = arith.constant 1.280000e+02 : f32
    %255 = vector.broadcast %cst_110 : f32 to vector<8x1xf32>
    %256 = arith.divf %254, %255 : vector<8x1xf32>
    %257 = vector.broadcast %249 : vector<8x1xf32> to vector<8x128xf32>
    %258 = arith.subf %245, %257 : vector<8x128xf32>
    %cst_111 = arith.constant 9.99999974E-6 : f32
    %259 = vector.broadcast %cst_111 : f32 to vector<8x1xf32>
    %260 = arith.addf %256, %259 : vector<8x1xf32>
    %261 = math.rsqrt %260 : vector<8x1xf32>
    %262 = vector.broadcast %261 : vector<8x1xf32> to vector<8x128xf32>
    %263 = arith.mulf %258, %262 : vector<8x128xf32>
    %c1_112 = arith.constant 1 : index
    %c0_113 = arith.constant 0 : index
    %c0_114 = arith.constant 0 : index
    %264 = vector.load %arg12[%c1_112, %c0_113, %c0_114] : memref<2x1x128xf32, #tpu.memory_space<vmem>>, vector<1x1x128xf32>
    %265 = vector.shape_cast %264 : vector<1x1x128xf32> to vector<1x128xf32>
    %266 = vector.broadcast %265 : vector<1x128xf32> to vector<8x128xf32>
    %267 = arith.mulf %263, %266 : vector<8x128xf32>
    %c1_115 = arith.constant 1 : index
    %c0_116 = arith.constant 0 : index
    %c0_117 = arith.constant 0 : index
    %268 = vector.load %arg13[%c1_115, %c0_116, %c0_117] : memref<2x1x128xf32, #tpu.memory_space<vmem>>, vector<1x1x128xf32>
    %269 = vector.shape_cast %268 : vector<1x1x128xf32> to vector<1x128xf32>
    %270 = vector.broadcast %269 : vector<1x128xf32> to vector<8x128xf32>
    %271 = arith.addf %267, %270 : vector<8x128xf32>
    %c0_118 = arith.constant 0 : index
    %c0_119 = arith.constant 0 : index
    %272 = vector.load %arg14[%c0_118, %c0_119] : memref<128x128xf32, #tpu.memory_space<vmem>>, vector<128x128xf32>
    %cst_120 = arith.constant dense<0.000000e+00> : vector<8x128xf32>
    %273 = tpu.matmul %271, %272, %cst_120 {dimension_numbers = #tpu.dot_dimension_numbers<[1], [0], [0], [1], [0, 0, 1, 1], [], []>} : vector<8x128xf32>, vector<128x128xf32>, vector<8x128xf32> -> vector<8x128xf32>
    %c0_121 = arith.constant 0 : index
    %c0_122 = arith.constant 0 : index
    %274 = vector.load %arg15[%c0_121, %c0_122] : memref<1x128xf32, #tpu.memory_space<vmem>>, vector<1x128xf32>
    %275 = vector.broadcast %274 : vector<1x128xf32> to vector<8x128xf32>
    %276 = arith.addf %273, %275 : vector<8x128xf32>
    %c0_123 = arith.constant 0 : index
    %c0_124 = arith.constant 0 : index
    %c0_125 = arith.constant 0 : index
    %277 = vector.load %arg16[%c0_123, %c0_124, %c0_125] : memref<1x8x128xf32, #tpu.memory_space<vmem>>, vector<1x8x128xf32>
    %278 = vector.shape_cast %277 : vector<1x8x128xf32> to vector<8x128xf32>
    %279 = vector.shape_cast %276 : vector<8x128xf32> to vector<1x8x128xf32>
    tpu.vector_store %arg16[%c0_123, %c0_124, %c0_125], %279 {strides = array<i32>} : memref<1x8x128xf32, #tpu.memory_space<vmem>>, vector<1x8x128xf32>,
    return
  }
  func.func @transform_0(%arg0: i32) -> (i32, i32, i32) {
    %c0_i32 = arith.constant 0 : i32
    %c0_i32_0 = arith.constant 0 : i32
    %c0_i32_1 = arith.constant 0 : i32
    return %arg0, %c0_i32, %c0_i32_0 : i32, i32, i32
  }
  func.func @transform_1(%arg0: i32) -> (i32, i32, i32) {
    %c0_i32 = arith.constant 0 : i32
    %c0_i32_0 = arith.constant 0 : i32
    %c0_i32_1 = arith.constant 0 : i32
    %c0_i32_2 = arith.constant 0 : i32
    return %c0_i32, %c0_i32_0, %c0_i32_1 : i32, i32, i32
  }
  func.func @transform_2(%arg0: i32) -> (i32, i32, i32) {
    %c0_i32 = arith.constant 0 : i32
    %c0_i32_0 = arith.constant 0 : i32
    %c0_i32_1 = arith.constant 0 : i32
    %c0_i32_2 = arith.constant 0 : i32
    return %c0_i32, %c0_i32_0, %c0_i32_1 : i32, i32, i32
  }
  func.func @transform_3(%arg0: i32) -> (i32, i32, i32) {
    %c0_i32 = arith.constant 0 : i32
    %c0_i32_0 = arith.constant 0 : i32
    %c0_i32_1 = arith.constant 0 : i32
    %c0_i32_2 = arith.constant 0 : i32
    return %c0_i32, %c0_i32_0, %c0_i32_1 : i32, i32, i32
  }
  func.func @transform_4(%arg0: i32) -> (i32, i32, i32) {
    %c0_i32 = arith.constant 0 : i32
    %c0_i32_0 = arith.constant 0 : i32
    %c0_i32_1 = arith.constant 0 : i32
    %c0_i32_2 = arith.constant 0 : i32
    return %c0_i32, %c0_i32_0, %c0_i32_1 : i32, i32, i32
  }
  func.func @transform_5(%arg0: i32) -> (i32, i32, i32) {
    %c0_i32 = arith.constant 0 : i32
    %c0_i32_0 = arith.constant 0 : i32
    %c0_i32_1 = arith.constant 0 : i32
    %c0_i32_2 = arith.constant 0 : i32
    return %c0_i32, %c0_i32_0, %c0_i32_1 : i32, i32, i32
  }
  func.func @transform_6(%arg0: i32) -> (i32, i32, i32) {
    %c0_i32 = arith.constant 0 : i32
    %c0_i32_0 = arith.constant 0 : i32
    %c0_i32_1 = arith.constant 0 : i32
    %c0_i32_2 = arith.constant 0 : i32
    return %c0_i32, %c0_i32_0, %c0_i32_1 : i32, i32, i32
  }
  func.func @transform_7(%arg0: i32) -> (i32, i32, i32) {
    %c0_i32 = arith.constant 0 : i32
    %c0_i32_0 = arith.constant 0 : i32
    %c0_i32_1 = arith.constant 0 : i32
    %c0_i32_2 = arith.constant 0 : i32
    return %c0_i32, %c0_i32_0, %c0_i32_1 : i32, i32, i32
  }
  func.func @transform_8(%arg0: i32) -> (i32, i32, i32) {
    %c0_i32 = arith.constant 0 : i32
    %c0_i32_0 = arith.constant 0 : i32
    %c0_i32_1 = arith.constant 0 : i32
    %c0_i32_2 = arith.constant 0 : i32
    return %c0_i32, %c0_i32_0, %c0_i32_1 : i32, i32, i32
  }
  func.func @transform_9(%arg0: i32) -> (i32, i32, i32) {
    %c0_i32 = arith.constant 0 : i32
    %c0_i32_0 = arith.constant 0 : i32
    %c0_i32_1 = arith.constant 0 : i32
    %c0_i32_2 = arith.constant 0 : i32
    return %c0_i32, %c0_i32_0, %c0_i32_1 : i32, i32, i32
  }
  func.func @transform_10(%arg0: i32) -> (i32, i32, i32) {
    %c0_i32 = arith.constant 0 : i32
    %c0_i32_0 = arith.constant 0 : i32
    %c0_i32_1 = arith.constant 0 : i32
    %c0_i32_2 = arith.constant 0 : i32
    return %c0_i32, %c0_i32_0, %c0_i32_1 : i32, i32, i32
  }
  func.func @transform_11(%arg0: i32) -> (i32, i32, i32) {
    %c0_i32 = arith.constant 0 : i32
    %c0_i32_0 = arith.constant 0 : i32
    %c0_i32_1 = arith.constant 0 : i32
    %c0_i32_2 = arith.constant 0 : i32
    return %c0_i32, %c0_i32_0, %c0_i32_1 : i32, i32, i32
  }
  func.func @transform_12(%arg0: i32) -> (i32, i32, i32) {
    %c0_i32 = arith.constant 0 : i32
    %c0_i32_0 = arith.constant 0 : i32
    %c0_i32_1 = arith.constant 0 : i32
    %c0_i32_2 = arith.constant 0 : i32
    return %c0_i32, %c0_i32_0, %c0_i32_1 : i32, i32, i32
  }
  func.func @transform_13(%arg0: i32) -> (i32, i32) {
    %c0_i32 = arith.constant 0 : i32
    %c0_i32_0 = arith.constant 0 : i32
    %c0_i32_1 = arith.constant 0 : i32
    return %c0_i32, %c0_i32_0 : i32, i32
  }
  func.func @transform_14(%arg0: i32) -> (i32, i32) {
    %c0_i32 = arith.constant 0 : i32
    %c0_i32_0 = arith.constant 0 : i32
    %c0_i32_1 = arith.constant 0 : i32
    return %c0_i32, %c0_i32_0 : i32, i32
  }
  func.func @transform_15(%arg0: i32) -> (i32, i32, i32) {
    %c0_i32 = arith.constant 0 : i32
    %c0_i32_0 = arith.constant 0 : i32
    %c0_i32_1 = arith.constant 0 : i32
    return %arg0, %c0_i32, %c0_i32_0 : i32, i32, i32
  }
  func.func @transform_16(%arg0: i32) -> (i32, i32, i32, i32) {
    %c0_i32 = arith.constant 0 : i32
    %c0_i32_0 = arith.constant 0 : i32
    %c0_i32_1 = arith.constant 0 : i32
    %c0_i32_2 = arith.constant 0 : i32
    return %arg0, %c0_i32, %c0_i32_0, %c0_i32_1 : i32, i32, i32, i32
  }
  func.func @transform_17(%arg0: i32) -> (i32, i32, i32, i32) {
    %c0_i32 = arith.constant 0 : i32
    %c0_i32_0 = arith.constant 0 : i32
    %c0_i32_1 = arith.constant 0 : i32
    %c0_i32_2 = arith.constant 0 : i32
    return %arg0, %c0_i32, %c0_i32_0, %c0_i32_1 : i32, i32, i32, i32
  }
}

</mosaic_0001>

<bundles_post_ra>
// kernel: tpu_custom_call.1
= control target key start
LH: loop header
LB: loop body
LE: loop exit
PB: predicated region body
PF: predicated region fallthrough
CT: control target
= control target key end

     0   :  { %s4017_s0 = inlined_call_operand.hbm [shape: f32[2,8,128], index: 0, kind: input, shape index: {}]   ;;  %s4018_s1 = inlined_call_operand.hbm [shape: f32[2,128,384], index: 1, kind: input, shape index: {}]   ;;  %s4019_s2 = inlined_call_operand.hbm [shape: f32[2,1,384], index: 2, kind: input, shape index: {}]   ;;  %s4020_s3 = inlined_call_operand.hbm [shape: f32[2,128,128], index: 3, kind: input, shape index: {}]   ;;  %s4021_s4 = inlined_call_operand.vmem [shape: f32[2,1,128], index: 4, kind: input, shape index: {}]   ;;  %s4022_s5 = inlined_call_operand.vmem [shape: f32[2,1,128], index: 5, kind: input, shape index: {}]   ;;  %s4023_s6 = inlined_call_operand.hbm [shape: f32[2,1,128], index: 6, kind: input, shape index: {}]   ;;  %s4024_s7 = inlined_call_operand.hbm [shape: f32[2,128,512], index: 7, kind: input, shape index: {}]   ;;  %s4025_s8 = inlined_call_operand.hbm [shape: f32[2,1,512], index: 8, kind: input, shape index: {}]   ;;  %s4026_s9 = inlined_call_operand.hbm [shape: f32[2,512,128], index: 9, kind: input, shape index: {}]   ;;  %s4027_s10 = inlined_call_operand.vmem [shape: f32[2,1,128], index: 10, kind: input, shape index: {}]   ;;  %s4028_s11 = inlined_call_operand.vmem [shape: f32[2,1,128], index: 11, kind: input, shape index: {}]   ;;  %s4029_s12 = inlined_call_operand.vmem [shape: f32[2,1,128], index: 12, kind: input, shape index: {}]   ;;  %s4030_s13 = inlined_call_operand.hbm [shape: f32[128,128], index: 13, kind: input, shape index: {}]   ;;  %s4031_s14 = inlined_call_operand.vmem [shape: f32[1,128], index: 14, kind: input, shape index: {}]   ;;  %s4032_s15 = inlined_call_operand.hbm [shape: f32[2,8,128], index: 15, kind: output, shape index: {0}]   ;;  %s4033_s16 = inlined_call_operand.hbm [shape: f32[2,4,8,8], index: 16, kind: output, shape index: {1}]   ;;  %s4034_s17 = inlined_call_operand.hbm [shape: f32[2,4,8,8], index: 17, kind: output, shape index: {2}]  }
   0x1   :  { %4046 = sst [smem:[#allocation28_spill]] %s4017_s0 }
   0x2   :  { %4047 = sst [smem:[#allocation29_spill]] %s4018_s1 }
   0x3   :  { %4048 = sst [smem:[#allocation30_spill]] %s4019_s2 }
   0x4   :  { %4049 = sst [smem:[#allocation31_spill]] %s4020_s3 }
   0x5   :  { %4050 = sst [smem:[#allocation32_spill]] %s4021_s4 }
   0x6   :  { %4051 = sst [smem:[#allocation33_spill]] %s4022_s5 }
   0x7   :  { %4052 = sst [smem:[#allocation34_spill]] %s4023_s6 }
   0x8   :  { %4053 = sst [smem:[#allocation35_spill]] %s4024_s7 }
   0x9   :  { %4054 = sst [smem:[#allocation36_spill]] %s4025_s8 }
   0xa   :  { %4055 = sst [smem:[#allocation37_spill]] %s4026_s9 }
   0xb   :  { %4056 = sst [smem:[#allocation38_spill]] %s4027_s10 }
   0xc   :  { %4057 = sst [smem:[#allocation39_spill]] %s4028_s11 }
   0xd   :  { %4058 = sst [smem:[#allocation40_spill]] %s4029_s12 }
   0xe   :  { %4059 = sst [smem:[#allocation41_spill]] %s4031_s14 }
   0xf   :  { %4060 = sst [smem:[#allocation42_spill]] %s4032_s15 }
  0x10   :  { %4061 = sst [smem:[#allocation43_spill]] %s4033_s16 }
  0x11   :  { %4062 = sst [smem:[#allocation44_spill]] %s4034_s17 }
  0x12   :  { %23 = vsyncpa [#allocation3], 0 }
  0x13   :  { %25 = vsyncpa [#allocation3 + $0x1], 0 }
  0x14   :  { %26 = vsyncpa [#allocation6], 0 }
  0x15   :  { %27 = vsyncpa [#allocation9], 0 }
  0x16   :  { %28 = vsyncpa [#allocation12], 0 }
  0x17   :  { %29 = vsyncpa [#allocation15], 0 }
  0x18   :  { %30 = vsyncpa [#allocation4], 0 }
  0x19   :  { %32 = vsyncpa [#allocation4 + $0x1], 0 }
  0x1a   :  { %33 = vsyncpa [#allocation19], 0 }
  0x1b   :  { %35 = vsyncpa [#allocation19 + $0x1], 0  ;;  %s3559_s24 = smov 0   ;;  %s3561_s25 = smov 0  }
  0x1c   :  { %s3563_s26 = smov 0   ;;  %s3565_s27 = smov 0  }
  0x1d LB: > { %s4063_s0 = sld [smem:[#allocation29_spill]]  ;;  %s3583_s18 = sadd.s32 4294967295, %s3441_s27   ;;  %s3441_s27 = sphi %s3565_s27, %s4094_s27   ;;  %s3437_s26 = sphi %s3563_s26, %s4093_s26   ;;  %s3433_s25 = sphi %s3561_s25, %s4092_s25   ;;  %s3429_s24 = sphi %s3559_s24, %s4091_s24  }
  0x1e   : > { %p2753_p0 = scmp.ge.s32.totalorder %s3441_s27, 1  ;;  %p62_p1 = scmp.eq.s32.totalorder %s3583_s18, 0 }
  0x1f   : > { %p444_p2 = scmp.lt.s32.totalorder %s3441_s27, 3  ;;  %s3443_s1 = smov [#allocation5]  }
  0x20   : > { %s457_s20 = sshll.u32 %s3443_s1, 4  ;;  %s4065_s3 = sld [smem:[#allocation31_spill]]  ;;  %s458_s20 = int_to_ptr.vmem [resolvable:$true] %s457_s20 }
  0x21   : > { %p3588_p3 = pnand %p2753_p0, %p444_p2  ;;  %s3444_s29 = smov [#allocation8]  }
  0x22   : > { %s3445_s1 = smov 384   ;;  %s3446_s14 = smov 24  }
  0x23   : > { %s455_s30 = sshll.u32 %s4063_s0, 4  ;;  %p2859_p4 = pneg %p3588_p3  ;;  %s456_s30 = int_to_ptr.hbm [resolvable:$true] %s455_s30 }
  0x24   : > { %s485_s0 = sshll.u32 %s3444_s29, 4  ;;  %s3447_s15 = smov 128   ;;  %s486_s0 = int_to_ptr.vmem [resolvable:$true] %s485_s0 }
  0x25   : > { %p3600_p6 = pnand %p2859_p4, %p62_p1  ;;  %s3448_s17 = smov 8  }
  0x26   : > { %s483_s23 = sshll.u32 %s4065_s3, 4  ;;  %s4067_s7 = sld [smem:[#allocation35_spill]]  ;;  %s484_s23 = int_to_ptr.hbm [resolvable:$true] %s483_s23 }
  0x27   : > { %2862 = dma.hbm_to_vmem [thread:$0]  (!%p3600_p6), %s456_s30, 12288, %s458_s20, [#allocation6], %s3445_s1, %s3445_s1, %s3446_s14  }
  0x28   : > { %2868 = dma.hbm_to_vmem [thread:$0]  (!%p3600_p6), %s484_s23, 4096, %s486_s0, [#allocation9], %s3447_s15, %s3447_s15, %s3448_s17  }
  0x29   : > { %s3449_s29 = smov [#allocation11]   ;;  %s4068_s9 = sld [smem:[#allocation37_spill]] }
  0x2a   : > { %s519_s16 = sshll.u32 %s3449_s29, 4  ;;  %s3450_s30 = smov 512   ;;  %s520_s16 = int_to_ptr.vmem [resolvable:$true] %s519_s16 }
  0x2b   : > { %s3451_s20 = smov 32   ;;  %s3452_s23 = smov [#allocation14]  }
  0x2c   : > { %s517_s3 = sshll.u32 %s4067_s7, 4  ;;  %s547_s0 = sshll.u32 %s3452_s23, 4  ;;  %s518_s3 = int_to_ptr.hbm [resolvable:$true] %s517_s3  ;;  %s548_s0 = int_to_ptr.vmem [resolvable:$true] %s547_s0 }
  0x2d   : > { %2874 = dma.hbm_to_vmem [thread:$0]  (!%p3600_p6), %s518_s3, 16384, %s520_s16, [#allocation12], %s3450_s30, %s3450_s30, %s3451_s20  }
  0x2e   : > { %s4069_s2 = sld [smem:[#allocation30_spill]]  ;;  %s3453_s11 = smov [#allocation7]  }
  0x2f   : > { %s545_s14 = sshll.u32 %s4068_s9, 4  ;;  %s471_s12 = sshll.u32 %s3453_s11, 4  ;;  %s546_s14 = int_to_ptr.hbm [resolvable:$true] %s545_s14  ;;  %s472_s12 = int_to_ptr.vmem [resolvable:$true] %s471_s12 }
  0x30   : > { %2880 = dma.hbm_to_vmem [thread:$0]  (!%p3600_p6), %s546_s14, 16384, %s548_s0, [#allocation15], %s3447_s15, %s3447_s15, %s3448_s17  }
  0x31   : > { %s4070_s6 = sld [smem:[#allocation34_spill]]  ;;  %s3454_s30 = smov 48  }
  0x32   : > { %s3455_s20 = smov 3   ;;  %s3456_s23 = smov [#allocation10]  }
  0x33   : > { %s505_s1 = sshll.u32 %s3456_s23, 4  ;;  %s3457_s21 = smov 16   ;;  %s506_s1 = int_to_ptr.vmem [resolvable:$true] %s505_s1 }
  0x34   : > { %s469_s22 = sshll.u32 %s4069_s2, 4  ;;  %s3458_s2 = smov 1   ;;  %s470_s22 = int_to_ptr.hbm [resolvable:$true] %s469_s22 }
  0x35   : > { %2865 = dma.hbm_to_vmem [thread:$0]  (!%p3600_p6), %s470_s22, 96, %s472_s12, [#allocation6], %s3454_s30, %s3454_s30, %s3455_s20  }
  0x36   : > { %s4071_s8 = sld [smem:[#allocation36_spill]]  ;;  %s3459_s22 = smov [#allocation13]  }
  0x37   : > { %s503_s16 = sshll.u32 %s4070_s6, 4  ;;  %s533_s12 = sshll.u32 %s3459_s22, 4  ;;  %s504_s16 = int_to_ptr.hbm [resolvable:$true] %s503_s16  ;;  %s534_s12 = int_to_ptr.vmem [resolvable:$true] %s533_s12 }
  0x38   : > { %2871 = dma.hbm_to_vmem [thread:$0]  (!%p3600_p6), %s504_s16, 32, %s506_s1, [#allocation9], %s3457_s21, %s3457_s21, %s3458_s2  }
  0x39   : > { %s568_s30 = sshll.u32 %s4030_s13, 4  ;;  %s3460_s2 = smov 64   ;;  %s569_s30 = int_to_ptr.hbm [resolvable:$true] %s568_s30 }
  0x3a   : > { %s3461_s16 = smov 4   ;;  %s3462_s20 = smov [#allocation16]  }
  0x3b   : > { %s570_s23 = sshll.u32 %s3462_s20, 4  ;;  %s4041_s1 = sadd.s32 4294967294, %s3441_s27   ;;  %s571_s23 = int_to_ptr.vmem [resolvable:$true] %s570_s23 }
  0x3c   : > { %s531_s11 = sshll.u32 %s4071_s8, 4  ;;  %s3649_s21 = sadd.s32 1, %s3441_s27   ;;  %s532_s11 = int_to_ptr.hbm [resolvable:$true] %s531_s11 }
  0x3d   : > { %2877 = dma.hbm_to_vmem [thread:$0]  (!%p3600_p6), %s532_s11, 128, %s534_s12, [#allocation12], %s3460_s2, %s3460_s2, %s3461_s16  }
  0x3e   : > { %2883 = dma.hbm_to_vmem [thread:$0]  (!%p3600_p6), %s569_s30, 2048, %s571_s23, [#allocation15], %s3447_s15, %s3447_s15, %s3448_s17  }
  0x3f   : > { %s45_s14 = ssub.s32 %s3441_s27, %s3649_s21  ;;  %s48_s0 = sadd.s32 1, %s3437_s26 }
  0x40   : > { %p46_p7 = scmp.eq.s32.totalorder %s45_s14, 0  ;;  %p55_p8 = scmp.ne.s32.totalorder %s3437_s26, %s3433_s25 }
  0x41   : > { %p56_p9 = scmp.eq.s32.totalorder %s3441_s27, 0  ;;  %p61_p10 = scmp.ne.s32.totalorder %s3433_s25, %s3429_s24 }
  0x42   : > { %s3660_s11 = scalar_select %p46_p7, %s3437_s26, %s48_s0  }
  0x43   : > { %p3662_p11 = por %p56_p9, %p55_p8  ;;  %p3668_p12 = por %p62_p1, %p61_p10 }
  0x44   : > { %p379_p13 = scmp.eq.s32.totalorder %s3583_s18, 1  ;;  %p385_p0 = scmp.eq.s32.totalorder %s4041_s1, 1 }
  0x45   : > { %p2906_p2 = scmp.lt.s32.totalorder %s3441_s27, 2  ;;  %s587_s17 = sand.u32 1, %s3437_s26  }
  0x46   : > { %p3677_p4 = por %p379_p13, %p55_p8  ;;  %p3681_p6 = por %p385_p0, %p61_p10 }
  0x47   : > { %s2763_s29 = sshll.u32 %s587_s17, 3  ;;  %s2764_s3 = sshll.u32 %s3441_s27, 3 }
  0x48   : > { %s4076_s16 = sld [smem:[#allocation28_spill]]  ;;  %s591_s23 = scalar_lea.vmem [#allocation2], %s2763_s29 }
  0x49   : > { %s599_s14 = sshll.u32 %s591_s23, 4  ;;  %p3691_p7 = pnand %p2906_p2, %p3662_p11  ;;  %s600_s14 = int_to_ptr.vmem [resolvable:$true] %s599_s14 }
  0x4a   : > { %s588_s6 = scalar_lea.sflag [#allocation3], %s587_s17 }
  0x4b   : > { %p3273_p9 = pneg %p3691_p7 }
  0x4e   : > { %s595_s20 = scalar_lea.hbm %s4076_s16, %s2764_s3  ;;  %s3276_s30 = scalar_lea.hbm %s4076_s16, 16 }
  0x4f   : > { %s597_s0 = sshll.u32 %s595_s20, 4  ;;  %s598_s0 = int_to_ptr.hbm [resolvable:$true] %s597_s0 }
  0x50   : > { %s3269_s7 = sshra.s32 %s598_s0, 4  ;;  %s3270_s7 = int_to_ptr.hbm [resolvable:$true] %s3269_s7 }
  0x51   : > { %s3271_s8 = scalar_lea.hbm %s3270_s7, 8  ;;  %p3277_p11 = scmp.lt.s32.totalorder %s3270_s7, %s4076_s16 }
  0x52   : > { %p3272_p8 = scmp.ne.s32.totalorder %s3270_s7, %s3271_s8  ;;  %p3278_p0 = scmp.lt.s32.totalorder %s3276_s30, %s3271_s8 }
  0x54   : > { %p3274_p10 = pnand %p3273_p9, %p3272_p8  ;;  %p3279_p2 = por %p3278_p0, %p3277_p11 }
  0x56   : > { %p3275_p13 = pneg %p3274_p10 }
  0x58   : > { %p3280_p5 = pnand %p3279_p2, %p3275_p13 }
  0x5a   : > { %3283 = shalt.err (!%p3280_p5)
}
  0x5b   : > { %2887 = dma.hbm_to_vmem [thread:$0]  (!%p3691_p7), %s598_s0, 128, %s600_s14, %s588_s6  }
  0x5c   : > { %608 = sbr.rel (%p3588_p3) target bundleno = 3963 (0xf7b), region = 80  ;;  %s3708_s17 = sand.u32 (!%p3588_p3), 1, %s3433_s25  }
  0x5d   : > { %s4042_s20 = sshll.u32 (!%p3588_p3), %s3708_s17, 3  ;;  %s611_s23 = scalar_lea.sflag (!%p3588_p3), [#allocation3], %s3708_s17 }
  0x5e   : > { %s3714_s7 = scalar_lea.vmem (!%p3588_p3), [#allocation2], %s4042_s20 }
  0x61   : > { %3400 = dma.done.wait (%p3668_p12), %s611_s23, 128  }
  0x62   : > { %3402 = vsyncadd (%p3668_p12), %s611_s23, 4294967168 }
  0x63   : > { %3404 = dma.done.wait (%p62_p1), [#allocation6], 12384  }
  0x64   : > { %3406 = vsyncadd (%p62_p1), [#allocation6], 4294954912 }
  0x65   : > { %3408 = dma.done.wait (%p62_p1), [#allocation9], 4128  }
  0x66   : > { %3410 = vsyncadd (%p62_p1), [#allocation9], 4294963168 }
  0x67   : > { %3412 = dma.done.wait (%p62_p1), [#allocation12], 16512  }
  0x68   : > { %3414 = vsyncadd (%p62_p1), [#allocation12], 4294950784 }
  0x69   : > { %3416 = dma.done.wait (%p62_p1), [#allocation15], 18432  }
  0x6a   : > { %3418 = vsyncadd (%p62_p1), [#allocation15], 4294948864  ;;  %v763_v0 = vld [vmem:[#allocation5 + $0x170] sm:$0xff]  ;;  %v760_v1 = vld [vmem:[#allocation5 + $0x158] sm:$0xff]  ;;  %vm857_vm0 = vcmask 261120   ;;  %s3463_s6 = smov 32  }
  0x6b   : > { %793 = vmatpush.msra.mxu1 %v763_v0  ;;  %v762_v2 = vld [vmem:[#allocation5 + $0x168] sm:$0xff]  ;;  %v757_v3 = vld [vmem:[#allocation5 + $0x140] sm:$0xff]  ;;  %v759_v4 = vld [vmem:[#allocation5 + $0x150] sm:$0xff]  ;;  %s3464_s8 = smov 96   ;;  %s3465_s19 = smov 64   ;;  %vm954_vm1 = vcmask 64512  }
  0x6c   : > { %773 = vmatpush.msra.mxu0 %v762_v2  ;;  %v756_v5 = vld [vmem:[#allocation5 + $0x138] sm:$0xff]  ;;  %v754_v6 = vld [vmem:[#allocation5 + $0x128] sm:$0xff]  ;;  %v753_v7 = vld [vmem:[#allocation5 + $0x120] sm:$0xff]  ;;  %s2776_s1 = sshll.u32 %s3708_s17, 5  ;;  %s4078_s4 = sld [smem:[#allocation32_spill]] }
  0x6d   : > { %794 = vmatpush.msra.mxu1 %v760_v1  ;;  %v751_v8 = vld [vmem:[#allocation5 + $0x110] sm:$0xff]  ;;  %v750_v9 = vld [vmem:[#allocation5 + $0x108] sm:$0xff]  ;;  %v748_v10 = vld [vmem:[#allocation5 + $0xf8] sm:$0xff]  ;;  %s3776_s15 = scalar_lea.vmem [#allocation18], %s2776_s1  ;;  %s4079_s5 = sld [smem:[#allocation33_spill]] }
  0x6e   : > { %774 = vmatpush.msra.mxu0 %v759_v4  ;;  %v747_v11 = vld [vmem:[#allocation5 + $0xf0] sm:$0xff]  ;;  %v745_v12 = vld [vmem:[#allocation5 + $0xe0] sm:$0xff]  ;;  %v744_v13 = vld [vmem:[#allocation5 + $0xd8] sm:$0xff]  ;;  %s4080_s10 = sld [smem:[#allocation38_spill]]  ;;  %s3880_s3 = scalar_lea.vmem [#allocation20], %s2776_s1 }
  0x6f   : > { %795 = vmatpush.msra.mxu1 %v757_v3  ;;  %v764_v14 = vld [vmem:[#allocation5 + $0x178] sm:$0xff]  ;;  %v761_v15 = vld [vmem:[#allocation5 + $0x160] sm:$0xff]  ;;  %v742_v16 = vld [vmem:[#allocation5 + $0xc8] sm:$0xff]  ;;  %s4082_s29 = sld [smem:[#allocation40_spill]]  ;;  %s2488_s2 = sand.u32 1, %s3583_s18  }
  0x70   : > { %775 = vmatpush.msra.mxu0 %v756_v5  ;;  %813 = vmatpush.msra.mxu2 %v764_v14  ;;  %v741_v17 = vld [vmem:[#allocation5 + $0xc0] sm:$0xff]  ;;  %v758_v18 = vld [vmem:[#allocation5 + $0x148] sm:$0xff]  ;;  %v739_v19 = vld [vmem:[#allocation5 + $0xb0] sm:$0xff]  ;;  %s4083_s1 = sld [smem:[#allocation43_spill]]  ;;  %s2520_s20 = sshll.u32 %s3776_s15, 4  ;;  %s2521_s20 = int_to_ptr.vmem [resolvable:$true] %s2520_s20 }
  0x71   : > { %796 = vmatpush.msra.mxu1 %v754_v6  ;;  %v736_v20 = vld [vmem:[#allocation5 + $0x98] sm:$0xff]  ;;  %v738_v21 = vld [vmem:[#allocation5 + $0xa8] sm:$0xff]  ;;  %v735_v22 = vld [vmem:[#allocation5 + $0x90] sm:$0xff]  ;;  %s3947_s23 = scalar_lea.sflag [#allocation19], %s2488_s2 }
  0x72   : > { %776 = vmatpush.msra.mxu0 %v753_v7  ;;  %814 = vmatpush.msra.mxu2 %v761_v15  ;;  %v755_v23 = vld [vmem:[#allocation5 + $0x130] sm:$0xff]  ;;  %v733_v24 = vld [vmem:[#allocation5 + $0x80] sm:$0xff]  ;;  %v752_v25 = vld [vmem:[#allocation5 + $0x118] sm:$0xff] }
  0x73   : > { %797 = vmatpush.msra.mxu1 %v751_v8  ;;  %v732_v26 = vld [vmem:[#allocation5 + $0x78] sm:$0xff]  ;;  %v749_v27 = vld [vmem:[#allocation5 + $0x100] sm:$0xff]  ;;  %v730_v28 = vld [vmem:[#allocation5 + $0x68] sm:$0xff] }
  0x74   : > { %777 = vmatpush.msra.mxu0 %v750_v9  ;;  %815 = vmatpush.msra.mxu2 %v758_v18  ;;  %v729_v29 = vld [vmem:[#allocation5 + $0x60] sm:$0xff]  ;;  %v746_v30 = vld [vmem:[#allocation5 + $0xe8] sm:$0xff]  ;;  %v727_v31 = vld [vmem:[#allocation5 + $0x50] sm:$0xff] }
  0x75   : > { %798 = vmatpush.msra.mxu1 %v748_v10  ;;  %v726_v32 = vld [vmem:[#allocation5 + $0x48] sm:$0xff]  ;;  %v743_v33 = vld [vmem:[#allocation5 + $0xd0] sm:$0xff]  ;;  %v724_v34 = vld [vmem:[#allocation5 + $0x38] sm:$0xff] }
  0x76   : > { %778 = vmatpush.msra.mxu0 %v747_v11  ;;  %816 = vmatpush.msra.mxu2 %v755_v23  ;;  %v723_v35 = vld [vmem:[#allocation5 + $0x30] sm:$0xff]  ;;  %v740_v36 = vld [vmem:[#allocation5 + $0xb8] sm:$0xff]  ;;  %v721_v37 = vld [vmem:[#allocation5 + $0x20] sm:$0xff] }
  0x77   : > { %799 = vmatpush.msra.mxu1 %v745_v12  ;;  %v720_v38 = vld [vmem:[#allocation5 + $0x18] sm:$0xff]  ;;  %v737_v39 = vld [vmem:[#allocation5 + $0xa0] sm:$0xff]  ;;  %v718_v40 = vld [vmem:[#allocation5 + $0x8] sm:$0xff] }
  0x78   : > { %779 = vmatpush.msra.mxu0 %v744_v13  ;;  %817 = vmatpush.msra.mxu2 %v752_v25  ;;  %v3737_v41 = vld [vmem:[%s3714_s7] sm:$0xff]  ;;  %v717_v42 = vld [vmem:[#allocation5] sm:$0xff]  ;;  %v734_v43 = vld [vmem:[#allocation5 + $0x88] sm:$0xff]  ;;  %s4081_s7 = sld [smem:[#allocation39_spill]] }
  0x79   : > { %800 = vmatpush.msra.mxu1 %v742_v16  ;;  %v731_v44 = vld [vmem:[#allocation5 + $0x70] sm:$0xff]  ;;  %v728_v45 = vld [vmem:[#allocation5 + $0x58] sm:$0xff]  ;;  %v725_v46 = vld [vmem:[#allocation5 + $0x40] sm:$0xff] }
  0x7a   : > { %780 = vmatpush.msra.mxu0 %v741_v17  ;;  %818 = vmatpush.msra.mxu2 %v749_v27  ;;  %v722_v47 = vld [vmem:[#allocation5 + $0x28] sm:$0xff]  ;;  %v719_v48 = vld [vmem:[#allocation5 + $0x10] sm:$0xff]  ;;  %v765_v49 = vld [vmem:[#allocation7] sm:$0x7] }
  0x7b   : > { %801 = vmatpush.msra.mxu1 %v739_v19  ;;  %v768_v50 = vperm.slane %v765_v49, 1  ;;  %v767_v51 = vperm.slane %v765_v49, 0  ;;  %v769_v59 = vperm.slane %v765_v49, 2 }
  0x7c   : > { %781 = vmatpush.msra.mxu0 %v738_v21  ;;  %819 = vmatpush.msra.mxu2 %v746_v30 }
  0x7d   : > { %802 = vmatpush.msra.mxu1 %v736_v20 }
  0x7e   : > { %782 = vmatpush.msra.mxu0 %v735_v22  ;;  %820 = vmatpush.msra.mxu2 %v743_v33 }
  0x7f   : > { %803 = vmatpush.msra.mxu1 %v733_v24 }
  0x80   : > { %783 = vmatpush.msra.mxu0 %v732_v26  ;;  %821 = vmatpush.msra.mxu2 %v740_v36 }
  0x81   : > { %804 = vmatpush.msra.mxu1 %v730_v28 }
  0x82   : > { %784 = vmatpush.msra.mxu0 %v729_v29  ;;  %822 = vmatpush.msra.mxu2 %v737_v39 }
  0x83   : > { %805 = vmatpush.msra.mxu1 %v727_v31 }
  0x84   : > { %785 = vmatpush.msra.mxu0 %v726_v32  ;;  %823 = vmatpush.msra.mxu2 %v734_v43 }
  0x85   : > { %806 = vmatpush.msra.mxu1 %v724_v34 }
  0x86   : > { %786 = vmatpush.msra.mxu0 %v723_v35  ;;  %824 = vmatpush.msra.mxu2 %v731_v44 }
  0x87   : > { %807 = vmatpush.msra.mxu1 %v721_v37 }
  0x88   : > { %787 = vmatpush.msra.mxu0 %v720_v38  ;;  %825 = vmatpush.msra.mxu2 %v728_v45 }
  0x89   : > { %808 = vmatpush.msra.mxu1 %v718_v40 }
  0x8a   : > { %809 = vmatmul.f32.vlgmr.msra.gmra.mxu1 %v3737_v41  ;;  %788 = vmatpush.msra.mxu0 %v717_v42 }
  0x8b   : > { %789 = vmatmul.f32.vlgmr.msra.gmra.mxu0 %v3737_v41  ;;  %826 = vmatpush.msra.mxu2 %v725_v46 }
  0x8d   : > { %827 = vmatpush.msra.mxu2 %v722_v47 }
  0x8f   : > { %828 = vmatpush.msra.mxu2 %v719_v48 }
  0x90   : > { %829 = vmatmul.f32.vlgmr.msra.gmra.mxu2 %v3737_v41 }
 0x107   : > { %v810_v52 = vpop.f32.mrf.mxu1 }
 0x108   : > { %v811_v53 = vadd.f32 %v810_v52, %v768_v50  ;;  %v790_v54 = vpop.f32.mrf.mxu0 }
 0x109   : > { %v791_v55 = vadd.f32 %v790_v54, %v767_v51 }
 0x10a   : > { %845 = vrot.lane.b32.xlu2 %v811_v53, %s3463_s6  ;;  %841 = vrot.lane.b32.xlu1 %v811_v53, %s3464_s8 }
 0x10b   : > { %843 = vrot.lane.b32.xlu0 %v811_v53, %s3465_s19  ;;  %2778 = vmatpush.xpose.msk.msrb.mxu2 %vm857_vm0, %v811_v53 }
 0x10e   : > { %2779 = vmatmul.msk.f32.vlgmr.msrb.gmra.mxu2 %vm857_vm0, %v791_v55 }
 0x112   : > { %838 = vrot.lane.b32.xlu2 %v791_v55, %s3463_s6  ;;  %834 = vrot.lane.b32.xlu1 %v791_v55, %s3464_s8 }
 0x113   : > { %836 = vrot.lane.b32.xlu0 %v791_v55, %s3465_s19  ;;  %v830_v60 = vpop.f32.mrf.mxu2 }
 0x114   : > { %v831_v61 = vadd.f32 %v830_v60, %v769_v59 }
 0x164   : > { %v846_v58 = vpop.permute.xlu2 %845 }
 0x16c   : > { %v839_v0 = vpop.permute.xlu2 %838 }
 0x17c   : > { %v842_v56 = vpop.permute.xlu1 %841 }
 0x17d   : > { %v844_v57 = vpop.permute.xlu0 %843  ;;  %2780 = vmatpush.xpose.msk.msra.mxu2 %vm857_vm0, %v842_v56 }
 0x17e   : > { %2782 = vmatpush.xpose.msk.msra.mxu3 %vm857_vm0, %v844_v57 }
 0x182   : > { %2784 = vmatpush.xpose.msk.msrb.mxu3 %vm857_vm0, %v846_v58 }
 0x184   : > { %v835_v62 = vpop.permute.xlu1 %834 }
 0x185   : > { %v837_v63 = vpop.permute.xlu0 %836  ;;  %2781 = vmatmul.msk.f32.vlgmr.msra.gmra.mxu2 %vm857_vm0, %v835_v62 }
 0x186   : > { %2783 = vmatmul.msk.f32.vlgmr.msra.gmra.mxu3 %vm857_vm0, %v837_v63 }
 0x187   : > { %1073 = vmatpush.msra.mxu3 %v831_v61 }
 0x18e   : > { %2785 = vmatmul.msk.f32.vlgmr.msrb.gmra.mxu3 %vm857_vm0, %v839_v0 }
 0x191   : > { %v879_v1 = vpop.f32.mrf.mxu2 }
 0x192   : > { %v955_v8 = vsel %vm954_vm1, %v879_v1, -inf }
 0x208   : > { %v903_v2 = vpop.f32.mrf.mxu2 }
 0x209   : > { %v927_v3 = vpop.f32.mrf.mxu3  ;;  %v958_v4 = vsel %vm954_vm1, %v903_v2, -inf }
 0x20a   : > { %v961_v5 = vsel %vm954_vm1, %v927_v3, -inf  ;;  %959 = vmax.xlane.f32.xlu0 %v958_v4 }
 0x20b   : > { %962 = vmax.xlane.f32.xlu2 %v961_v5 }
 0x211   : > { %v951_v6 = vpop.f32.mrf.mxu3 }
 0x212   : > { %v964_v7 = vsel %vm954_vm1, %v951_v6, -inf }
 0x213   : > { %965 = vmax.xlane.f32.xlu1 %v964_v7  ;;  %956 = vmax.xlane.f32.xlu2 %v955_v8 }
 0x27d   : > { %v960_v9 = vpop.xlane.xlu0 %959 }
 0x27e   : > { %v963_v10 = vpop.xlane.xlu2 %962  ;;  %v968_v11 = vsub.f32 %v903_v2, %v960_v9 }
 0x27f   : > { %v969_v12 = vsub.f32 %v927_v3, %v963_v10 }
 0x280   : > { %v973_v13 = vmul.f32 1.442695, %v968_v11 }
 0x281   : > { %v975_v14 = vmul.f32 1.442695, %v969_v12 }
 0x282   : > { %2987 = vpow2.f32 %v973_v13 }
 0x283   : > { %2989 = vpow2.f32 %v975_v14 }
 0x286   : > { %v966_v15 = vpop.xlane.xlu1 %965  ;;  %v957_v24 = vpop.xlane.xlu2 %956 }
 0x287   : > { %v970_v16 = vsub.f32 %v951_v6, %v966_v15  ;;  %v967_v25 = vsub.f32 %v879_v1, %v957_v24  ;;  %v1175_v24 = vld [vmem:[#allocation8 + $0x58] sm:$0xff] }
 0x288   : > { %v2988_v17 = vpop.eup %2987 }
 0x289   : > { %v2990_v18 = vpop.eup %2989  ;;  %v977_v19 = vmul.f32 1.442695, %v970_v16  ;;  %v982_v20 = vsel %vm954_vm1, %v2988_v17, 0.0  ;;  %v971_v26 = vmul.f32 1.442695, %v967_v25  ;;  %v1174_v25 = vld [vmem:[#allocation8 + $0x50] sm:$0xff] }
 0x28a   : > { %v985_v21 = vsel %vm954_vm1, %v2990_v18, 0.0  ;;  %983 = vadd.xlane.f32.xlu0 %v982_v20  ;;  %v1179_v20 = vld [vmem:[#allocation8 + $0x78] sm:$0xff] }
 0x28b   : > { %2991 = vpow2.f32 %v977_v19  ;;  %986 = vadd.xlane.f32.xlu2 %v985_v21  ;;  %v1178_v21 = vld [vmem:[#allocation8 + $0x70] sm:$0xff]  ;;  %1184 = vmatpush.msrb.mxu3 %v1179_v20 }
 0x28c   : > { %2993 = vpow2.f32 %v971_v26  ;;  %v1173_v26 = vld [vmem:[#allocation8 + $0x48] sm:$0xff]  ;;  %v1280_v20 = vld [vmem:[#allocation11 + $0x130] sm:$0xff] }
 0x28d   : > { %1185 = vmatpush.msrb.mxu3 %v1178_v21  ;;  %v1281_v21 = vld [vmem:[#allocation11 + $0x138] sm:$0xff] }
 0x291   : > { %v3762_v22 = vpop.eup %2991 }
 0x292   : > { %v988_v23 = vsel %vm954_vm1, %v3762_v22, 0.0  ;;  %v3769_v27 = vpop.eup %2993 }
 0x293   : > { %989 = vadd.xlane.f32.xlu1 %v988_v23  ;;  %v979_v28 = vsel %vm954_vm1, %v3769_v27, 0.0  ;;  %v1176_v23 = vld [vmem:[#allocation8 + $0x60] sm:$0xff] }
 0x29e   : > { %848 = vrot.lane.b32.xlu0 %v831_v61, %s3464_s8 }
 0x2a3   : > { %851 = vrot.lane.b32.xlu2 %v831_v61, %s3465_s19 }
 0x2ac   : > { %854 = vrot.lane.b32.xlu1 %v831_v61, %s3463_s6 }
 0x2c8   : > { %980 = vadd.xlane.f32.xlu0 %v979_v28  ;;  %v1171_v28 = vld [vmem:[#allocation8 + $0x38] sm:$0xff] }
 0x2fd   : > { %v984_v29 = vpop.xlane.xlu0 %983 }
 0x2fe   : > { %v987_v30 = vpop.xlane.xlu2 %986  ;;  %2995 = vrcp.f32 %v984_v29  ;;  %v1016_v38 = vand.u32 2147483648, %v984_v29  ;;  %v1014_v42 = vand.u32 2147483647, %v984_v29  ;;  %vm1010_vm4 = vweird.f32 %v984_v29 }
 0x2ff   : > { %2997 = vrcp.f32 %v987_v30  ;;  %v1030_v39 = vand.u32 2147483648, %v987_v30  ;;  %v1028_v44 = vand.u32 2147483647, %v987_v30  ;;  %vm1024_vm5 = vweird.f32 %v987_v30 }
 0x300   : > { %v1017_v47 = vor.u32 1.1754944e-38, %v1016_v38  ;;  %vm1015_vm8 = vcmp.eq.f32.partialorder %v1014_v42, 8.507059e+37 }
 0x301   : > { %v1031_v49 = vor.u32 1.1754944e-38, %v1030_v39  ;;  %vm1029_vm9 = vcmp.eq.f32.partialorder %v1028_v44, 8.507059e+37  ;;  %v2974_v44 = vld [vmem:[%s4078_s4] ss:$0 sm:$0xff] }
 0x304   : > { %v2996_v31 = vpop.eup %2995 }
 0x305   : > { %v2998_v32 = vpop.eup %2997  ;;  %v1006_v33 = vmul.f32 %v2996_v31, %v984_v29  ;;  %vm1011_vm2 = vweird.f32 %v2996_v31  ;;  %v1170_v29 = vld [vmem:[#allocation8 + $0x30] sm:$0xff] }
 0x306   : > { %v1020_v34 = vmul.f32 %v2998_v32, %v987_v30  ;;  %v990_v35 = vpop.xlane.xlu1 %989  ;;  %vm1025_vm3 = vweird.f32 %v2998_v32  ;;  %vm1012_vm6 = vmor %vm1010_vm4, %vm1011_vm2  ;;  %v852_v62 = vpop.permute.xlu2 %851  ;;  %v1169_v30 = vld [vmem:[#allocation8 + $0x28] sm:$0xff]  ;;  %vm1160_vm4 = vcmask 523264  }
 0x307   : > { %v1007_v36 = vsub.f32 1.0, %v1006_v33  ;;  %2999 = vrcp.f32 %v990_v35  ;;  %vm1026_vm7 = vmor %vm1024_vm5, %vm1025_vm3  ;;  %v1044_v59 = vand.u32 2147483648, %v990_v35  ;;  %v1042_v61 = vand.u32 2147483647, %v990_v35  ;;  %v1166_v33 = vld [vmem:[#allocation8 + $0x10] sm:$0xff] }
 0x308   : > { %v1021_v37 = vsub.f32 1.0, %v1020_v34  ;;  %vm1038_vm11 = vweird.f32 %v990_v35  ;;  %v1165_v34 = vld [vmem:[#allocation8 + $0x8] sm:$0xff]  ;;  %vm1162_vm5 = vcmask 785408  }
 0x309   : > { %v1008_v40 = vmul.f32 %v2996_v31, %v1007_v36  ;;  %v1045_v0 = vor.u32 1.1754944e-38, %v1044_v59  ;;  %vm1043_vm13 = vcmp.eq.f32.partialorder %v1042_v61, 8.507059e+37 }
 0x30a   : > { %v1022_v43 = vmul.f32 %v2998_v32, %v1021_v37 }
 0x30b   : > { %v1009_v45 = vadd.f32 %v2996_v31, %v1008_v40 }
 0x30c   : > { %v1023_v46 = vadd.f32 %v2998_v32, %v1022_v43 }
 0x30d   : > { %v3000_v48 = vpop.eup %2999  ;;  %v1013_v50 = vsel %vm1012_vm6, %v2996_v31, %v1009_v45  ;;  %v1168_v31 = vld [vmem:[#allocation8 + $0x20] sm:$0xff] }
 0x30e   : > { %v1027_v51 = vsel %vm1026_vm7, %v2998_v32, %v1023_v46  ;;  %v1034_v52 = vmul.f32 %v3000_v48, %v990_v35  ;;  %v1018_v53 = vsel %vm1015_vm8, %v1017_v47, %v1013_v50  ;;  %vm1039_vm10 = vweird.f32 %v3000_v48  ;;  %v1167_v32 = vld [vmem:[#allocation8 + $0x18] sm:$0xff]  ;;  %v1164_v35 = vld [vmem:[#allocation8] sm:$0xff]  ;;  %v1303_v50 = vld [vmem:[#allocation11 + $0x1e8] sm:$0xff] }
 0x30f   : > { %v1032_v54 = vsel %vm1029_vm9, %v1031_v49, %v1027_v51  ;;  %v1048_v55 = vmul.f32 %v2988_v17, %v1018_v53  ;;  %vm1040_vm12 = vmor %vm1038_vm11, %vm1039_vm10  ;;  %v1302_v49 = vld [vmem:[#allocation11 + $0x1e0] sm:$0xff]  ;;  %v1304_v51 = vld [vmem:[#allocation11 + $0x1f0] sm:$0xff] }
 0x310   : > { %v1035_v56 = vsub.f32 1.0, %v1034_v52  ;;  %v849_v57 = vpop.permute.xlu0 %848  ;;  %v1049_v58 = vmul.f32 %v2990_v18, %v1032_v54  ;;  %1316 = vmatpush.msrb.mxu0 %v1302_v49  ;;  %v1305_v52 = vld [vmem:[#allocation11 + $0x1f8] sm:$0xff]  ;;  %v1298_v53 = vld [vmem:[#allocation11 + $0x1c0] sm:$0xff]  ;;  %v1299_v54 = vld [vmem:[#allocation11 + $0x1c8] sm:$0xff] }
 0x311   : > { %1096 = vmatpush.msrb.mxu1 %v849_v57  ;;  %1052 = vst.msk [vmem:[%s3776_s15 + $0x8] sm:$0xff] %vm954_vm1, %v1048_v55  ;;  %v1252_v49 = vld [vmem:[#allocation11 + $0x50] sm:$0xff] }
 0x312   : > { %v1036_v60 = vmul.f32 %v3000_v48, %v1035_v56  ;;  %2787 = vmatmul.msk.f32.vlgmr.msrb.gmra.mxu1 %vm954_vm1, %v1048_v55  ;;  %1053 = vst.msk [vmem:[%s3776_s15 + $0x10] sm:$0xff] %vm954_vm1, %v1049_v58  ;;  %v1300_v55 = vld [vmem:[#allocation11 + $0x1d0] sm:$0xff]  ;;  %v1301_v56 = vld [vmem:[#allocation11 + $0x1d8] sm:$0xff]  ;;  %1317 = vmatpush.msrb.mxu0 %v1298_v53 }
 0x313   : > { %1119 = vmatpush.msra.mxu1 %v852_v62  ;;  %v1248_v53 = vld [vmem:[#allocation11 + $0x30] sm:$0xff] }
 0x314   : > { %v1037_v63 = vadd.f32 %v3000_v48, %v1036_v60 }
 0x315   : > { %1336 = vmatpush.msrb.mxu1 %v1303_v50  ;;  %v1253_v50 = vld [vmem:[#allocation11 + $0x58] sm:$0xff] }
 0x316   : > { %v1041_v1 = vsel %vm1040_vm12, %v3000_v48, %v1037_v63  ;;  %v3466_v48 = vmov 128.0  }
 0x317   : > { %v1046_v2 = vsel %vm1043_vm13, %v1045_v0, %v1041_v1  ;;  %1337 = vmatpush.msrb.mxu1 %v1299_v54  ;;  %v1249_v54 = vld [vmem:[#allocation11 + $0x38] sm:$0xff] }
 0x318   : > { %v1050_v3 = vmul.f32 %v3762_v22, %v1046_v2  ;;  %v1177_v22 = vld [vmem:[#allocation8 + $0x68] sm:$0xff] }
 0x319   : > { %1186 = vmatpush.msrb.mxu3 %v1177_v22  ;;  %v1294_v2 = vld [vmem:[#allocation11 + $0x1a0] sm:$0xff] }
 0x31a   : > { %2788 = vmatmul.msk.f32.vlgmr.msra.gmra.mxu1 %vm954_vm1, %v1049_v58  ;;  %1054 = vst.msk [vmem:[%s3776_s15 + $0x18] sm:$0xff] %vm954_vm1, %v1050_v3  ;;  %1318 = vmatpush.msrb.mxu0 %v1294_v2  ;;  %v1274_v22 = vld [vmem:[#allocation11 + $0x100] sm:$0xff]  ;;  %v1429_v2 = vld [vmem:[#allocation14 + $0xe8] sm:$0xff] }
 0x31b   : > { %1187 = vmatpush.msrb.mxu3 %v1176_v23  ;;  %v1275_v23 = vld [vmem:[#allocation11 + $0x108] sm:$0xff] }
 0x31d   : > { %1188 = vmatpush.msrb.mxu3 %v1175_v24  ;;  %v1276_v24 = vld [vmem:[#allocation11 + $0x110] sm:$0xff] }
 0x31e   : > { %v855_v4 = vpop.permute.xlu1 %854 }
 0x31f   : > { %1142 = vmatpush.msrb.mxu2 %v855_v4  ;;  %1189 = vmatpush.msrb.mxu3 %v1174_v25  ;;  %v1296_v4 = vld [vmem:[#allocation11 + $0x1b0] sm:$0xff]  ;;  %v1277_v25 = vld [vmem:[#allocation11 + $0x118] sm:$0xff] }
 0x320   : > { %2789 = vmatmul.msk.f32.vlgmr.msrb.gmra.mxu2 %vm954_vm1, %v1050_v3  ;;  %v1295_v3 = vld [vmem:[#allocation11 + $0x1a8] sm:$0xff] }
 0x321   : > { %1190 = vmatpush.msrb.mxu3 %v1173_v26  ;;  %1356 = vmatpush.msra.mxu2 %v1304_v51  ;;  %v1270_v26 = vld [vmem:[#allocation11 + $0xe0] sm:$0xff] }
 0x322   : > { %1338 = vmatpush.msrb.mxu1 %v1295_v3  ;;  %v1246_v51 = vld [vmem:[#allocation11 + $0x20] sm:$0xff] }
 0x323   : > { %1357 = vmatpush.msra.mxu2 %v1300_v55  ;;  %v1242_v55 = vld [vmem:[#allocation11] sm:$0xff] }
 0x324   : > { %v1447_v3 = vld [vmem:[#allocation14 + $0x178] sm:$0xff] }
 0x325   : > { %1358 = vmatpush.msra.mxu2 %v1296_v4 }
 0x33b   : > { %v981_v5 = vpop.xlane.xlu0 %980 }
 0x33c   : > { %3001 = vrcp.f32 %v981_v5  ;;  %v1002_v9 = vand.u32 2147483648, %v981_v5  ;;  %v1000_v11 = vand.u32 2147483647, %v981_v5  ;;  %vm996_vm15 = vweird.f32 %v981_v5 }
 0x33d   : > { %3003 = vrcp.f32 %v3466_v48  ;;  %v1251_v48 = vld [vmem:[#allocation11 + $0x48] sm:$0xff] }
 0x33e   : > { %v1003_v13 = vor.u32 1.1754944e-38, %v1002_v9  ;;  %vm1001_vm3 = vcmp.eq.f32.partialorder %v1000_v11, 8.507059e+37  ;;  %v1293_v9 = vld [vmem:[#allocation11 + $0x198] sm:$0xff]  ;;  %v1287_v11 = vld [vmem:[#allocation11 + $0x168] sm:$0xff] }
 0x342   : > { %v3002_v6 = vpop.eup %3001 }
 0x343   : > { %v992_v7 = vmul.f32 %v3002_v6, %v981_v5  ;;  %vm997_vm14 = vweird.f32 %v3002_v6  ;;  %v3004_v57 = vpop.eup %3003  ;;  %v1297_v5 = vld [vmem:[#allocation11 + $0x1b8] sm:$0xff] }
 0x344   : > { %vm998_vm2 = vmor %vm996_vm15, %vm997_vm14  ;;  %vm1212_vm6 = vweird.f32 %v3004_v57 }
 0x345   : > { %v993_v8 = vsub.f32 1.0, %v992_v7  ;;  %v1291_v7 = vld [vmem:[#allocation11 + $0x188] sm:$0xff] }
 0x346   : > { %1339 = vmatpush.msrb.mxu1 %v1291_v7  ;;  %v1428_v7 = vld [vmem:[#allocation14 + $0xe0] sm:$0xff] }
 0x347   : > { %v994_v10 = vmul.f32 %v3002_v6, %v993_v8  ;;  %v1292_v8 = vld [vmem:[#allocation11 + $0x190] sm:$0xff] }
 0x348   : > { %1359 = vmatpush.msra.mxu2 %v1292_v8  ;;  %1340 = vmatpush.msrb.mxu1 %v1287_v11  ;;  %v1446_v8 = vld [vmem:[#allocation14 + $0x170] sm:$0xff]  ;;  %v1445_v11 = vld [vmem:[#allocation14 + $0x168] sm:$0xff] }
 0x349   : > { %v995_v12 = vadd.f32 %v3002_v6, %v994_v10  ;;  %v1286_v10 = vld [vmem:[#allocation11 + $0x160] sm:$0xff] }
 0x34b   : > { %v999_v14 = vsel %vm998_vm2, %v3002_v6, %v995_v12  ;;  %v1290_v6 = vld [vmem:[#allocation11 + $0x180] sm:$0xff]  ;;  %v1288_v12 = vld [vmem:[#allocation11 + $0x170] sm:$0xff] }
 0x34c   : > { %v1004_v15 = vsel %vm1001_vm3, %v1003_v13, %v999_v14  ;;  %1319 = vmatpush.msrb.mxu0 %v1290_v6  ;;  %v1289_v13 = vld [vmem:[#allocation11 + $0x178] sm:$0xff]  ;;  %1360 = vmatpush.msra.mxu2 %v1288_v12  ;;  %v1282_v14 = vld [vmem:[#allocation11 + $0x140] sm:$0xff]  ;;  %v1461_v12 = vld [vmem:[#allocation14 + $0x1e8] sm:$0xff] }
 0x34d   : > { %v1047_v16 = vmul.f32 %v3769_v27, %v1004_v15  ;;  %v1172_v27 = vld [vmem:[#allocation8 + $0x40] sm:$0xff]  ;;  %v1283_v15 = vld [vmem:[#allocation11 + $0x148] sm:$0xff] }
 0x34e   : > { %1191 = vmatpush.msrb.mxu3 %v1172_v27  ;;  %1320 = vmatpush.msrb.mxu0 %v1286_v10  ;;  %v1271_v27 = vld [vmem:[#allocation11 + $0xe8] sm:$0xff]  ;;  %v1463_v6 = vld [vmem:[#allocation14 + $0x1f8] sm:$0xff] }
 0x34f   : > { %1051 = vst.msk [vmem:[%s3776_s15] sm:$0xff] %vm954_vm1, %v1047_v16  ;;  %2786 = vmatmul.msk.f32.vlgmr.msra.gmra.mxu3 %vm954_vm1, %v1047_v16  ;;  %v1284_v16 = vld [vmem:[#allocation11 + $0x150] sm:$0xff]  ;;  %1341 = vmatpush.msrb.mxu1 %v1283_v15  ;;  %v1444_v15 = vld [vmem:[#allocation14 + $0x160] sm:$0xff] }
 0x350   : > { %1192 = vmatpush.msrb.mxu3 %v1171_v28  ;;  %1321 = vmatpush.msrb.mxu0 %v1282_v14  ;;  %v1272_v28 = vld [vmem:[#allocation11 + $0xf0] sm:$0xff]  ;;  %v1427_v14 = vld [vmem:[#allocation14 + $0xd8] sm:$0xff] }
 0x351   : > { %1361 = vmatpush.msra.mxu2 %v1284_v16  ;;  %v1460_v16 = vld [vmem:[#allocation14 + $0x1e0] sm:$0xff] }
 0x352   : > { %1193 = vmatpush.msrb.mxu3 %v1170_v29  ;;  %v1273_v29 = vld [vmem:[#allocation11 + $0xf8] sm:$0xff] }
 0x353   : > { %1362 = vmatpush.msra.mxu2 %v1280_v20  ;;  %v1459_v20 = vld [vmem:[#allocation14 + $0x1d8] sm:$0xff] }
 0x354   : > { %1194 = vmatpush.msrb.mxu3 %v1169_v30  ;;  %v1266_v30 = vld [vmem:[#allocation11 + $0xc0] sm:$0xff] }
 0x355   : > { %1363 = vmatpush.msra.mxu2 %v1276_v24  ;;  %v1458_v24 = vld [vmem:[#allocation14 + $0x1d0] sm:$0xff] }
 0x356   : > { %1195 = vmatpush.msrb.mxu3 %v1168_v31  ;;  %v1267_v31 = vld [vmem:[#allocation11 + $0xc8] sm:$0xff] }
 0x357   : > { %1364 = vmatpush.msra.mxu2 %v1272_v28  ;;  %v1441_v28 = vld [vmem:[#allocation14 + $0x148] sm:$0xff] }
 0x358   : > { %1196 = vmatpush.msrb.mxu3 %v1167_v32  ;;  %v1268_v32 = vld [vmem:[#allocation11 + $0xd0] sm:$0xff] }
 0x359   : > { %1365 = vmatpush.msra.mxu2 %v1268_v32  ;;  %v1423_v32 = vld [vmem:[#allocation14 + $0xb8] sm:$0xff] }
 0x35a   : > { %1197 = vmatpush.msrb.mxu3 %v1166_v33  ;;  %v1269_v33 = vld [vmem:[#allocation11 + $0xd8] sm:$0xff] }
 0x35c   : > { %1198 = vmatpush.msrb.mxu3 %v1165_v34  ;;  %v1262_v34 = vld [vmem:[#allocation11 + $0xa0] sm:$0xff] }
 0x35e   : > { %1199 = vmatpush.msrb.mxu3 %v1164_v35  ;;  %v1263_v35 = vld [vmem:[#allocation11 + $0xa8] sm:$0xff] }
 0x360   : > { %1376 = vmatpush.msra.mxu3 %v1305_v52  ;;  %v1247_v52 = vld [vmem:[#allocation11 + $0x28] sm:$0xff] }
 0x362   : > { %1377 = vmatpush.msra.mxu3 %v1301_v56  ;;  %v1243_v56 = vld [vmem:[#allocation11 + $0x8] sm:$0xff] }
 0x364   : > { %1378 = vmatpush.msra.mxu3 %v1297_v5  ;;  %v1412_v5 = vld [vmem:[#allocation14 + $0x60] sm:$0xff] }
 0x366   : > { %1379 = vmatpush.msra.mxu3 %v1293_v9  ;;  %v1462_v9 = vld [vmem:[#allocation14 + $0x1f0] sm:$0xff] }
 0x368   : > { %1380 = vmatpush.msra.mxu3 %v1289_v13  ;;  %v1411_v13 = vld [vmem:[#allocation14 + $0x58] sm:$0xff] }
 0x38f   : > { %v1098_v17 = vpop.f32.mrf.mxu1 }
 0x390   : > { %1148 = vrot.lane.b32.xlu1 %v1098_v17, %s3463_s6  ;;  %v1285_v17 = vld [vmem:[#allocation11 + $0x158] sm:$0xff] }
 0x391   : > { %1381 = vmatpush.msra.mxu3 %v1285_v17  ;;  %v1410_v17 = vld [vmem:[#allocation14 + $0x50] sm:$0xff] }
 0x393   : > { %1382 = vmatpush.msra.mxu3 %v1281_v21  ;;  %v1409_v21 = vld [vmem:[#allocation14 + $0x48] sm:$0xff] }
 0x395   : > { %1383 = vmatpush.msra.mxu3 %v1277_v25  ;;  %v1408_v25 = vld [vmem:[#allocation14 + $0x40] sm:$0xff] }
 0x397   : > { %v1121_v18 = vpop.f32.mrf.mxu1  ;;  %1384 = vmatpush.msra.mxu3 %v1273_v29  ;;  %v1457_v29 = vld [vmem:[#allocation14 + $0x1c8] sm:$0xff] }
 0x398   : > { %1152 = vrot.lane.b32.xlu2 %v1121_v18, %s3465_s19  ;;  %v1278_v18 = vld [vmem:[#allocation11 + $0x120] sm:$0xff] }
 0x399   : > { %1322 = vmatpush.msrb.mxu0 %v1278_v18  ;;  %1385 = vmatpush.msra.mxu3 %v1269_v33  ;;  %v1426_v18 = vld [vmem:[#allocation14 + $0xd0] sm:$0xff]  ;;  %v1440_v33 = vld [vmem:[#allocation14 + $0x140] sm:$0xff] }
 0x39b   : > { %1323 = vmatpush.msrb.mxu0 %v1274_v22  ;;  %v1425_v22 = vld [vmem:[#allocation14 + $0xc8] sm:$0xff] }
 0x39d   : > { %1324 = vmatpush.msrb.mxu0 %v1270_v26  ;;  %v1424_v26 = vld [vmem:[#allocation14 + $0xc0] sm:$0xff] }
 0x39f   : > { %1325 = vmatpush.msrb.mxu0 %v1266_v30 }
 0x3a1   : > { %1326 = vmatpush.msrb.mxu0 %v1262_v34  ;;  %v1456_v34 = vld [vmem:[#allocation14 + $0x1c0] sm:$0xff] }
 0x3a3   : > { %v1144_v19 = vpop.f32.mrf.mxu2 }
 0x3a4   : > { %1156 = vrot.lane.b32.xlu1 %v1144_v19, %s3464_s8  ;;  %v1279_v19 = vld [vmem:[#allocation11 + $0x128] sm:$0xff] }
 0x3a5   : > { %1342 = vmatpush.msrb.mxu1 %v1279_v19  ;;  %v1443_v19 = vld [vmem:[#allocation14 + $0x158] sm:$0xff] }
 0x3a7   : > { %1343 = vmatpush.msrb.mxu1 %v1275_v23  ;;  %v1442_v23 = vld [vmem:[#allocation14 + $0x150] sm:$0xff] }
 0x3a9   : > { %1344 = vmatpush.msrb.mxu1 %v1271_v27 }
 0x3ab   : > { %1345 = vmatpush.msrb.mxu1 %v1267_v31  ;;  %v1407_v31 = vld [vmem:[#allocation14 + $0x38] sm:$0xff] }
 0x3ad   : > { %1346 = vmatpush.msrb.mxu1 %v1263_v35 }
 0x3d2   : > { %v1075_v37 = vpop.f32.mrf.mxu3 }
 0x3f2   : > { %v1153_v39 = vpop.permute.xlu2 %1152 }
 0x402   : > { %v1149_v36 = vpop.permute.xlu1 %1148 }
 0x403   : > { %v1159_v38 = vsel %vm857_vm0, %v1075_v37, %v1149_v36  ;;  %v1264_v36 = vld [vmem:[#allocation11 + $0xb0] sm:$0xff]  ;;  %v1265_v37 = vld [vmem:[#allocation11 + $0xb8] sm:$0xff] }
 0x404   : > { %v1161_v42 = vsel %vm1160_vm4, %v1159_v38, %v1153_v39  ;;  %1366 = vmatpush.msra.mxu2 %v1264_v36  ;;  %1386 = vmatpush.msra.mxu3 %v1265_v37  ;;  %v1258_v38 = vld [vmem:[#allocation11 + $0x80] sm:$0xff]  ;;  %v1259_v39 = vld [vmem:[#allocation11 + $0x88] sm:$0xff]  ;;  %v1406_v36 = vld [vmem:[#allocation14 + $0x30] sm:$0xff] }
 0x405   : > { %1327 = vmatpush.msrb.mxu0 %v1258_v38  ;;  %1347 = vmatpush.msrb.mxu1 %v1259_v39  ;;  %v1422_v37 = vld [vmem:[#allocation14 + $0xb0] sm:$0xff]  ;;  %v1439_v38 = vld [vmem:[#allocation14 + $0x138] sm:$0xff] }
 0x406   : > { %v1455_v39 = vld [vmem:[#allocation14 + $0x1b8] sm:$0xff] }
 0x416   : > { %v1157_v40 = vpop.permute.xlu1 %1156 }
 0x417   : > { %v1163_v43 = vsel %vm1162_vm5, %v1161_v42, %v1157_v40  ;;  %v1260_v40 = vld [vmem:[#allocation11 + $0x90] sm:$0xff]  ;;  %v1261_v42 = vld [vmem:[#allocation11 + $0x98] sm:$0xff] }
 0x418   : > { %1200 = vmatmul.f32.vlgmr.msrb.gmra.mxu3 %v1163_v43  ;;  %1367 = vmatpush.msra.mxu2 %v1260_v40  ;;  %v1254_v43 = vld [vmem:[#allocation11 + $0x60] sm:$0xff] }
 0x419   : > { %1387 = vmatpush.msra.mxu3 %v1261_v42  ;;  %1328 = vmatpush.msrb.mxu0 %v1254_v43  ;;  %v1405_v42 = vld [vmem:[#allocation14 + $0x28] sm:$0xff] }
 0x41a   : > { %v1421_v43 = vld [vmem:[#allocation14 + $0xa8] sm:$0xff] }
 0x49b   : > { %v1201_v45 = vpop.f32.mrf.mxu3 }
 0x49c   : > { %v1202_v46 = vadd.f32 %v2974_v44, %v1201_v45  ;;  %v1255_v44 = vld [vmem:[#allocation11 + $0x68] sm:$0xff]  ;;  %v1256_v45 = vld [vmem:[#allocation11 + $0x70] sm:$0xff] }
 0x49d   : > { %1348 = vmatpush.msrb.mxu1 %v1255_v44  ;;  %1368 = vmatpush.msra.mxu2 %v1256_v45  ;;  %v1438_v44 = vld [vmem:[#allocation14 + $0x130] sm:$0xff] }
 0x49e   : > { %v1204_v47 = vadd.f32 %v1202_v46, %v3737_v41  ;;  %v1208_v41 = vmul.f32 128.0, %v3004_v57  ;;  %v1257_v46 = vld [vmem:[#allocation11 + $0x78] sm:$0xff] }
 0x49f   : > { %1388 = vmatpush.msra.mxu3 %v1257_v46  ;;  %1349 = vmatpush.msrb.mxu1 %v1251_v48  ;;  %v1454_v45 = vld [vmem:[#allocation14 + $0x1b0] sm:$0xff]  ;;  %v1420_v48 = vld [vmem:[#allocation14 + $0xa0] sm:$0xff] }
 0x4a0   : > { %1205 = vadd.xlane.f32.xlu2 %v1204_v47  ;;  %v1209_v58 = vsub.f32 1.0, %v1208_v41  ;;  %1369 = vmatpush.msra.mxu2 %v1252_v49  ;;  %v1245_v41 = vld [vmem:[#allocation11 + $0x18] sm:$0xff] }
 0x4a1   : > { %1389 = vmatpush.msra.mxu3 %v1253_v50  ;;  %1350 = vmatpush.msrb.mxu1 %v1247_v52  ;;  %v1403_v50 = vld [vmem:[#allocation14 + $0x18] sm:$0xff]  ;;  %v2975_v52 = vld [vmem:[%s4079_s5] ss:$0 sm:$0xff] }
 0x4a2   : > { %v1210_v59 = vmul.f32 %v3004_v57, %v1209_v58  ;;  %1370 = vmatpush.msra.mxu2 %v1248_v53  ;;  %v1415_v58 = vld [vmem:[#allocation14 + $0x78] sm:$0xff] }
 0x4a3   : > { %1390 = vmatpush.msra.mxu3 %v1249_v54  ;;  %1351 = vmatpush.msrb.mxu1 %v1243_v56 }
 0x4a4   : > { %v1211_v60 = vadd.f32 %v3004_v57, %v1210_v59  ;;  %v1431_v59 = vld [vmem:[#allocation14 + $0xf8] sm:$0xff] }
 0x4a5   : > { %1391 = vmatpush.msra.mxu3 %v1245_v41  ;;  %1488 = vmatpush.msra.mxu1 %v1431_v59  ;;  %v1402_v41 = vld [vmem:[#allocation14 + $0x10] sm:$0xff]  ;;  %v1437_v59 = vld [vmem:[#allocation14 + $0x128] sm:$0xff] }
 0x4a6   : > { %v3802_v61 = vsel %vm1212_vm6, %v3004_v57, %v1211_v60  ;;  %v1244_v57 = vld [vmem:[#allocation11 + $0x10] sm:$0xff]  ;;  %v1414_v60 = vld [vmem:[#allocation14 + $0x70] sm:$0xff] }
 0x4a7   : > { %1371 = vmatpush.msra.mxu2 %v1244_v57  ;;  %1528 = vmatpush.msrb.mxu3 %v1463_v6  ;;  %v1434_v6 = vld [vmem:[#allocation14 + $0x110] sm:$0xff] }
 0x4a9   : > { %1508 = vmatpush.msrb.mxu2 %v1447_v3  ;;  %1529 = vmatpush.msrb.mxu3 %v1462_v9  ;;  %v1416_v3 = vld [vmem:[#allocation14 + $0x80] sm:$0xff]  ;;  %v1449_v9 = vld [vmem:[#allocation14 + $0x188] sm:$0xff] }
 0x4ab   : > { %1509 = vmatpush.msrb.mxu2 %v1446_v8  ;;  %1530 = vmatpush.msrb.mxu3 %v1461_v12  ;;  %v1433_v8 = vld [vmem:[#allocation14 + $0x108] sm:$0xff]  ;;  %v1306_v12 = vld [vmem:[#allocation13] sm:$0xf] }
 0x4ad   : > { %1510 = vmatpush.msrb.mxu2 %v1445_v11  ;;  %1531 = vmatpush.msrb.mxu3 %v1460_v16  ;;  %v1448_v11 = vld [vmem:[#allocation14 + $0x180] sm:$0xff] }
 0x4af   : > { %1511 = vmatpush.msrb.mxu2 %v1444_v15  ;;  %1532 = vmatpush.msrb.mxu3 %v1459_v20 }
 0x4b1   : > { %1512 = vmatpush.msrb.mxu2 %v1443_v19  ;;  %1533 = vmatpush.msrb.mxu3 %v1458_v24 }
 0x4b3   : > { %1513 = vmatpush.msrb.mxu2 %v1442_v23  ;;  %1534 = vmatpush.msrb.mxu3 %v1457_v29  ;;  %v2977_v29 = vld [vmem:[%s4080_s10] ss:$0 sm:$0xff] }
 0x4b5   : > { %1514 = vmatpush.msrb.mxu2 %v1441_v28  ;;  %1535 = vmatpush.msrb.mxu3 %v1456_v34 }
 0x4b7   : > { %1515 = vmatpush.msrb.mxu2 %v1440_v33  ;;  %1536 = vmatpush.msrb.mxu3 %v1455_v39  ;;  %v1625_v39 = vld [vmem:[#allocation5 + $0x2e8] sm:$0xff] }
 0x4b9   : > { %1516 = vmatpush.msrb.mxu2 %v1439_v38  ;;  %1537 = vmatpush.msrb.mxu3 %v1454_v45  ;;  %v1624_v45 = vld [vmem:[#allocation5 + $0x2e0] sm:$0xff] }
 0x4bb   : > { %1517 = vmatpush.msrb.mxu2 %v1438_v44  ;;  %v1623_v44 = vld [vmem:[#allocation5 + $0x2d8] sm:$0xff] }
 0x4bd   : > { %1518 = vmatpush.msrb.mxu2 %v1437_v59  ;;  %v1611_v59 = vld [vmem:[#allocation5 + $0x278] sm:$0xff] }
 0x513   : > { %v1206_v62 = vpop.xlane.xlu2 %1205 }
 0x514   : > { %v1214_v63 = vmul.f32 %v3802_v61, %v1206_v62  ;;  %v1430_v62 = vld [vmem:[#allocation14 + $0xf0] sm:$0xff] }
 0x515   : > { %1489 = vmatpush.msra.mxu1 %v1430_v62  ;;  %v1417_v62 = vld [vmem:[#allocation14 + $0x88] sm:$0xff] }
 0x516   : > { %v3805_v0 = vsub.f32 %v1204_v47, %v1214_v63  ;;  %v1250_v47 = vld [vmem:[#allocation11 + $0x40] sm:$0xff] }
 0x517   : > { %1329 = vmatpush.msrb.mxu0 %v1250_v47  ;;  %1490 = vmatpush.msra.mxu1 %v1429_v2  ;;  %v1404_v47 = vld [vmem:[#allocation14 + $0x20] sm:$0xff] }
 0x518   : > { %v1216_v1 = vmul.f32 %v3805_v0, %v3805_v0  ;;  %v1400_v2 = vld [vmem:[#allocation14] sm:$0xff] }
 0x519   : > { %1330 = vmatpush.msrb.mxu0 %v1246_v51  ;;  %1491 = vmatpush.msra.mxu1 %v1428_v7  ;;  %v1419_v51 = vld [vmem:[#allocation14 + $0x98] sm:$0xff]  ;;  %v1450_v7 = vld [vmem:[#allocation14 + $0x190] sm:$0xff] }
 0x51a   : > { %1217 = vadd.xlane.f32.xlu1 %v1216_v1  ;;  %v1413_v1 = vld [vmem:[#allocation14 + $0x68] sm:$0xff] }
 0x51b   : > { %1331 = vmatpush.msrb.mxu0 %v1242_v55  ;;  %1492 = vmatpush.msra.mxu1 %v1427_v14  ;;  %v2976_v55 = vld [vmem:[#allocation10] ss:$0 sm:$0xff]  ;;  %v1309_v14 = vperm.slane %v1306_v12, 1 }
 0x51d   : > { %1468 = vmatpush.msra.mxu0 %v1415_v58  ;;  %1493 = vmatpush.msra.mxu1 %v1426_v18  ;;  %v1418_v58 = vld [vmem:[#allocation14 + $0x90] sm:$0xff] }
 0x51f   : > { %1469 = vmatpush.msra.mxu0 %v1414_v60  ;;  %1494 = vmatpush.msra.mxu1 %v1425_v22  ;;  %v1401_v60 = vld [vmem:[#allocation14 + $0x8] sm:$0xff]  ;;  %v1311_v22 = vperm.slane %v1306_v12, 3 }
 0x521   : > { %1470 = vmatpush.msra.mxu0 %v1413_v1  ;;  %1495 = vmatpush.msra.mxu1 %v1424_v26  ;;  %v1452_v1 = vld [vmem:[#allocation14 + $0x1a0] sm:$0xff] }
 0x523   : > { %1471 = vmatpush.msra.mxu0 %v1412_v5  ;;  %1496 = vmatpush.msra.mxu1 %v1423_v32  ;;  %v1451_v5 = vld [vmem:[#allocation14 + $0x198] sm:$0xff] }
 0x525   : > { %1472 = vmatpush.msra.mxu0 %v1411_v13  ;;  %1497 = vmatpush.msra.mxu1 %v1422_v37  ;;  %v1308_v13 = vperm.slane %v1306_v12, 0 }
 0x527   : > { %1473 = vmatpush.msra.mxu0 %v1410_v17  ;;  %1498 = vmatpush.msra.mxu1 %v1421_v43  ;;  %v1622_v43 = vld [vmem:[#allocation5 + $0x2d0] sm:$0xff] }
 0x529   : > { %1474 = vmatpush.msra.mxu0 %v1409_v21  ;;  %1499 = vmatpush.msra.mxu1 %v1420_v48  ;;  %v1310_v21 = vperm.slane %v1306_v12, 2  ;;  %v1597_v12 = vld [vmem:[#allocation5 + $0x208] sm:$0xff] }
 0x52b   : > { %1475 = vmatpush.msra.mxu0 %v1408_v25  ;;  %1500 = vmatpush.msra.mxu1 %v1419_v51  ;;  %v1620_v51 = vld [vmem:[#allocation5 + $0x2c0] sm:$0xff] }
 0x52d   : > { %1476 = vmatpush.msra.mxu0 %v1407_v31  ;;  %1501 = vmatpush.msra.mxu1 %v1418_v58  ;;  %v1610_v58 = vld [vmem:[#allocation5 + $0x270] sm:$0xff] }
 0x52f   : > { %1477 = vmatpush.msra.mxu0 %v1406_v36  ;;  %1502 = vmatpush.msra.mxu1 %v1417_v62  ;;  %v1608_v62 = vld [vmem:[#allocation5 + $0x260] sm:$0xff] }
 0x531   : > { %1478 = vmatpush.msra.mxu0 %v1405_v42  ;;  %1503 = vmatpush.msra.mxu1 %v1416_v3  ;;  %v1627_v42 = vld [vmem:[#allocation5 + $0x2f8] sm:$0xff]  ;;  %v1606_v3 = vld [vmem:[#allocation5 + $0x250] sm:$0xff] }
 0x533   : > { %1479 = vmatpush.msra.mxu0 %v1404_v47 }
 0x535   : > { %1480 = vmatpush.msra.mxu0 %v1403_v50  ;;  %v1619_v50 = vld [vmem:[#allocation5 + $0x2b8] sm:$0xff] }
 0x537   : > { %1481 = vmatpush.msra.mxu0 %v1402_v41  ;;  %v1615_v41 = vld [vmem:[#allocation5 + $0x298] sm:$0xff] }
 0x539   : > { %1482 = vmatpush.msra.mxu0 %v1401_v60  ;;  %v1607_v60 = vld [vmem:[#allocation5 + $0x258] sm:$0xff] }
 0x53b   : > { %1483 = vmatpush.msra.mxu0 %v1400_v2  ;;  %v1605_v2 = vld [vmem:[#allocation5 + $0x248] sm:$0xff] }
 0x58d   : > { %v1218_v63 = vpop.xlane.xlu1 %1217 }
 0x58e   : > { %v1219_v4 = vmul.f32 %v1218_v63, %v3802_v61  ;;  %v1436_v63 = vld [vmem:[#allocation14 + $0x120] sm:$0xff] }
 0x58f   : > { %1519 = vmatpush.msrb.mxu2 %v1436_v63  ;;  %v1609_v63 = vld [vmem:[#allocation5 + $0x268] sm:$0xff] }
 0x590   : > { %v3810_v10 = vadd.f32 1e-05, %v1219_v4  ;;  %v1435_v4 = vld [vmem:[#allocation14 + $0x118] sm:$0xff] }
 0x591   : > { %1520 = vmatpush.msrb.mxu2 %v1435_v4  ;;  %v1601_v4 = vld [vmem:[#allocation5 + $0x228] sm:$0xff] }
 0x592   : > { %3005 = vrsqrt.f32 %v3810_v10  ;;  %vm1227_vm8 = vweird.f32 %v3810_v10 }
 0x593   : > { %1521 = vmatpush.msrb.mxu2 %v1434_v6  ;;  %v1603_v6 = vld [vmem:[#allocation5 + $0x238] sm:$0xff] }
 0x595   : > { %1522 = vmatpush.msrb.mxu2 %v1433_v8  ;;  %v1599_v8 = vld [vmem:[#allocation5 + $0x218] sm:$0xff] }
 0x598   : > { %v3006_v27 = vpop.eup %3005 }
 0x599   : > { %v1222_v30 = vmul.f32 %v3006_v27, %v3810_v10  ;;  %vm1228_vm7 = vweird.f32 %v3006_v27  ;;  %v1432_v10 = vld [vmem:[#allocation14 + $0x100] sm:$0xff] }
 0x59a   : > { %vm1229_vm9 = vmor %vm1227_vm8, %vm1228_vm7  ;;  %1523 = vmatpush.msrb.mxu2 %v1432_v10  ;;  %v1595_v10 = vld [vmem:[#allocation5 + $0x1f8] sm:$0xff] }
 0x59b   : > { %v1223_v35 = vmul.f32 %v3006_v27, %v1222_v30 }
 0x59d   : > { %v1224_v40 = vmul.f32 0.5, %v1223_v35 }
 0x59f   : > { %v1225_v46 = vsub.f32 1.5, %v1224_v40  ;;  %v1626_v40 = vld [vmem:[#allocation5 + $0x2f0] sm:$0xff] }
 0x5a1   : > { %v1226_v49 = vmul.f32 %v3006_v27, %v1225_v46 }
 0x5a3   : > { %v1230_v53 = vsel %vm1229_vm9, %v3006_v27, %v1226_v49 }
 0x5a4   : > { %v1231_v54 = vmul.f32 %v1230_v53, %v3805_v0  ;;  %v1453_v0 = vld [vmem:[#allocation14 + $0x1a8] sm:$0xff]  ;;  %v1616_v53 = vld [vmem:[#allocation5 + $0x2a0] sm:$0xff] }
 0x5a5   : > { %1538 = vmatpush.msrb.mxu3 %v1453_v0  ;;  %v1612_v0 = vld [vmem:[#allocation5 + $0x280] sm:$0xff] }
 0x5a6   : > { %v1236_v56 = vmul.f32 %v2975_v52, %v1231_v54  ;;  %v1621_v52 = vld [vmem:[#allocation5 + $0x2c8] sm:$0xff] }
 0x5a7   : > { %1539 = vmatpush.msrb.mxu3 %v1452_v1  ;;  %v1617_v54 = vld [vmem:[#allocation5 + $0x2a8] sm:$0xff]  ;;  %v1604_v1 = vld [vmem:[#allocation5 + $0x240] sm:$0xff] }
 0x5a8   : > { %v3819_v57 = vadd.f32 %v2976_v55, %v1236_v56  ;;  %v1618_v55 = vld [vmem:[#allocation5 + $0x2b0] sm:$0xff]  ;;  %v1613_v56 = vld [vmem:[#allocation5 + $0x288] sm:$0xff] }
 0x5a9   : > { %1540 = vmatpush.msrb.mxu3 %v1451_v5  ;;  %v1602_v5 = vld [vmem:[#allocation5 + $0x230] sm:$0xff] }
 0x5aa   : > { %1332 = vmatmul.f32.vlgmr.msrb.gmra.mxu0 %v3819_v57  ;;  %1352 = vmatmul.f32.vlgmr.msrb.gmra.mxu1 %v3819_v57 }
 0x5ab   : > { %1372 = vmatmul.f32.vlgmr.msra.gmra.mxu2 %v3819_v57  ;;  %1392 = vmatmul.f32.vlgmr.msra.gmra.mxu3 %v3819_v57 }
 0x5ac   : > { %1541 = vmatpush.msrb.mxu3 %v1450_v7  ;;  %1637 = vmatpush.msrb.mxu0 %v1625_v39  ;;  %v1598_v7 = vld [vmem:[#allocation5 + $0x210] sm:$0xff] }
 0x5ad   : > { %1657 = vmatpush.msrb.mxu1 %v1626_v40  ;;  %1677 = vmatpush.msra.mxu2 %v1627_v42  ;;  %v2979_v40 = vld [vmem:[%s4082_s29] ss:$0 sm:$0xff] }
 0x5ae   : > { %1542 = vmatpush.msrb.mxu3 %v1449_v9  ;;  %1638 = vmatpush.msrb.mxu0 %v1622_v43  ;;  %v1600_v9 = vld [vmem:[#allocation5 + $0x220] sm:$0xff] }
 0x5af   : > { %1658 = vmatpush.msrb.mxu1 %v1623_v44  ;;  %1678 = vmatpush.msra.mxu2 %v1624_v45  ;;  %v1629_v44 = vld [vmem:[#allocation7 + $0x3] sm:$0x7] }
 0x5b0   : > { %1543 = vmatpush.msrb.mxu3 %v1448_v11  ;;  %1639 = vmatpush.msrb.mxu0 %v1619_v50  ;;  %v1596_v11 = vld [vmem:[#allocation5 + $0x200] sm:$0xff]  ;;  %v1631_v45 = vperm.slane %v1629_v44, 0 }
 0x5b1   : > { %1659 = vmatpush.msrb.mxu1 %v1620_v51  ;;  %1679 = vmatpush.msra.mxu2 %v1621_v52  ;;  %v1633_v51 = vperm.slane %v1629_v44, 2 }
 0x5b2   : > { %1640 = vmatpush.msrb.mxu0 %v1616_v53 }
 0x5b3   : > { %1660 = vmatpush.msrb.mxu1 %v1617_v54  ;;  %1680 = vmatpush.msra.mxu2 %v1618_v55 }
 0x5b4   : > { %1641 = vmatpush.msrb.mxu0 %v1613_v56 }
 0x5b5   : > { %1681 = vmatpush.msra.mxu2 %v1615_v41 }
 0x5b6   : > { %1642 = vmatpush.msrb.mxu0 %v1610_v58 }
 0x5b7   : > { %1682 = vmatpush.msra.mxu2 %v1612_v0 }
 0x5b8   : > { %1643 = vmatpush.msrb.mxu0 %v1607_v60 }
 0x5b9   : > { %1683 = vmatpush.msra.mxu2 %v1609_v63 }
 0x5ba   : > { %1644 = vmatpush.msrb.mxu0 %v1604_v1 }
 0x5bb   : > { %1684 = vmatpush.msra.mxu2 %v1606_v3 }
 0x5bc   : > { %1645 = vmatpush.msrb.mxu0 %v1601_v4 }
 0x5bd   : > { %1685 = vmatpush.msra.mxu2 %v1603_v6 }
 0x5be   : > { %1646 = vmatpush.msrb.mxu0 %v1598_v7 }
 0x5bf   : > { %1686 = vmatpush.msra.mxu2 %v1600_v9 }
 0x5c0   : > { %1647 = vmatpush.msrb.mxu0 %v1595_v10 }
 0x5c1   : > { %1687 = vmatpush.msra.mxu2 %v1597_v12 }
 0x627   : > { %v1333_v15 = vpop.f32.mrf.mxu0  ;;  %v1353_v16 = vpop.f32.mrf.mxu1 }
 0x628   : > { %v1334_v17 = vadd.f32 %v1333_v15, %v1308_v13  ;;  %v1354_v18 = vadd.f32 %v1353_v16, %v1309_v14  ;;  %v1592_v13 = vld [vmem:[#allocation5 + $0x1e0] sm:$0xff]  ;;  %v1593_v14 = vld [vmem:[#allocation5 + $0x1e8] sm:$0xff]  ;;  %v1594_v15 = vld [vmem:[#allocation5 + $0x1f0] sm:$0xff] }
 0x629   : > { %1648 = vmatpush.msrb.mxu0 %v1592_v13  ;;  %1688 = vmatpush.msra.mxu2 %v1594_v15  ;;  %v1589_v16 = vld [vmem:[#allocation5 + $0x1c8] sm:$0xff] }
 0x62a   : > { %v1396_v19 = vmax.f32 %v1334_v17, 0.0  ;;  %v1397_v20 = vmax.f32 %v1354_v18, 0.0  ;;  %v1590_v17 = vld [vmem:[#allocation5 + $0x1d0] sm:$0xff]  ;;  %v1591_v18 = vld [vmem:[#allocation5 + $0x1d8] sm:$0xff] }
 0x62b   : > { %1649 = vmatpush.msrb.mxu0 %v1589_v16  ;;  %1689 = vmatpush.msra.mxu2 %v1591_v18 }
 0x62c   : > { %1484 = vmatmul.f32.vlgmr.msra.gmra.mxu0 %v1396_v19  ;;  %1504 = vmatmul.f32.vlgmr.msra.gmra.mxu1 %v1397_v20  ;;  %v1586_v19 = vld [vmem:[#allocation5 + $0x1b0] sm:$0xff]  ;;  %v1587_v20 = vld [vmem:[#allocation5 + $0x1b8] sm:$0xff] }
 0x62d   : > { %1650 = vmatpush.msrb.mxu0 %v1586_v19 }
 0x62e   : > { %v1373_v23 = vpop.f32.mrf.mxu2  ;;  %v1393_v24 = vpop.f32.mrf.mxu3 }
 0x62f   : > { %v1374_v25 = vadd.f32 %v1373_v23, %v1310_v21  ;;  %v1394_v26 = vadd.f32 %v1393_v24, %v1311_v22  ;;  %v1588_v21 = vld [vmem:[#allocation5 + $0x1c0] sm:$0xff]  ;;  %v1583_v22 = vld [vmem:[#allocation5 + $0x198] sm:$0xff]  ;;  %v1585_v24 = vld [vmem:[#allocation5 + $0x1a8] sm:$0xff] }
 0x630   : > { %v1584_v23 = vld [vmem:[#allocation5 + $0x1a0] sm:$0xff]  ;;  %1690 = vmatpush.msra.mxu2 %v1588_v21  ;;  %1651 = vmatpush.msrb.mxu0 %v1583_v22 }
 0x631   : > { %v1398_v27 = vmax.f32 %v1374_v25, 0.0  ;;  %v1399_v28 = vmax.f32 %v1394_v26, 0.0  ;;  %v1580_v25 = vld [vmem:[#allocation5 + $0x180] sm:$0xff]  ;;  %v1581_v26 = vld [vmem:[#allocation5 + $0x188] sm:$0xff] }
 0x632   : > { %1691 = vmatpush.msra.mxu2 %v1585_v24  ;;  %1652 = vmatpush.msrb.mxu0 %v1580_v25 }
 0x633   : > { %1524 = vmatmul.f32.vlgmr.msrb.gmra.mxu2 %v1398_v27  ;;  %1544 = vmatmul.f32.vlgmr.msrb.gmra.mxu3 %v1399_v28  ;;  %v1582_v27 = vld [vmem:[#allocation5 + $0x190] sm:$0xff] }
 0x634   : > { %1692 = vmatpush.msra.mxu2 %v1582_v27 }
 0x6a9   : > { %v1485_v30 = vpop.f32.mrf.mxu0  ;;  %v1505_v32 = vpop.f32.mrf.mxu1 }
 0x6aa   : > { %v1486_v31 = vadd.f32 %v2977_v29, %v1485_v30 }
 0x6ac   : > { %v1506_v33 = vadd.f32 %v1505_v32, %v1486_v31 }
 0x6b6   : > { %v1525_v34 = vpop.f32.mrf.mxu2  ;;  %v1545_v36 = vpop.f32.mrf.mxu3 }
 0x6b7   : > { %v1526_v35 = vadd.f32 %v1525_v34, %v1506_v33 }
 0x6b9   : > { %v1546_v37 = vadd.f32 %v1545_v36, %v1526_v35 }
 0x6bb   : > { %v1548_v38 = vadd.f32 %v1546_v37, %v3819_v57  ;;  %v1614_v57 = vld [vmem:[#allocation5 + $0x290] sm:$0xff] }
 0x6bc   : > { %1661 = vmatpush.msrb.mxu1 %v1614_v57  ;;  %v2978_v37 = vld [vmem:[%s4081_s7] ss:$0 sm:$0xff] }
 0x6bd   : > { %1549 = vadd.xlane.f32.xlu0 %v1548_v38 }
 0x6be   : > { %1662 = vmatpush.msrb.mxu1 %v1611_v59 }
 0x6c0   : > { %1663 = vmatpush.msrb.mxu1 %v1608_v62 }
 0x6c2   : > { %1664 = vmatpush.msrb.mxu1 %v1605_v2 }
 0x6c4   : > { %1665 = vmatpush.msrb.mxu1 %v1602_v5 }
 0x6c6   : > { %1666 = vmatpush.msrb.mxu1 %v1599_v8 }
 0x6c8   : > { %1667 = vmatpush.msrb.mxu1 %v1596_v11 }
 0x6ca   : > { %1668 = vmatpush.msrb.mxu1 %v1593_v14 }
 0x6cc   : > { %1669 = vmatpush.msrb.mxu1 %v1590_v17 }
 0x6ce   : > { %1670 = vmatpush.msrb.mxu1 %v1587_v20 }
 0x6d0   : > { %1671 = vmatpush.msrb.mxu1 %v1584_v23 }
 0x6d2   : > { %1672 = vmatpush.msrb.mxu1 %v1581_v26 }
 0x730   : > { %v1550_v46 = vpop.xlane.xlu0 %1549 }
 0x731   : > { %v1551_v47 = vmul.f32 %v1550_v46, %v3802_v61  ;;  %v1632_v46 = vperm.slane %v1629_v44, 1 }
 0x733   : > { %v3830_v48 = vsub.f32 %v1548_v38, %v1551_v47 }
 0x735   : > { %v1553_v49 = vmul.f32 %v3830_v48, %v3830_v48 }
 0x737   : > { %1554 = vadd.xlane.f32.xlu0 %v1553_v49 }
 0x7aa   : > { %v1555_v28 = vpop.xlane.xlu0 %1554 }
 0x7ab   : > { %v1556_v29 = vmul.f32 %v1555_v28, %v3802_v61 }
 0x7ad   : > { %v1557_v30 = vadd.f32 1e-05, %v1556_v29 }
 0x7af   : > { %3007 = vrsqrt.f32 %v1557_v30  ;;  %vm1564_vm11 = vweird.f32 %v1557_v30 }
 0x7b5   : > { %v3008_v31 = vpop.eup %3007 }
 0x7b6   : > { %v1559_v32 = vmul.f32 %v3008_v31, %v1557_v30  ;;  %vm1565_vm10 = vweird.f32 %v3008_v31 }
 0x7b7   : > { %vm1566_vm12 = vmor %vm1564_vm11, %vm1565_vm10 }
 0x7b8   : > { %v1560_v33 = vmul.f32 %v3008_v31, %v1559_v32 }
 0x7ba   : > { %v1561_v34 = vmul.f32 0.5, %v1560_v33 }
 0x7bc   : > { %v1562_v35 = vsub.f32 1.5, %v1561_v34 }
 0x7be   : > { %v1563_v36 = vmul.f32 %v3008_v31, %v1562_v35 }
 0x7c0   : > { %v1567_v38 = vsel %vm1566_vm12, %v3008_v31, %v1563_v36 }
 0x7c1   : > { %v1568_v39 = vmul.f32 %v1567_v38, %v3830_v48 }
 0x7c3   : > { %v1573_v42 = vmul.f32 %v2978_v37, %v1568_v39 }
 0x7c5   : > { %v3842_v43 = vadd.f32 %v2979_v40, %v1573_v42 }
 0x7c7   : > { %1653 = vmatmul.f32.vlgmr.msrb.gmra.mxu0 %v3842_v43  ;;  %1673 = vmatmul.f32.vlgmr.msrb.gmra.mxu1 %v3842_v43 }
 0x7c8   : > { %1693 = vmatmul.f32.vlgmr.msra.gmra.mxu2 %v3842_v43 }
 0x844   : > { %v1654_v47 = vpop.f32.mrf.mxu0  ;;  %v1674_v49 = vpop.f32.mrf.mxu1 }
 0x845   : > { %v1655_v50 = vadd.f32 %v1654_v47, %v1631_v45  ;;  %v1675_v48 = vadd.f32 %v1674_v49, %v1632_v46 }
 0x847   : > { %1705 = vrot.lane.b32.xlu1 %v1675_v48, %s3464_s8  ;;  %1709 = vrot.lane.b32.xlu0 %v1675_v48, %s3463_s6 }
 0x848   : > { %2790 = vmatpush.xpose.msk.msra.mxu3 %vm857_vm0, %v1675_v48  ;;  %1702 = vrot.lane.b32.xlu2 %v1655_v50, %s3463_s6 }
 0x84b   : > { %v1694_v52 = vpop.f32.mrf.mxu2  ;;  %2791 = vmatmul.msk.f32.vlgmr.msra.gmra.mxu3 %vm857_vm0, %v1655_v50 }
 0x84c   : > { %v1695_v53 = vadd.f32 %v1694_v52, %v1633_v51 }
 0x84e   : > { %1935 = vmatpush.msrb.mxu3 %v1695_v53 }
 0x84f   : > { %1698 = vrot.lane.b32.xlu0 %v1655_v50, %s3464_s8 }
 0x850   : > { %1707 = vrot.lane.b32.xlu2 %v1675_v48, %s3465_s19 }
 0x857   : > { %1700 = vrot.lane.b32.xlu0 %v1655_v50, %s3465_s19 }
 0x8a2   : > { %v1703_v54 = vpop.permute.xlu2 %1702 }
 0x8aa   : > { %v1708_v57 = vpop.permute.xlu2 %1707 }
 0x8b9   : > { %v1706_v55 = vpop.permute.xlu1 %1705  ;;  %v1710_v56 = vpop.permute.xlu0 %1709 }
 0x8ba   : > { %2792 = vmatpush.xpose.msk.msra.mxu1 %vm857_vm0, %v1706_v55  ;;  %2796 = vmatpush.xpose.msk.msrb.mxu2 %vm857_vm0, %v1710_v56 }
 0x8bd   : > { %2797 = vmatmul.msk.f32.vlgmr.msrb.gmra.mxu2 %vm857_vm0, %v1703_v54 }
 0x8be   : > { %2794 = vmatpush.xpose.msk.msrb.mxu1 %vm857_vm0, %v1708_v57 }
 0x8c1   : > { %v1699_v41 = vpop.permute.xlu0 %1698 }
 0x8c2   : > { %2793 = vmatmul.msk.f32.vlgmr.msra.gmra.mxu1 %vm857_vm0, %v1699_v41 }
 0x8c9   : > { %v1701_v58 = vpop.permute.xlu0 %1700 }
 0x8ca   : > { %2795 = vmatmul.msk.f32.vlgmr.msrb.gmra.mxu1 %vm857_vm0, %v1701_v58 }
 0x8ce   : > { %v1742_v63 = vpop.f32.mrf.mxu3 }
 0x8cf   : > { %v1817_v3 = vsel %vm954_vm1, %v1742_v63, -inf }
 0x93f   : > { %v1766_v59 = vpop.f32.mrf.mxu1 }
 0x940   : > { %v1814_v0 = vpop.f32.mrf.mxu2  ;;  %v1820_v60 = vsel %vm954_vm1, %v1766_v59, -inf }
 0x941   : > { %1821 = vmax.xlane.f32.xlu2 %v1820_v60  ;;  %v1826_v62 = vsel %vm954_vm1, %v1814_v0, -inf }
 0x942   : > { %1827 = vmax.xlane.f32.xlu1 %v1826_v62 }
 0x947   : > { %v1790_v1 = vpop.f32.mrf.mxu1 }
 0x948   : > { %v1823_v2 = vsel %vm954_vm1, %v1790_v1, -inf }
 0x949   : > { %1824 = vmax.xlane.f32.xlu0 %v1823_v2 }
 0x94a   : > { %1818 = vmax.xlane.f32.xlu1 %v1817_v3 }
 0x9b4   : > { %v1822_v4 = vpop.xlane.xlu2 %1821 }
 0x9b5   : > { %v1830_v5 = vsub.f32 %v1766_v59, %v1822_v4  ;;  %v1828_v6 = vpop.xlane.xlu1 %1827 }
 0x9b6   : > { %v1832_v7 = vsub.f32 %v1814_v0, %v1828_v6 }
 0x9b7   : > { %v1835_v8 = vmul.f32 1.442695, %v1830_v5 }
 0x9b8   : > { %v1839_v9 = vmul.f32 1.442695, %v1832_v7 }
 0x9b9   : > { %3009 = vpow2.f32 %v1835_v8 }
 0x9ba   : > { %3011 = vpow2.f32 %v1839_v9 }
 0x9bc   : > { %v1825_v10 = vpop.xlane.xlu0 %1824 }
 0x9bd   : > { %v1831_v11 = vsub.f32 %v1790_v1, %v1825_v10  ;;  %v1819_v19 = vpop.xlane.xlu1 %1818 }
 0x9be   : > { %v1829_v20 = vsub.f32 %v1742_v63, %v1819_v19  ;;  %v2037_v19 = vld [vmem:[#allocation8 + $0xe0] sm:$0xff] }
 0x9bf   : > { %v3010_v12 = vpop.eup %3009  ;;  %v1837_v13 = vmul.f32 1.442695, %v1831_v11 }
 0x9c0   : > { %v3012_v14 = vpop.eup %3011  ;;  %v1844_v15 = vsel %vm954_vm1, %v3010_v12, 0.0  ;;  %v1833_v21 = vmul.f32 1.442695, %v1829_v20  ;;  %v2036_v20 = vld [vmem:[#allocation8 + $0xd8] sm:$0xff] }
 0x9c1   : > { %3013 = vpow2.f32 %v1837_v13  ;;  %1845 = vadd.xlane.f32.xlu0 %v1844_v15  ;;  %v1850_v16 = vsel %vm954_vm1, %v3012_v14, 0.0 }
 0x9c2   : > { %1851 = vadd.xlane.f32.xlu2 %v1850_v16  ;;  %3015 = vpow2.f32 %v1833_v21  ;;  %v2040_v16 = vld [vmem:[#allocation8 + $0xf8] sm:$0xff]  ;;  %v2035_v21 = vld [vmem:[#allocation8 + $0xd0] sm:$0xff] }
 0x9c3   : > { %2046 = vmatpush.msra.mxu3 %v2040_v16  ;;  %v2128_v16 = vld [vmem:[#allocation11 + $0x2e0] sm:$0xff] }
 0x9c7   : > { %v3867_v17 = vpop.eup %3013 }
 0x9c8   : > { %v1847_v18 = vsel %vm954_vm1, %v3867_v17, 0.0  ;;  %v3874_v22 = vpop.eup %3015 }
 0x9c9   : > { %1848 = vadd.xlane.f32.xlu1 %v1847_v18  ;;  %v1841_v23 = vsel %vm954_vm1, %v3874_v22, 0.0  ;;  %v2038_v18 = vld [vmem:[#allocation8 + $0xe8] sm:$0xff] }
 0x9d5   : > { %1712 = vrot.lane.b32.xlu0 %v1695_v53, %s3464_s8 }
 0x9da   : > { %1718 = vrot.lane.b32.xlu2 %v1695_v53, %s3463_s6 }
 0x9e2   : > { %1715 = vrot.lane.b32.xlu1 %v1695_v53, %s3465_s19 }
 0x9ff   : > { %1842 = vadd.xlane.f32.xlu0 %v1841_v23  ;;  %v2033_v23 = vld [vmem:[#allocation8 + $0xc0] sm:$0xff] }
 0xa34   : > { %v1846_v24 = vpop.xlane.xlu0 %1845 }
 0xa35   : > { %3017 = vrcp.f32 %v1846_v24  ;;  %v1852_v25 = vpop.xlane.xlu2 %1851  ;;  %v1878_v33 = vand.u32 2147483648, %v1846_v24  ;;  %v1876_v36 = vand.u32 2147483647, %v1846_v24  ;;  %vm1872_vm15 = vweird.f32 %v1846_v24 }
 0xa36   : > { %3019 = vrcp.f32 %v1852_v25  ;;  %v1906_v37 = vand.u32 2147483648, %v1852_v25  ;;  %v1904_v39 = vand.u32 2147483647, %v1852_v25  ;;  %vm1900_vm3 = vweird.f32 %v1852_v25 }
 0xa37   : > { %v1879_v44 = vor.u32 1.1754944e-38, %v1878_v33  ;;  %vm1877_vm6 = vcmp.eq.f32.partialorder %v1876_v36, 8.507059e+37 }
 0xa38   : > { %v1907_v47 = vor.u32 1.1754944e-38, %v1906_v37  ;;  %vm1905_vm8 = vcmp.eq.f32.partialorder %v1904_v39, 8.507059e+37  ;;  %v2980_v39 = vld [vmem:[%s4078_s4 + $0x1] ss:$0 sm:$0xff] }
 0xa3b   : > { %v3018_v26 = vpop.eup %3017 }
 0xa3c   : > { %v3020_v27 = vpop.eup %3019  ;;  %v1868_v28 = vmul.f32 %v3018_v26, %v1846_v24  ;;  %v1849_v29 = vpop.xlane.xlu1 %1848  ;;  %vm1873_vm13 = vweird.f32 %v3018_v26  ;;  %v2032_v24 = vld [vmem:[#allocation8 + $0xb8] sm:$0xff] }
 0xa3d   : > { %v1896_v30 = vmul.f32 %v3020_v27, %v1852_v25  ;;  %3021 = vrcp.f32 %v1849_v29  ;;  %v1719_v31 = vpop.permute.xlu2 %1718  ;;  %vm1901_vm14 = vweird.f32 %v3020_v27  ;;  %vm1874_vm2 = vmor %vm1872_vm15, %vm1873_vm13  ;;  %v1892_v54 = vand.u32 2147483648, %v1849_v29  ;;  %v2031_v25 = vld [vmem:[#allocation8 + $0xb0] sm:$0xff] }
 0xa3e   : > { %v1869_v32 = vsub.f32 1.0, %v1868_v28  ;;  %2004 = vmatpush.msra.mxu2 %v1719_v31  ;;  %vm1902_vm7 = vmor %vm1900_vm3, %vm1901_vm14  ;;  %v1890_v41 = vand.u32 2147483647, %v1849_v29  ;;  %vm1886_vm10 = vweird.f32 %v1849_v29  ;;  %v2028_v28 = vld [vmem:[#allocation8 + $0x98] sm:$0xff]  ;;  %v2025_v31 = vld [vmem:[#allocation8 + $0x80] sm:$0xff] }
 0xa3f   : > { %v1897_v34 = vsub.f32 1.0, %v1896_v30  ;;  %v1893_v59 = vor.u32 1.1754944e-38, %v1892_v54  ;;  %v2026_v30 = vld [vmem:[#allocation8 + $0x88] sm:$0xff] }
 0xa40   : > { %v1870_v35 = vmul.f32 %v3018_v26, %v1869_v32  ;;  %vm1891_vm12 = vcmp.eq.f32.partialorder %v1890_v41, 8.507059e+37  ;;  %v2154_v41 = vld [vmem:[#allocation11 + $0x3b0] sm:$0xff] }
 0xa41   : > { %v1898_v38 = vmul.f32 %v3020_v27, %v1897_v34 }
 0xa42   : > { %v1871_v40 = vadd.f32 %v3018_v26, %v1870_v35 }
 0xa43   : > { %v3022_v42 = vpop.eup %3021  ;;  %v1899_v45 = vadd.f32 %v3020_v27, %v1898_v38 }
 0xa44   : > { %v1875_v46 = vsel %vm1874_vm2, %v3018_v26, %v1871_v40  ;;  %v1882_v49 = vmul.f32 %v3022_v42, %v1849_v29  ;;  %vm1887_vm9 = vweird.f32 %v3022_v42  ;;  %v2030_v26 = vld [vmem:[#allocation8 + $0xa8] sm:$0xff]  ;;  %v2027_v29 = vld [vmem:[#allocation8 + $0x90] sm:$0xff] }
 0xa45   : > { %v1880_v50 = vsel %vm1877_vm6, %v1879_v44, %v1875_v46  ;;  %v1903_v48 = vsel %vm1902_vm7, %v3020_v27, %v1899_v45  ;;  %vm1888_vm11 = vmor %vm1886_vm10, %vm1887_vm9  ;;  %v2029_v27 = vld [vmem:[#allocation8 + $0xa0] sm:$0xff]  ;;  %v2161_v46 = vld [vmem:[#allocation11 + $0x3e8] sm:$0xff] }
 0xa46   : > { %v1908_v51 = vsel %vm1905_vm8, %v1907_v47, %v1903_v48  ;;  %v1883_v52 = vsub.f32 1.0, %v1882_v49  ;;  %v1910_v53 = vmul.f32 %v3010_v12, %v1880_v50  ;;  %v2160_v45 = vld [vmem:[#allocation11 + $0x3e0] sm:$0xff]  ;;  %v2162_v47 = vld [vmem:[#allocation11 + $0x3f0] sm:$0xff]  ;;  %v2163_v49 = vld [vmem:[#allocation11 + $0x3f8] sm:$0xff] }
 0xa47   : > { %v1713_v55 = vpop.permute.xlu0 %1712  ;;  %v1912_v56 = vmul.f32 %v3012_v14, %v1908_v51  ;;  %v2156_v50 = vld [vmem:[#allocation11 + $0x3c0] sm:$0xff]  ;;  %v2157_v48 = vld [vmem:[#allocation11 + $0x3c8] sm:$0xff]  ;;  %2215 = vmatpush.msrb.mxu2 %v2162_v47  ;;  %v2158_v51 = vld [vmem:[#allocation11 + $0x3d0] sm:$0xff] }
 0xa48   : > { %v1884_v57 = vmul.f32 %v3022_v42, %v1883_v52  ;;  %1958 = vmatpush.msra.mxu0 %v1713_v55  ;;  %1914 = vst.msk [vmem:[%s3880_s3 + $0x8] sm:$0xff] %vm954_vm1, %v1910_v53  ;;  %v2159_v52 = vld [vmem:[#allocation11 + $0x3d8] sm:$0xff]  ;;  %v2101_v47 = vld [vmem:[#allocation11 + $0x208] sm:$0xff] }
 0xa49   : > { %2799 = vmatmul.msk.f32.vlgmr.msra.gmra.mxu0 %vm954_vm1, %v1910_v53  ;;  %1916 = vst.msk [vmem:[%s3880_s3 + $0x18] sm:$0xff] %vm954_vm1, %v1912_v56  ;;  %2801 = vmatmul.msk.f32.vlgmr.msra.gmra.mxu2 %vm954_vm1, %v1912_v56  ;;  %v2152_v56 = vld [vmem:[#allocation11 + $0x3a0] sm:$0xff] }
 0xa4a   : > { %v1885_v58 = vadd.f32 %v3022_v42, %v1884_v57  ;;  %2175 = vmatpush.msrb.mxu0 %v2160_v45  ;;  %2216 = vmatpush.msrb.mxu2 %v2158_v51  ;;  %v2153_v57 = vld [vmem:[#allocation11 + $0x3a8] sm:$0xff]  ;;  %v2107_v45 = vld [vmem:[#allocation11 + $0x238] sm:$0xff]  ;;  %v2291_v51 = vld [vmem:[#allocation14 + $0x2f8] sm:$0xff] }
 0xa4c   : > { %v1889_v0 = vsel %vm1888_vm11, %v3022_v42, %v1885_v58  ;;  %2176 = vmatpush.msrb.mxu0 %v2156_v50  ;;  %v2155_v58 = vld [vmem:[#allocation11 + $0x3b8] sm:$0xff]  ;;  %2217 = vmatpush.msrb.mxu2 %v2154_v41 }
 0xa4d   : > { %v1894_v60 = vsel %vm1891_vm12, %v1893_v59, %v1889_v0  ;;  %v2148_v59 = vld [vmem:[#allocation11 + $0x380] sm:$0xff]  ;;  %v2149_v0 = vld [vmem:[#allocation11 + $0x388] sm:$0xff]  ;;  %v2103_v50 = vld [vmem:[#allocation11 + $0x218] sm:$0xff] }
 0xa4e   : > { %v1911_v62 = vmul.f32 %v3867_v17, %v1894_v60  ;;  %v2039_v17 = vld [vmem:[#allocation8 + $0xf0] sm:$0xff]  ;;  %2177 = vmatpush.msrb.mxu0 %v2152_v56 }
 0xa4f   : > { %2047 = vmatpush.msra.mxu3 %v2039_v17  ;;  %v2150_v60 = vld [vmem:[#allocation11 + $0x390] sm:$0xff]  ;;  %v2129_v17 = vld [vmem:[#allocation11 + $0x2e8] sm:$0xff] }
 0xa50   : > { %1915 = vst.msk [vmem:[%s3880_s3 + $0x10] sm:$0xff] %vm954_vm1, %v1911_v62  ;;  %2178 = vmatpush.msrb.mxu0 %v2148_v59  ;;  %2218 = vmatpush.msrb.mxu2 %v2150_v60  ;;  %v2289_v56 = vld [vmem:[#allocation14 + $0x2e8] sm:$0xff]  ;;  %v2323_v59 = vld [vmem:[#allocation14 + $0x3f8] sm:$0xff]  ;;  %v2306_v60 = vld [vmem:[#allocation14 + $0x370] sm:$0xff] }
 0xa51   : > { %2048 = vmatpush.msra.mxu3 %v2038_v18  ;;  %v2130_v18 = vld [vmem:[#allocation11 + $0x2f0] sm:$0xff] }
 0xa53   : > { %2049 = vmatpush.msra.mxu3 %v2037_v19  ;;  %v2131_v19 = vld [vmem:[#allocation11 + $0x2f8] sm:$0xff] }
 0xa54   : > { %v1716_v63 = vpop.permute.xlu1 %1715 }
 0xa55   : > { %1981 = vmatpush.msra.mxu1 %v1716_v63  ;;  %2050 = vmatpush.msra.mxu3 %v2036_v20  ;;  %v2144_v63 = vld [vmem:[#allocation11 + $0x360] sm:$0xff] }
 0xa56   : > { %2800 = vmatmul.msk.f32.vlgmr.msra.gmra.mxu1 %vm954_vm1, %v1911_v62  ;;  %v2151_v62 = vld [vmem:[#allocation11 + $0x398] sm:$0xff]  ;;  %2179 = vmatpush.msrb.mxu0 %v2144_v63  ;;  %v2124_v20 = vld [vmem:[#allocation11 + $0x2c0] sm:$0xff] }
 0xa57   : > { %2051 = vmatpush.msra.mxu3 %v2035_v21  ;;  %2195 = vmatpush.msrb.mxu1 %v2161_v46  ;;  %v2125_v21 = vld [vmem:[#allocation11 + $0x2c8] sm:$0xff]  ;;  %v2100_v46 = vld [vmem:[#allocation11 + $0x200] sm:$0xff] }
 0xa59   : > { %2196 = vmatpush.msrb.mxu1 %v2157_v48  ;;  %v2275_v48 = vld [vmem:[#allocation14 + $0x278] sm:$0xff] }
 0xa5b   : > { %2197 = vmatpush.msrb.mxu1 %v2153_v57  ;;  %v2307_v57 = vld [vmem:[#allocation14 + $0x378] sm:$0xff] }
 0xa5d   : > { %2198 = vmatpush.msrb.mxu1 %v2149_v0  ;;  %v2288_v0 = vld [vmem:[#allocation14 + $0x2e0] sm:$0xff] }
 0xa72   : > { %v1843_v1 = vpop.xlane.xlu0 %1842 }
 0xa73   : > { %3023 = vrcp.f32 %v1843_v1  ;;  %v1864_v5 = vand.u32 2147483648, %v1843_v1  ;;  %v1862_v7 = vand.u32 2147483647, %v1843_v1  ;;  %vm1858_vm14 = vweird.f32 %v1843_v1 }
 0xa75   : > { %v1865_v9 = vor.u32 1.1754944e-38, %v1864_v5  ;;  %vm1863_vm2 = vcmp.eq.f32.partialorder %v1862_v7, 8.507059e+37  ;;  %v2141_v5 = vld [vmem:[#allocation11 + $0x348] sm:$0xff]  ;;  %v2143_v7 = vld [vmem:[#allocation11 + $0x358] sm:$0xff] }
 0xa79   : > { %v3024_v2 = vpop.eup %3023 }
 0xa7a   : > { %v1854_v3 = vmul.f32 %v3024_v2, %v1843_v1  ;;  %vm1859_vm13 = vweird.f32 %v3024_v2  ;;  %v2145_v1 = vld [vmem:[#allocation11 + $0x368] sm:$0xff] }
 0xa7b   : > { %vm1860_vm15 = vmor %vm1858_vm14, %vm1859_vm13  ;;  %2199 = vmatpush.msrb.mxu1 %v2145_v1  ;;  %v2305_v1 = vld [vmem:[#allocation14 + $0x368] sm:$0xff] }
 0xa7c   : > { %v1855_v4 = vsub.f32 1.0, %v1854_v3  ;;  %v2147_v3 = vld [vmem:[#allocation11 + $0x378] sm:$0xff] }
 0xa7d   : > { %2200 = vmatpush.msrb.mxu1 %v2141_v5  ;;  %v2304_v5 = vld [vmem:[#allocation14 + $0x360] sm:$0xff] }
 0xa7e   : > { %v1856_v6 = vmul.f32 %v3024_v2, %v1855_v4  ;;  %v2140_v4 = vld [vmem:[#allocation11 + $0x340] sm:$0xff] }
 0xa7f   : > { %2180 = vmatpush.msrb.mxu0 %v2140_v4  ;;  %v2287_v4 = vld [vmem:[#allocation14 + $0x2d8] sm:$0xff] }
 0xa80   : > { %v1857_v8 = vadd.f32 %v3024_v2, %v1856_v6  ;;  %v2142_v6 = vld [vmem:[#allocation11 + $0x350] sm:$0xff] }
 0xa82   : > { %v1861_v10 = vsel %vm1860_vm15, %v3024_v2, %v1857_v8  ;;  %v2146_v2 = vld [vmem:[#allocation11 + $0x370] sm:$0xff]  ;;  %v2136_v8 = vld [vmem:[#allocation11 + $0x320] sm:$0xff] }
 0xa83   : > { %v1866_v11 = vsel %vm1863_vm2, %v1865_v9, %v1861_v10  ;;  %2219 = vmatpush.msrb.mxu2 %v2146_v2  ;;  %v2137_v9 = vld [vmem:[#allocation11 + $0x328] sm:$0xff]  ;;  %v2138_v10 = vld [vmem:[#allocation11 + $0x330] sm:$0xff]  ;;  %2181 = vmatpush.msrb.mxu0 %v2136_v8  ;;  %v2286_v8 = vld [vmem:[#allocation14 + $0x2d0] sm:$0xff] }
 0xa84   : > { %v1909_v12 = vmul.f32 %v3874_v22, %v1866_v11  ;;  %v2034_v22 = vld [vmem:[#allocation8 + $0xc8] sm:$0xff]  ;;  %2201 = vmatpush.msrb.mxu1 %v2137_v9  ;;  %v2139_v11 = vld [vmem:[#allocation11 + $0x338] sm:$0xff]  ;;  %v2321_v2 = vld [vmem:[#allocation14 + $0x3e8] sm:$0xff] }
 0xa85   : > { %2052 = vmatpush.msra.mxu3 %v2034_v22  ;;  %2220 = vmatpush.msrb.mxu2 %v2142_v6  ;;  %v2126_v22 = vld [vmem:[#allocation11 + $0x2d0] sm:$0xff]  ;;  %v2320_v6 = vld [vmem:[#allocation14 + $0x3e0] sm:$0xff]  ;;  %v2303_v9 = vld [vmem:[#allocation14 + $0x358] sm:$0xff] }
 0xa86   : > { %1913 = vst.msk [vmem:[%s3880_s3] sm:$0xff] %vm954_vm1, %v1909_v12  ;;  %2798 = vmatmul.msk.f32.vlgmr.msrb.gmra.mxu3 %vm954_vm1, %v1909_v12  ;;  %v2132_v12 = vld [vmem:[#allocation11 + $0x300] sm:$0xff] }
 0xa87   : > { %2053 = vmatpush.msra.mxu3 %v2033_v23  ;;  %2221 = vmatpush.msrb.mxu2 %v2138_v10  ;;  %v2127_v23 = vld [vmem:[#allocation11 + $0x2d8] sm:$0xff]  ;;  %v2319_v10 = vld [vmem:[#allocation14 + $0x3d8] sm:$0xff] }
 0xa88   : > { %2182 = vmatpush.msrb.mxu0 %v2132_v12  ;;  %v2285_v12 = vld [vmem:[#allocation14 + $0x2c8] sm:$0xff] }
 0xa89   : > { %2054 = vmatpush.msra.mxu3 %v2032_v24  ;;  %v2120_v24 = vld [vmem:[#allocation11 + $0x2a0] sm:$0xff] }
 0xa8a   : > { %2183 = vmatpush.msrb.mxu0 %v2128_v16  ;;  %v2284_v16 = vld [vmem:[#allocation14 + $0x2c0] sm:$0xff] }
 0xa8b   : > { %2055 = vmatpush.msra.mxu3 %v2031_v25  ;;  %v2121_v25 = vld [vmem:[#allocation11 + $0x2a8] sm:$0xff] }
 0xa8c   : > { %2184 = vmatpush.msrb.mxu0 %v2124_v20 }
 0xa8d   : > { %2056 = vmatpush.msra.mxu3 %v2030_v26  ;;  %v2122_v26 = vld [vmem:[#allocation11 + $0x2b0] sm:$0xff] }
 0xa8e   : > { %2185 = vmatpush.msrb.mxu0 %v2120_v24  ;;  %v2316_v24 = vld [vmem:[#allocation14 + $0x3c0] sm:$0xff] }
 0xa8f   : > { %2057 = vmatpush.msra.mxu3 %v2029_v27  ;;  %v2123_v27 = vld [vmem:[#allocation11 + $0x2b8] sm:$0xff] }
 0xa91   : > { %2058 = vmatpush.msra.mxu3 %v2028_v28  ;;  %v2116_v28 = vld [vmem:[#allocation11 + $0x280] sm:$0xff] }
 0xa92   : > { %2186 = vmatpush.msrb.mxu0 %v2116_v28  ;;  %v2299_v28 = vld [vmem:[#allocation14 + $0x338] sm:$0xff] }
 0xa93   : > { %2059 = vmatpush.msra.mxu3 %v2027_v29  ;;  %v2117_v29 = vld [vmem:[#allocation11 + $0x288] sm:$0xff] }
 0xa95   : > { %2060 = vmatpush.msra.mxu3 %v2026_v30  ;;  %v2118_v30 = vld [vmem:[#allocation11 + $0x290] sm:$0xff] }
 0xa97   : > { %2061 = vmatpush.msra.mxu3 %v2025_v31  ;;  %v2119_v31 = vld [vmem:[#allocation11 + $0x298] sm:$0xff] }
 0xa99   : > { %2235 = vmatpush.msrb.mxu3 %v2163_v49  ;;  %v2102_v49 = vld [vmem:[#allocation11 + $0x210] sm:$0xff] }
 0xa9b   : > { %2236 = vmatpush.msrb.mxu3 %v2159_v52  ;;  %v2274_v52 = vld [vmem:[#allocation14 + $0x270] sm:$0xff] }
 0xa9d   : > { %2237 = vmatpush.msrb.mxu3 %v2155_v58  ;;  %v2272_v58 = vld [vmem:[#allocation14 + $0x260] sm:$0xff] }
 0xa9f   : > { %2238 = vmatpush.msrb.mxu3 %v2151_v62  ;;  %v2322_v62 = vld [vmem:[#allocation14 + $0x3f0] sm:$0xff] }
 0xaa1   : > { %2239 = vmatpush.msrb.mxu3 %v2147_v3  ;;  %v2271_v3 = vld [vmem:[#allocation14 + $0x258] sm:$0xff] }
 0xaa3   : > { %2240 = vmatpush.msrb.mxu3 %v2143_v7  ;;  %v2270_v7 = vld [vmem:[#allocation14 + $0x250] sm:$0xff] }
 0xaa5   : > { %2241 = vmatpush.msrb.mxu3 %v2139_v11  ;;  %v2269_v11 = vld [vmem:[#allocation14 + $0x248] sm:$0xff] }
 0xac6   : > { %v1960_v13 = vpop.f32.mrf.mxu0 }
 0xac7   : > { %2010 = vrot.lane.b32.xlu2 %v1960_v13, %s3463_s6  ;;  %v2133_v13 = vld [vmem:[#allocation11 + $0x308] sm:$0xff]  ;;  %s4043_s6 = sshll.u32 %s3583_s18, 5 }
 0xac8   : > { %2202 = vmatpush.msrb.mxu1 %v2133_v13  ;;  %v2302_v13 = vld [vmem:[#allocation14 + $0x350] sm:$0xff]  ;;  %s2519_s30 = scalar_lea.hbm %s4083_s1, %s4043_s6 }
 0xac9   : > { %s2522_s28 = sshll.u32 %s2519_s30, 4  ;;  %s2523_s28 = int_to_ptr.hbm [resolvable:$true] %s2522_s28 }
 0xaca   : > { %2203 = vmatpush.msrb.mxu1 %v2129_v17  ;;  %s3313_s4 = sshra.s32 %s2523_s28, 4  ;;  %s3314_s4 = int_to_ptr.hbm [resolvable:$true] %s3313_s4 }
 0xacb   : > { %s3315_s14 = scalar_lea.hbm %s3314_s4, 32  ;;  %p3320_p12 = scmp.lt.s32.totalorder %s3314_s4, %s4083_s1 }
 0xacc   : > { %v2006_v14 = vpop.f32.mrf.mxu2  ;;  %2204 = vmatpush.msrb.mxu1 %v2125_v21  ;;  %v2267_v21 = vld [vmem:[#allocation14 + $0x238] sm:$0xff]  ;;  %p3316_p1 = scmp.ne.s32.totalorder %s3314_s4, %s3315_s14 }
 0xace   : > { %2205 = vmatpush.msrb.mxu1 %v2121_v25  ;;  %p3317_p3 = pnand %p3316_p1, %p3677_p4 }
 0xacf   : > { %2018 = vrot.lane.b32.xlu2 %v2006_v14, %s3464_s8  ;;  %v2134_v14 = vld [vmem:[#allocation11 + $0x310] sm:$0xff]  ;;  %s3319_s8 = scalar_lea.hbm %s4083_s1, 64 }
 0xad0   : > { %2222 = vmatpush.msrb.mxu2 %v2134_v14  ;;  %2206 = vmatpush.msrb.mxu1 %v2117_v29  ;;  %v2318_v14 = vld [vmem:[#allocation14 + $0x3d0] sm:$0xff]  ;;  %v2315_v29 = vld [vmem:[#allocation14 + $0x3b8] sm:$0xff]  ;;  %p3318_p5 = pneg %p3317_p3  ;;  %p3321_p7 = scmp.lt.s32.totalorder %s3319_s8, %s3315_s14 }
 0xad2   : > { %2223 = vmatpush.msrb.mxu2 %v2130_v18  ;;  %v2301_v18 = vld [vmem:[#allocation14 + $0x348] sm:$0xff]  ;;  %p3322_p8 = por %p3321_p7, %p3320_p12 }
 0xad3   : > { %v1983_v15 = vpop.f32.mrf.mxu1 }
 0xad4   : > { %2014 = vrot.lane.b32.xlu1 %v1983_v15, %s3465_s19  ;;  %v2135_v15 = vld [vmem:[#allocation11 + $0x318] sm:$0xff]  ;;  %2224 = vmatpush.msrb.mxu2 %v2126_v22  ;;  %v2283_v22 = vld [vmem:[#allocation14 + $0x2b8] sm:$0xff]  ;;  %p3323_p9 = pnand %p3322_p8, %p3318_p5 }
 0xad5   : > { %2242 = vmatpush.msrb.mxu3 %v2135_v15  ;;  %v2268_v15 = vld [vmem:[#allocation14 + $0x240] sm:$0xff] }
 0xad6   : > { %2225 = vmatpush.msrb.mxu2 %v2122_v26  ;;  %v2266_v26 = vld [vmem:[#allocation14 + $0x230] sm:$0xff] }
 0xad7   : > { %2243 = vmatpush.msrb.mxu3 %v2131_v19  ;;  %v2317_v19 = vld [vmem:[#allocation14 + $0x3c8] sm:$0xff] }
 0xad8   : > { %2226 = vmatpush.msrb.mxu2 %v2118_v30 }
 0xad9   : > { %2244 = vmatpush.msrb.mxu3 %v2127_v23  ;;  %v2300_v23 = vld [vmem:[#allocation14 + $0x340] sm:$0xff] }
 0xadb   : > { %2245 = vmatpush.msrb.mxu3 %v2123_v27  ;;  %v2282_v27 = vld [vmem:[#allocation14 + $0x2b0] sm:$0xff] }
 0xadd   : > { %2246 = vmatpush.msrb.mxu3 %v2119_v31  ;;  %v2265_v31 = vld [vmem:[#allocation14 + $0x228] sm:$0xff] }
 0xb09   : > { %v1937_v33 = vpop.f32.mrf.mxu3 }
 0xb21   : > { %v2011_v32 = vpop.permute.xlu2 %2010 }
 0xb22   : > { %v2021_v34 = vsel %vm857_vm0, %v1937_v33, %v2011_v32  ;;  %v2112_v32 = vld [vmem:[#allocation11 + $0x260] sm:$0xff]  ;;  %v2113_v33 = vld [vmem:[#allocation11 + $0x268] sm:$0xff] }
 0xb23   : > { %2187 = vmatpush.msrb.mxu0 %v2112_v32  ;;  %2207 = vmatpush.msrb.mxu1 %v2113_v33  ;;  %v2281_v32 = vld [vmem:[#allocation14 + $0x2a8] sm:$0xff]  ;;  %v2298_v33 = vld [vmem:[#allocation14 + $0x330] sm:$0xff] }
 0xb29   : > { %v2019_v36 = vpop.permute.xlu2 %2018 }
 0xb46   : > { %v2015_v35 = vpop.permute.xlu1 %2014 }
 0xb47   : > { %v2022_v37 = vsel %vm1160_vm4, %v2021_v34, %v2015_v35  ;;  %v2114_v34 = vld [vmem:[#allocation11 + $0x270] sm:$0xff]  ;;  %v2115_v35 = vld [vmem:[#allocation11 + $0x278] sm:$0xff] }
 0xb48   : > { %v2023_v38 = vsel %vm1162_vm5, %v2022_v37, %v2019_v36  ;;  %2227 = vmatpush.msrb.mxu2 %v2114_v34  ;;  %2247 = vmatpush.msrb.mxu3 %v2115_v35  ;;  %v2108_v36 = vld [vmem:[#allocation11 + $0x240] sm:$0xff]  ;;  %v2109_v37 = vld [vmem:[#allocation11 + $0x248] sm:$0xff]  ;;  %v2314_v34 = vld [vmem:[#allocation14 + $0x3b0] sm:$0xff] }
 0xb49   : > { %2062 = vmatmul.f32.vlgmr.msra.gmra.mxu3 %v2023_v38  ;;  %v2110_v38 = vld [vmem:[#allocation11 + $0x250] sm:$0xff]  ;;  %2188 = vmatpush.msrb.mxu0 %v2108_v36  ;;  %v2264_v36 = vld [vmem:[#allocation14 + $0x220] sm:$0xff] }
 0xb4a   : > { %2208 = vmatpush.msrb.mxu1 %v2109_v37  ;;  %2228 = vmatpush.msrb.mxu2 %v2110_v38  ;;  %v2280_v37 = vld [vmem:[#allocation14 + $0x2a0] sm:$0xff] }
 0xbcc   : > { %v2063_v40 = vpop.f32.mrf.mxu3 }
 0xbcd   : > { %v2064_v42 = vadd.f32 %v2980_v39, %v2063_v40  ;;  %v2111_v39 = vld [vmem:[#allocation11 + $0x258] sm:$0xff]  ;;  %v2104_v40 = vld [vmem:[#allocation11 + $0x220] sm:$0xff] }
 0xbce   : > { %2248 = vmatpush.msrb.mxu3 %v2111_v39  ;;  %2189 = vmatpush.msrb.mxu0 %v2104_v40  ;;  %v2263_v39 = vld [vmem:[#allocation14 + $0x218] sm:$0xff] }
 0xbcf   : > { %v2066_v44 = vadd.f32 %v2064_v42, %v3842_v43  ;;  %v2105_v42 = vld [vmem:[#allocation11 + $0x228] sm:$0xff]  ;;  %v2279_v40 = vld [vmem:[#allocation14 + $0x298] sm:$0xff] }
 0xbd0   : > { %2209 = vmatpush.msrb.mxu1 %v2105_v42  ;;  %2249 = vmatpush.msrb.mxu3 %v2107_v45  ;;  %v2981_v42 = vld [vmem:[%s4079_s5 + $0x1] ss:$0 sm:$0xff] }
 0xbd1   : > { %2067 = vadd.xlane.f32.xlu1 %v2066_v44  ;;  %2190 = vmatpush.msrb.mxu0 %v2100_v46  ;;  %v2982_v46 = vld [vmem:[#allocation10 + $0x1] ss:$0 sm:$0xff] }
 0xbd2   : > { %2210 = vmatpush.msrb.mxu1 %v2101_v47  ;;  %2250 = vmatpush.msrb.mxu3 %v2103_v50  ;;  %v2262_v50 = vld [vmem:[#allocation14 + $0x210] sm:$0xff] }
 0xbd3   : > { %2329 = vmatpush.msra.mxu0 %v2275_v48  ;;  %v2278_v48 = vld [vmem:[#allocation14 + $0x290] sm:$0xff] }
 0xbd4   : > { %2349 = vmatpush.msra.mxu1 %v2291_v51  ;;  %2389 = vmatpush.msra.mxu3 %v2323_v59  ;;  %v2297_v51 = vld [vmem:[#allocation14 + $0x328] sm:$0xff]  ;;  %v2294_v59 = vld [vmem:[#allocation14 + $0x310] sm:$0xff] }
 0xbd5   : > { %2330 = vmatpush.msra.mxu0 %v2274_v52  ;;  %v2261_v52 = vld [vmem:[#allocation14 + $0x208] sm:$0xff] }
 0xbd6   : > { %2390 = vmatpush.msra.mxu3 %v2322_v62  ;;  %v2309_v62 = vld [vmem:[#allocation14 + $0x388] sm:$0xff] }
 0xbd8   : > { %2391 = vmatpush.msra.mxu3 %v2321_v2  ;;  %v2165_v2 = vld [vmem:[#allocation13 + $0x4] sm:$0xf] }
 0xbda   : > { %2392 = vmatpush.msra.mxu3 %v2320_v6 }
 0xbdc   : > { %2393 = vmatpush.msra.mxu3 %v2319_v10 }
 0xbde   : > { %2394 = vmatpush.msra.mxu3 %v2318_v14 }
 0xbe0   : > { %2395 = vmatpush.msra.mxu3 %v2317_v19  ;;  %v2983_v19 = vld [vmem:[%s4080_s10 + $0x1] ss:$0 sm:$0xff] }
 0xbe2   : > { %2396 = vmatpush.msra.mxu3 %v2316_v24 }
 0xbe4   : > { %2397 = vmatpush.msra.mxu3 %v2315_v29  ;;  %v2457_v29 = vld [vmem:[#allocation16 + $0x78] sm:$0xff] }
 0xbe6   : > { %2398 = vmatpush.msra.mxu3 %v2314_v34 }
 0xc44   : > { %v2068_v53 = vpop.xlane.xlu1 %2067 }
 0xc45   : > { %v2069_v43 = vmul.f32 %v2068_v53, %v3802_v61  ;;  %v2290_v53 = vld [vmem:[#allocation14 + $0x2f0] sm:$0xff] }
 0xc46   : > { %2350 = vmatpush.msra.mxu1 %v2290_v53  ;;  %v2277_v53 = vld [vmem:[#allocation14 + $0x288] sm:$0xff] }
 0xc47   : > { %v3907_v54 = vsub.f32 %v2066_v44, %v2069_v43  ;;  %v2106_v44 = vld [vmem:[#allocation11 + $0x230] sm:$0xff] }
 0xc48   : > { %2229 = vmatpush.msrb.mxu2 %v2106_v44  ;;  %2351 = vmatpush.msra.mxu1 %v2289_v56  ;;  %v2260_v56 = vld [vmem:[#allocation14 + $0x200] sm:$0xff] }
 0xc49   : > { %v2071_v55 = vmul.f32 %v3907_v54, %v3907_v54 }
 0xc4a   : > { %2230 = vmatpush.msrb.mxu2 %v2102_v49  ;;  %2352 = vmatpush.msra.mxu1 %v2288_v0  ;;  %v2310_v0 = vld [vmem:[#allocation14 + $0x390] sm:$0xff] }
 0xc4b   : > { %2072 = vadd.xlane.f32.xlu2 %v2071_v55  ;;  %v2273_v55 = vld [vmem:[#allocation14 + $0x268] sm:$0xff] }
 0xc4c   : > { %2369 = vmatpush.msra.mxu2 %v2307_v57  ;;  %2331 = vmatpush.msra.mxu0 %v2273_v55  ;;  %v2312_v55 = vld [vmem:[#allocation14 + $0x3a0] sm:$0xff] }
 0xc4d   : > { %2353 = vmatpush.msra.mxu1 %v2287_v4  ;;  %v2276_v57 = vld [vmem:[#allocation14 + $0x280] sm:$0xff]  ;;  %v2168_v4 = vperm.slane %v2165_v2, 1 }
 0xc4e   : > { %2370 = vmatpush.msra.mxu2 %v2306_v60  ;;  %2332 = vmatpush.msra.mxu0 %v2272_v58  ;;  %v2311_v58 = vld [vmem:[#allocation14 + $0x398] sm:$0xff]  ;;  %v2293_v60 = vld [vmem:[#allocation14 + $0x308] sm:$0xff] }
 0xc4f   : > { %2354 = vmatpush.msra.mxu1 %v2286_v8 }
 0xc50   : > { %2371 = vmatpush.msra.mxu2 %v2305_v1  ;;  %2333 = vmatpush.msra.mxu0 %v2271_v3  ;;  %v2308_v1 = vld [vmem:[#allocation14 + $0x380] sm:$0xff]  ;;  %v2167_v3 = vperm.slane %v2165_v2, 0 }
 0xc51   : > { %2355 = vmatpush.msra.mxu1 %v2285_v12  ;;  %v2170_v12 = vperm.slane %v2165_v2, 3 }
 0xc52   : > { %2372 = vmatpush.msra.mxu2 %v2304_v5  ;;  %2334 = vmatpush.msra.mxu0 %v2270_v7 }
 0xc53   : > { %2356 = vmatpush.msra.mxu1 %v2284_v16 }
 0xc54   : > { %2373 = vmatpush.msra.mxu2 %v2303_v9  ;;  %2335 = vmatpush.msra.mxu0 %v2269_v11  ;;  %v2169_v11 = vperm.slane %v2165_v2, 2 }
 0xc55   : > { %2357 = vmatpush.msra.mxu1 %v2283_v22 }
 0xc56   : > { %2374 = vmatpush.msra.mxu2 %v2302_v13  ;;  %2336 = vmatpush.msra.mxu0 %v2268_v15 }
 0xc57   : > { %2358 = vmatpush.msra.mxu1 %v2282_v27 }
 0xc58   : > { %2375 = vmatpush.msra.mxu2 %v2301_v18  ;;  %2337 = vmatpush.msra.mxu0 %v2267_v21 }
 0xc59   : > { %2359 = vmatpush.msra.mxu1 %v2281_v32 }
 0xc5a   : > { %2376 = vmatpush.msra.mxu2 %v2300_v23  ;;  %2338 = vmatpush.msra.mxu0 %v2266_v26 }
 0xc5b   : > { %2360 = vmatpush.msra.mxu1 %v2280_v37  ;;  %v2453_v37 = vld [vmem:[#allocation16 + $0x58] sm:$0xff] }
 0xc5c   : > { %2377 = vmatpush.msra.mxu2 %v2299_v28  ;;  %2339 = vmatpush.msra.mxu0 %v2265_v31 }
 0xc5d   : > { %2361 = vmatpush.msra.mxu1 %v2279_v40  ;;  %v2450_v40 = vld [vmem:[#allocation16 + $0x40] sm:$0xff] }
 0xc5e   : > { %2378 = vmatpush.msra.mxu2 %v2298_v33  ;;  %2340 = vmatpush.msra.mxu0 %v2264_v36  ;;  %v2454_v36 = vld [vmem:[#allocation16 + $0x60] sm:$0xff] }
 0xc5f   : > { %2362 = vmatpush.msra.mxu1 %v2278_v48  ;;  %v2442_v48 = vld [vmem:[#allocation16] sm:$0xff] }
 0xc60   : > { %2341 = vmatpush.msra.mxu0 %v2263_v39  ;;  %2379 = vmatpush.msra.mxu2 %v2297_v51  ;;  %v2451_v39 = vld [vmem:[#allocation16 + $0x48] sm:$0xff] }
 0xc61   : > { %2363 = vmatpush.msra.mxu1 %v2277_v53 }
 0xc62   : > { %2342 = vmatpush.msra.mxu0 %v2262_v50  ;;  %v2443_v50 = vld [vmem:[#allocation16 + $0x8] sm:$0xff] }
 0xc63   : > { %2364 = vmatpush.msra.mxu1 %v2276_v57 }
 0xc64   : > { %2343 = vmatpush.msra.mxu0 %v2261_v52 }
 0xc66   : > { %2344 = vmatpush.msra.mxu0 %v2260_v56 }
 0xcbe   : > { %v2073_v43 = vpop.xlane.xlu2 %2072 }
 0xcbf   : > { %v2074_v41 = vmul.f32 %v2073_v43, %v3802_v61  ;;  %v2296_v43 = vld [vmem:[#allocation14 + $0x320] sm:$0xff] }
 0xcc0   : > { %2380 = vmatpush.msra.mxu2 %v2296_v43 }
 0xcc1   : > { %v3912_v63 = vadd.f32 1e-05, %v2074_v41  ;;  %v2295_v41 = vld [vmem:[#allocation14 + $0x318] sm:$0xff] }
 0xcc2   : > { %2381 = vmatpush.msra.mxu2 %v2295_v41 }
 0xcc3   : > { %3025 = vrsqrt.f32 %v3912_v63  ;;  %vm2082_vm1 = vweird.f32 %v3912_v63 }
 0xcc4   : > { %2382 = vmatpush.msra.mxu2 %v2294_v59 }
 0xcc6   : > { %2383 = vmatpush.msra.mxu2 %v2293_v60 }
 0xcc9   : > { %v3026_v17 = vpop.eup %3025 }
 0xcca   : > { %v2077_v20 = vmul.f32 %v3026_v17, %v3912_v63  ;;  %vm2083_vm0 = vweird.f32 %v3026_v17  ;;  %v2292_v63 = vld [vmem:[#allocation14 + $0x300] sm:$0xff] }
 0xccb   : > { %vm2084_vm4 = vmor %vm2082_vm1, %vm2083_vm0  ;;  %2384 = vmatpush.msra.mxu2 %v2292_v63 }
 0xccc   : > { %v2078_v25 = vmul.f32 %v3026_v17, %v2077_v20 }
 0xcce   : > { %v2079_v30 = vmul.f32 0.5, %v2078_v25 }
 0xcd0   : > { %v2080_v35 = vsub.f32 1.5, %v2079_v30  ;;  %v2456_v30 = vld [vmem:[#allocation16 + $0x70] sm:$0xff] }
 0xcd2   : > { %v2081_v38 = vmul.f32 %v3026_v17, %v2080_v35  ;;  %v2455_v35 = vld [vmem:[#allocation16 + $0x68] sm:$0xff] }
 0xcd4   : > { %v2085_v44 = vsel %vm2084_vm4, %v3026_v17, %v2081_v38  ;;  %v2452_v38 = vld [vmem:[#allocation16 + $0x50] sm:$0xff] }
 0xcd5   : > { %v2086_v45 = vmul.f32 %v2085_v44, %v3907_v54  ;;  %v2313_v54 = vld [vmem:[#allocation14 + $0x3a8] sm:$0xff]  ;;  %v2448_v44 = vld [vmem:[#allocation16 + $0x30] sm:$0xff] }
 0xcd6   : > { %2399 = vmatpush.msra.mxu3 %v2313_v54 }
 0xcd7   : > { %v2092_v47 = vmul.f32 %v2981_v42, %v2086_v45  ;;  %v2449_v42 = vld [vmem:[#allocation16 + $0x38] sm:$0xff]  ;;  %v2447_v45 = vld [vmem:[#allocation16 + $0x28] sm:$0xff] }
 0xcd8   : > { %2400 = vmatpush.msra.mxu3 %v2312_v55 }
 0xcd9   : > { %v3921_v49 = vadd.f32 %v2982_v46, %v2092_v47  ;;  %v2446_v46 = vld [vmem:[#allocation16 + $0x20] sm:$0xff]  ;;  %v2445_v47 = vld [vmem:[#allocation16 + $0x18] sm:$0xff] }
 0xcda   : > { %2401 = vmatpush.msra.mxu3 %v2311_v58  ;;  %v2984_v58 = vld [vmem:[%s4081_s7 + $0x1] ss:$0 sm:$0xff] }
 0xcdb   : > { %2191 = vmatmul.f32.vlgmr.msrb.gmra.mxu0 %v3921_v49  ;;  %2211 = vmatmul.f32.vlgmr.msrb.gmra.mxu1 %v3921_v49 }
 0xcdc   : > { %2231 = vmatmul.f32.vlgmr.msrb.gmra.mxu2 %v3921_v49  ;;  %2251 = vmatmul.f32.vlgmr.msrb.gmra.mxu3 %v3921_v49 }
 0xcdd   : > { %2402 = vmatpush.msra.mxu3 %v2310_v0  ;;  %2462 = vmatpush.msrb.mxu0 %v2457_v29  ;;  %v2985_v0 = vld [vmem:[%s4082_s29 + $0x1] ss:$0 sm:$0xff] }
 0xcdf   : > { %2403 = vmatpush.msra.mxu3 %v2309_v62  ;;  %2463 = vmatpush.msrb.mxu0 %v2456_v30 }
 0xce1   : > { %2404 = vmatpush.msra.mxu3 %v2308_v1  ;;  %2464 = vmatpush.msrb.mxu0 %v2455_v35 }
 0xce3   : > { %2465 = vmatpush.msrb.mxu0 %v2454_v36 }
 0xce5   : > { %2466 = vmatpush.msrb.mxu0 %v2453_v37 }
 0xce7   : > { %2467 = vmatpush.msrb.mxu0 %v2452_v38 }
 0xce9   : > { %2468 = vmatpush.msrb.mxu0 %v2451_v39 }
 0xceb   : > { %2469 = vmatpush.msrb.mxu0 %v2450_v40 }
 0xced   : > { %2470 = vmatpush.msrb.mxu0 %v2449_v42 }
 0xcef   : > { %2471 = vmatpush.msrb.mxu0 %v2448_v44 }
 0xcf1   : > { %2472 = vmatpush.msrb.mxu0 %v2447_v45 }
 0xcf3   : > { %2473 = vmatpush.msrb.mxu0 %v2446_v46 }
 0xcf5   : > { %2474 = vmatpush.msrb.mxu0 %v2445_v47 }
 0xd58   : > { %v2192_v5 = vpop.f32.mrf.mxu0  ;;  %v2212_v6 = vpop.f32.mrf.mxu1 }
 0xd59   : > { %v2193_v7 = vadd.f32 %v2192_v5, %v2167_v3  ;;  %v2213_v8 = vadd.f32 %v2212_v6, %v2168_v4 }
 0xd5b   : > { %v2255_v9 = vmax.f32 %v2193_v7, 0.0  ;;  %v2256_v10 = vmax.f32 %v2213_v8, 0.0 }
 0xd5d   : > { %2345 = vmatmul.f32.vlgmr.msra.gmra.mxu0 %v2255_v9  ;;  %2365 = vmatmul.f32.vlgmr.msra.gmra.mxu1 %v2256_v10 }
 0xd5f   : > { %v2232_v13 = vpop.f32.mrf.mxu2  ;;  %v2252_v14 = vpop.f32.mrf.mxu3 }
 0xd60   : > { %v2233_v15 = vadd.f32 %v2232_v13, %v2169_v11  ;;  %v2253_v16 = vadd.f32 %v2252_v14, %v2170_v12 }
 0xd62   : > { %v2257_v17 = vmax.f32 %v2233_v15, 0.0  ;;  %v2258_v18 = vmax.f32 %v2253_v16, 0.0 }
 0xd64   : > { %2385 = vmatmul.f32.vlgmr.msra.gmra.mxu2 %v2257_v17  ;;  %2405 = vmatmul.f32.vlgmr.msra.gmra.mxu3 %v2258_v18 }
 0xdda   : > { %v2346_v20 = vpop.f32.mrf.mxu0  ;;  %v2366_v22 = vpop.f32.mrf.mxu1 }
 0xddb   : > { %v2347_v21 = vadd.f32 %v2983_v19, %v2346_v20 }
 0xddd   : > { %v2367_v23 = vadd.f32 %v2366_v22, %v2347_v21 }
 0xde7   : > { %v2386_v24 = vpop.f32.mrf.mxu2  ;;  %v2406_v26 = vpop.f32.mrf.mxu3 }
 0xde8   : > { %v2387_v25 = vadd.f32 %v2386_v24, %v2367_v23 }
 0xdea   : > { %v2407_v27 = vadd.f32 %v2406_v26, %v2387_v25 }
 0xdec   : > { %v2409_v28 = vadd.f32 %v2407_v27, %v3921_v49  ;;  %v2444_v49 = vld [vmem:[#allocation16 + $0x10] sm:$0xff] }
 0xded   : > { %2475 = vmatpush.msrb.mxu0 %v2444_v49 }
 0xdee   : > { %2410 = vadd.xlane.f32.xlu0 %v2409_v28 }
 0xdef   : > { %2476 = vmatpush.msrb.mxu0 %v2443_v50 }
 0xdf1   : > { %2477 = vmatpush.msrb.mxu0 %v2442_v48 }
 0xe61   : > { %v2411_v31 = vpop.xlane.xlu0 %2410 }
 0xe62   : > { %v2412_v32 = vmul.f32 %v2411_v31, %v3802_v61 }
 0xe64   : > { %v2413_v33 = vsub.f32 %v2409_v28, %v2412_v32 }
 0xe66   : > { %v2414_v34 = vmul.f32 %v2413_v33, %v2413_v33 }
 0xe68   : > { %2415 = vadd.xlane.f32.xlu0 %v2414_v34 }
 0xedb   : > { %v2416_v51 = vpop.xlane.xlu0 %2415 }
 0xedc   : > { %v2417_v54 = vmul.f32 %v2416_v51, %v3802_v61 }
 0xede   : > { %v2418_v52 = vadd.f32 1e-05, %v2417_v54 }
 0xee0   : > { %3027 = vrsqrt.f32 %v2418_v52  ;;  %vm2425_vm3 = vweird.f32 %v2418_v52 }
 0xee6   : > { %v3028_v53 = vpop.eup %3027 }
 0xee7   : > { %v2420_v43 = vmul.f32 %v3028_v53, %v2418_v52  ;;  %vm2426_vm5 = vweird.f32 %v3028_v53 }
 0xee8   : > { %vm2427_vm6 = vmor %vm2425_vm3, %vm2426_vm5 }
 0xee9   : > { %v2421_v55 = vmul.f32 %v3028_v53, %v2420_v43 }
 0xeeb   : > { %v2422_v56 = vmul.f32 0.5, %v2421_v55 }
 0xeed   : > { %v2423_v57 = vsub.f32 1.5, %v2422_v56 }
 0xeef   : > { %v2424_v41 = vmul.f32 %v3028_v53, %v2423_v57 }
 0xef1   : > { %v2428_v61 = vsel %vm2427_vm6, %v3028_v53, %v2424_v41 }
 0xef2   : > { %v2429_v59 = vmul.f32 %v2428_v61, %v2413_v33 }
 0xef4   : > { %v2435_v60 = vmul.f32 %v2984_v58, %v2429_v59 }
 0xef6   : > { %v2441_v62 = vadd.f32 %v2985_v0, %v2435_v60 }
 0xef8   : > { %2478 = vmatmul.f32.vlgmr.msrb.gmra.mxu0 %v2441_v62 }
 0xef9   : > { %3326 = shalt.err (!%p3323_p9)
}
 0xefa   : > { %s3467_s15 = smov 128   ;;  %s3468_s30 = smov 8  }
 0xefb   : > { %2854 = dma.vmem_to_hbm [thread:$0]  (%p3677_p4), %s2521_s20, 512, %s2523_s28, %s3947_s23, %s3467_s15, %s3467_s15, %s3468_s30  }
 0xefc   : > { %s4084_s2 = sshll.u32 %s3583_s18, 5  ;;  %s4085_s7 = sld [smem:[#allocation44_spill]] }
 0xefd   : > { %s2537_s4 = sshll.u32 %s3880_s3, 4  ;;  %s2538_s4 = int_to_ptr.vmem [resolvable:$true] %s2537_s4 }
 0xf02   : > { %s2536_s9 = scalar_lea.hbm %s4085_s7, %s4084_s2  ;;  %s3347_s20 = scalar_lea.hbm %s4085_s7, 64 }
 0xf03   : > { %s2539_s6 = sshll.u32 %s2536_s9, 4  ;;  %s2540_s6 = int_to_ptr.hbm [resolvable:$true] %s2539_s6 }
 0xf04   : > { %s3341_s14 = sshra.s32 %s2540_s6, 4  ;;  %s3342_s14 = int_to_ptr.hbm [resolvable:$true] %s3341_s14 }
 0xf05   : > { %s3343_s8 = scalar_lea.hbm %s3342_s14, 32  ;;  %p3348_p0 = scmp.lt.s32.totalorder %s3342_s14, %s4085_s7 }
 0xf06   : > { %p3344_p10 = scmp.ne.s32.totalorder %s3342_s14, %s3343_s8  ;;  %p3349_p2 = scmp.lt.s32.totalorder %s3347_s20, %s3343_s8 }
 0xf08   : > { %p3345_p13 = pnand %p3344_p10, %p3677_p4  ;;  %p3350_p1 = por %p3349_p2, %p3348_p0 }
 0xf0a   : > { %p3346_p11 = pneg %p3345_p13 }
 0xf0c   : > { %p3351_p3 = pnand %p3350_p1, %p3346_p11 }
 0xf0e   : > { %3354 = shalt.err (!%p3351_p3)
}
 0xf0f   : > { %2855 = dma.vmem_to_hbm [thread:$0]  (%p3677_p4), %s2538_s4, 512, %s2540_s6, %s3947_s23, %s3467_s15, %s3467_s15, %s3468_s30  }
 0xf10   : > { %s2810_s9 = sshll.u32 %s3583_s18, 3  ;;  %s4086_s1 = sld [smem:[#allocation42_spill]] }
 0xf11   : > { %s4087_s14 = sld [smem:[#allocation41_spill]]  ;;  %s4088_s8 = sshll.u32 %s3708_s17, 3 }
 0xf12   : > { %s701_s19 = scalar_lea.vmem [#allocation17], %s4088_s8  ;;  %s2484_s23 = scalar_lea.sflag [#allocation4], %s3708_s17 }
 0xf13   : > { %s2506_s20 = sshll.u32 %s701_s19, 4  ;;  %s2507_s20 = int_to_ptr.vmem [resolvable:$true] %s2506_s20 }
 0xf16   : > { %s2504_s5 = scalar_lea.hbm %s4086_s1, %s2810_s9  ;;  %s3375_s4 = scalar_lea.hbm %s4086_s1, 16 }
 0xf17   : > { %v2986_v63 = vld [vmem:[%s4087_s14] ss:$0 sm:$0xff]  ;;  %s2508_s28 = sshll.u32 %s2504_s5, 4  ;;  %s2509_s28 = int_to_ptr.hbm [resolvable:$true] %s2508_s28 }
 0xf18   : > { %s3369_s18 = sshra.s32 %s2509_s28, 4  ;;  %s3370_s18 = int_to_ptr.hbm [resolvable:$true] %s3369_s18 }
 0xf19   : > { %s3371_s15 = scalar_lea.hbm %s3370_s18, 8  ;;  %p3376_p8 = scmp.lt.s32.totalorder %s3370_s18, %s4086_s1 }
 0xf1a   : > { %p3372_p5 = scmp.ne.s32.totalorder %s3370_s18, %s3371_s15  ;;  %p3377_p9 = scmp.lt.s32.totalorder %s3375_s4, %s3371_s15 }
 0xf1c   : > { %p3373_p12 = pnand %p3372_p5, %p3677_p4  ;;  %p3378_p10 = por %p3377_p9, %p3376_p8 }
 0xf1e   : > { %p3374_p7 = pneg %p3373_p12 }
 0xf20   : > { %p3379_p13 = pnand %p3378_p10, %p3374_p7 }
 0xf75   : > { %v2479_v1 = vpop.f32.mrf.mxu0 }
 0xf76   : > { %v2480_v2 = vadd.f32 %v2986_v63, %v2479_v1 }
 0xf78   : > { %2482 = vst [vmem:[%s701_s19] sm:$0xff] %v2480_v2 }
 0xf79   : > { %3382 = shalt.err (!%p3379_p13)
}
 0xf7a   : > { %2853 = dma.vmem_to_hbm [thread:$0]  (%p3677_p4), %s2507_s20, 128, %s2509_s28, %s2484_s23  }
 0xf7b PF: > { %s2554_s17 = sand.u32 1, %s3429_s24   ;;  %p4089_p11 = scmp.ge.s32.totalorder %s3441_s27, 2 }
 0xf7c   : > { %s2555_s2 = scalar_lea.sflag [#allocation4], %s2554_s17 }
 0xf7d   : > { %p2889_p0 = pnand %p4089_p11, %p3681_p6 }
 0xf7f   : > { %p2890_p2 = pneg %p2889_p0 }
 0xf81   : > { %3420 = dma.done.wait (%p2890_p2), %s2555_s2, 128  }
 0xf82   : > { %3422 = vsyncadd (%p2890_p2), %s2555_s2, 4294967168  ;;  %s4090_s5 = sadd.s32 4294967294, %s3441_s27  }
 0xf83   : > { %s2564_s0 = sand.u32 1, %s4090_s5  }
 0xf84   : > { %s2565_s10 = scalar_lea.sflag [#allocation19], %s2564_s0 }
 0xf85   : > { %3424 = dma.done.wait (%p2890_p2), %s2565_s10, 1024  }
 0xf86   : > { %3426 = vsyncadd (%p2890_p2), %s2565_s10, 4294966272  ;;  %p38_p4 = scmp.ge.s32.totalorder %s3649_s21, 4   ;;  %s4091_s24 = smov %s3433_s25 }
 0xf87   : > { %s4092_s25 = smov %s3437_s26  ;;  %s4093_s26 = smov %s3660_s11 }
 0xf88   : > { %s4094_s27 = smov %s3649_s21  ;;  %40 = sbr.rel (!%p38_p4) target bundleno = 29 (0x1d), region = 201 }
 0xf8d   :  { %2581 = vsyncpa [#allocation3], 1 }
 0xf8e   :  { %2583 = vsyncpa [#allocation3 + $0x1], 1 }
 0xf8f   :  { %2584 = vsyncpa [#allocation6], 1 }
 0xf90   :  { %2585 = vsyncpa [#allocation9], 1 }
 0xf91   :  { %2586 = vsyncpa [#allocation12], 1 }
 0xf92   :  { %2587 = vsyncpa [#allocation15], 1 }
 0xf93   :  { %2588 = vsyncpa [#allocation4], 1 }
 0xf94   :  { %2590 = vsyncpa [#allocation4 + $0x1], 1 }
 0xf95   :  { %2591 = vsyncpa [#allocation19], 1 }
 0xf96   :  { %2593 = vsyncpa [#allocation19 + $0x1], 1 }

</bundles_post_ra>
